<compile_context>
chip_gen: v5e
topology: v5e:2x2
jax: 0.10.0
libtpu: 0.0.40
codegen_flags: <defaults>
</compile_context>

<pallas_src>
import functools

import jax
import jax.numpy as jnp
from jax.experimental import pallas as pl
from jax.experimental.pallas import tpu as pltpu

_VMEM = pl.BlockSpec(memory_space=pltpu.MemorySpace.VMEM)


# --------------------------------------------------------------------------
# Model config (small, deterministic synthetic weights)
# --------------------------------------------------------------------------
CFG = dict(
    batch=2, img_ch=3, img_hw=16,
    stem_ch=8, img_dim=32,           # "efficientnet_b0"-style stem + conv_head + avgpool
    seq=8, vocab=100, type_vocab=2, max_pos=16,
    hidden=32, heads=4, layers=2, intermediate=64,
    proj_dim=64,
)


# --------------------------------------------------------------------------
# BlockSpec helpers
# --------------------------------------------------------------------------
def _const_spec(*shape):
    zeros = (0,) * len(shape)
    return pl.BlockSpec(shape, lambda l: zeros)


def _layer_spec(*shape):
    zeros = (0,) * len(shape)
    return pl.BlockSpec((None,) + shape, lambda l: (l,) + zeros)


# --------------------------------------------------------------------------
# Fused text-transformer-stack kernel (grid axis = layer index)
# --------------------------------------------------------------------------
def _text_stack_kernel(mask_ref, x_ref, emb_ln_ref,
                       wqkv_ref, bqkv_ref, wo_ref, bo_ref, ln1_ref,
                       w1_ref, b1_ref, w2_ref, b2_ref, ln2_ref,
                       wp_ref, bp_ref,
                       o_ref, h_scr, qkv_scr, attn_scr,
                       *, batch, seq, heads, d_head):
    D = heads * d_head
    l = pl.program_id(0)

    def layernorm(x, gb_ref):
        mu = jnp.mean(x, axis=-1, keepdims=True)
        xc = x - mu
        var = jnp.mean(xc * xc, axis=-1, keepdims=True)
        inv = jax.lax.rsqrt(var + 1e-5)
        return xc * inv * gb_ref[0:1, :] + gb_ref[1:2, :]

    # layer 0: embedding LayerNorm into the resident activation scratch
    @pl.when(l == 0)
    def _():
        h_scr[...] = layernorm(x_ref[...].astype(jnp.float32), emb_ln_ref)

    x = h_scr[...]                                              # (B*S, D) f32

    # fused QKV projection: one lane-dense (D, 3D) matmul, bf16 MXU / f32 acc
    qkv_scr[...] = (jnp.dot(x.astype(jnp.bfloat16), wqkv_ref[...],
                            preferred_element_type=jnp.float32) + bqkv_ref[...])

    # per-(batch, head) attention, heads split by static VMEM slices (no transposes)
    scale = 1.0 / (d_head ** 0.5)
    for b in range(batch):
        neg = (1.0 - mask_ref[b:b + 1, :]) * (-1e9)             # (1, S) additive mask
        r0 = b * seq
        for h in range(heads):
            c = h * d_head
            q = qkv_scr[r0:r0 + seq, c:c + d_head].astype(jnp.bfloat16)
            k = qkv_scr[r0:r0 + seq, D + c:D + c + d_head].astype(jnp.bfloat16)
            v = qkv_scr[r0:r0 + seq, 2 * D + c:2 * D + c + d_head].astype(jnp.bfloat16)
            s = jax.lax.dot_general(q, k, (((1,), (1,)), ((), ())),
                                    preferred_element_type=jnp.float32) * scale
            s = s + neg
            m = jnp.max(s, axis=-1, keepdims=True)
            p = jnp.exp(s - m)
            denom = jnp.sum(p, axis=-1, keepdims=True)
            p = p * pl.reciprocal(denom, approx=True)
            attn_scr[r0:r0 + seq, c:c + d_head] = jnp.dot(
                p.astype(jnp.bfloat16), v, preferred_element_type=jnp.float32)

    # output projection + residual + LN1
    ao = (jnp.dot(attn_scr[...].astype(jnp.bfloat16), wo_ref[...],
                  preferred_element_type=jnp.float32) + bo_ref[...])
    x = layernorm(x + ao, ln1_ref)

    # MLP + residual + LN2
    f = (jnp.dot(x.astype(jnp.bfloat16), w1_ref[...],
                 preferred_element_type=jnp.float32) + b1_ref[...])
    # TODO(synk): HF RoBERTa uses exact erf-GELU; tanh approximation kept (EUP-only path).
    f = 0.5 * f * (1.0 + jnp.tanh(0.7978845608028654 * (f + 0.044715 * f * f * f)))
    f2 = (jnp.dot(f.astype(jnp.bfloat16), w2_ref[...],
                  preferred_element_type=jnp.float32) + b2_ref[...])
    x = layernorm(x + f2, ln2_ref)
    h_scr[...] = x

    # last layer: extract CLS rows (target_token_idx=0) and project to proj_dim
    @pl.when(l == pl.num_programs(0) - 1)
    def _():
        proj = (jnp.dot(x.astype(jnp.bfloat16), wp_ref[...],
                        preferred_element_type=jnp.float32) + bp_ref[...])
        for b in range(batch):
            o_ref[b:b + 1, :] = proj[b * seq:b * seq + 1, :]


def text_encoder_project(params, input_ids, token_type_ids, attention_mask):
    """RoBERTa-style text encoder + CLS extraction + projection, one pallas_call."""
    p = params["text"]
    B, S = input_ids.shape
    H, D = CFG["heads"], CFG["hidden"]
    I, P, L = CFG["intermediate"], CFG["proj_dim"], CFG["layers"]
    Dh = D // H

    # embedding gathers stay in JAX glue
    pos_ids = jnp.arange(S, dtype=jnp.int32)[None, :] + 2   # RoBERTa offset (padding_idx=1)
    x = (p["word_emb"][input_ids] + p["pos_emb"][pos_ids]
         + p["type_emb"][token_type_ids]).reshape(B * S, D).astype(jnp.float32)
    mask = attention_mask.astype(jnp.float32)                # (B, S), 1=attend / 0=pad

    kernel = functools.partial(_text_stack_kernel, batch=B, seq=S, heads=H, d_head=Dh)
    return pl.pallas_call(
        kernel,
        out_shape=jax.ShapeDtypeStruct((B, P), jnp.float32),
        grid=(L,),
        in_specs=[
            _const_spec(B, S),           # attention mask
            _const_spec(B * S, D),       # summed embeddings
            _const_spec(2, D),           # embedding LN (gamma; beta)
            _layer_spec(D, 3 * D),       # fused Wqkv
            _layer_spec(1, 3 * D),       # fused bqkv
            _layer_spec(D, D),           # Wo
            _layer_spec(1, D),           # bo
            _layer_spec(2, D),           # LN1 (gamma; beta)
            _layer_spec(D, I),           # W1
            _layer_spec(1, I),           # b1
            _layer_spec(I, D),           # W2
            _layer_spec(1, D),           # b2
            _layer_spec(2, D),           # LN2 (gamma; beta)
            _const_spec(D, P),           # text projection weight
            _const_spec(1, P),           # text projection bias
        ],
        out_specs=_const_spec(B, P),
        scratch_shapes=[pltpu.VMEM((B * S, D), jnp.float32),      # resident activation
                        pltpu.VMEM((B * S, 3 * D), jnp.float32),  # fused QKV
                        pltpu.VMEM((B * S, D), jnp.float32)],     # attention output
        compiler_params=pltpu.CompilerParams(dimension_semantics=("arbitrary",)),
    )(mask, x, p["emb_ln"],
      p["wqkv"], p["bqkv"], p["wo"], p["bo"], p["ln1"],
      p["w1"], p["b1"], p["w2"], p["b2"], p["ln2"],
      params["txt_proj_w"], params["txt_proj_b"])


# --------------------------------------------------------------------------
# Fused image-tower kernel: stem matmul+SiLU, head matmul+SiLU, avgpool, projection
# --------------------------------------------------------------------------
def _image_tower_kernel(patch_ref, sw_ref, sb_ref, hw_ref, hb_ref, pw_ref, pb_ref,
                        o_ref, *, batch, pixels):
    h = (jnp.dot(patch_ref[...], sw_ref[...], preferred_element_type=jnp.float32)
         + sb_ref[...])
    h = h * jax.nn.sigmoid(h)                                  # stem conv + folded BN + SiLU
    h = (jnp.dot(h.astype(jnp.bfloat16), hw_ref[...], preferred_element_type=jnp.float32)
         + hb_ref[...])
    h = h * jax.nn.sigmoid(h)                                  # 1x1 head conv + folded BN + SiLU
    for b in range(batch):
        pooled = jnp.mean(h[b * pixels:(b + 1) * pixels, :], axis=0, keepdims=True)  # (1, C)
        o_ref[b:b + 1, :] = (jnp.dot(pooled.astype(jnp.bfloat16), pw_ref[...],
                                     preferred_element_type=jnp.float32) + pb_ref[...])


def im2col(x, k, stride, pad):
    """NCHW im2col glue for conv-as-matmul: returns (B*OH*OW, Cin*k*k)."""
    B, C, H, W = x.shape
    xp = jnp.pad(x, ((0, 0), (0, 0), (pad, pad), (pad, pad)))
    OH = (H + 2 * pad - k) // stride + 1
    OW = (W + 2 * pad - k) // stride + 1
    cols = []
    for i in range(k):
        for j in range(k):
            cols.append(xp[:, :, i:i + stride * (OH - 1) + 1:stride,
                              j:j + stride * (OW - 1) + 1:stride])
    patches = jnp.stack(cols, axis=2)                          # (B, C, k*k, OH, OW)
    patches = patches.transpose(0, 3, 4, 1, 2).reshape(B * OH * OW, C * k * k)
    return patches, OH, OW


def image_encoder_project(params, x_nchw):
    """EfficientNet-style stem/head/avgpool + image projection, one pallas_call."""
    # TODO(synk): EfficientNet-B0's MBConv block stack is abbreviated to stem+head+avgpool.
    p = params["image"]
    B = x_nchw.shape[0]
    patches, OH, OW = im2col(x_nchw, k=3, stride=2, pad=1)     # (B*OH*OW, Cin*9)
    kpad = p["stem_w"].shape[0] - patches.shape[1]             # pad K 27 -> 32
    patches = jnp.pad(patches, ((0, 0), (0, kpad))).astype(jnp.bfloat16)

    kernel = functools.partial(_image_tower_kernel, batch=B, pixels=OH * OW)
    return pl.pallas_call(
        kernel,
        out_shape=jax.ShapeDtypeStruct((B, CFG["proj_dim"]), jnp.float32),
        in_specs=[_VMEM] * 7,
        out_specs=_VMEM,
    )(patches, p["stem_w"], p["stem_b"], p["head_w"], p["head_b"],
      params["img_proj_w"], params["img_proj_b"])


# --------------------------------------------------------------------------
# Parameters (synthetic, deterministic); matmul weights stored bf16, stats f32
# --------------------------------------------------------------------------
def _normal(key, shape, std=0.02):
    return std * jax.random.normal(key, shape, dtype=jnp.float32)


def init_params(key):
    c = CFG
    keys = iter(jax.random.split(key, 64))
    D, I, L, P = c["hidden"], c["intermediate"], c["layers"], c["proj_dim"]

    # ---- image tower: stem 3x3 s2 conv + BN(SiLU) folded, 1x1 head conv + BN(SiLU) ----
    stem_w = _normal(next(keys), (c["stem_ch"], c["img_ch"], 3, 3))     # (Cout, Cin, kh, kw)
    stem_gamma = 1.0 + _normal(next(keys), (c["stem_ch"],))
    stem_beta = _normal(next(keys), (c["stem_ch"],))
    stem_w_folded = (stem_w * stem_gamma[:, None, None, None]).reshape(c["stem_ch"], -1).T
    kdim = stem_w_folded.shape[0]
    kpad = (-(-kdim // 8)) * 8 - kdim                                    # 27 -> 32
    stem_w_folded = jnp.pad(stem_w_folded, ((0, kpad), (0, 0)))
    head_w = _normal(next(keys), (c["img_dim"], c["stem_ch"], 1, 1))
    head_gamma = 1.0 + _normal(next(keys), (c["img_dim"],))
    head_beta = _normal(next(keys), (c["img_dim"],))
    head_w_folded = (head_w * head_gamma[:, None, None, None]).reshape(c["img_dim"], -1).T
    image = dict(stem_w=stem_w_folded.astype(jnp.bfloat16),
                 stem_b=stem_beta.reshape(1, -1),
                 head_w=head_w_folded.astype(jnp.bfloat16),
                 head_b=head_beta.reshape(1, -1))

    # ---- text encoder: per-layer weights stacked along a leading layer axis ----
    wqkv, bqkv, wo, bo, ln1, w1, b1, w2, b2, ln2 = ([] for _ in range(10))
    for _ in range(L):
        wq = _normal(next(keys), (D, D))
        wk = _normal(next(keys), (D, D))
        wv = _normal(next(keys), (D, D))
        wqkv.append(jnp.concatenate([wq, wk, wv], axis=1))               # (D, 3D) fused
        bqkv.append(jnp.concatenate(
            [_normal(next(keys), (D,)) for _ in range(3)]).reshape(1, 3 * D))
        wo.append(_normal(next(keys), (D, D)))
        bo.append(_normal(next(keys), (D,)).reshape(1, D))
        ln1.append(jnp.stack([jnp.ones((D,), jnp.float32), jnp.zeros((D,), jnp.float32)]))
        w1.append(_normal(next(keys), (D, I)))
        b1.append(_normal(next(keys), (I,)).reshape(1, I))
        w2.append(_normal(next(keys), (I, D)))
        b2.append(_normal(next(keys), (D,)).reshape(1, D))
        ln2.append(jnp.stack([jnp.ones((D,), jnp.float32), jnp.zeros((D,), jnp.float32)]))
    text = dict(
        word_emb=_normal(next(keys), (c["vocab"], D)),
        pos_emb=_normal(next(keys), (c["max_pos"], D)),
        type_emb=_normal(next(keys), (c["type_vocab"], D)),
        emb_ln=jnp.stack([jnp.ones((D,), jnp.float32), jnp.zeros((D,), jnp.float32)]),
        wqkv=jnp.stack(wqkv).astype(jnp.bfloat16), bqkv=jnp.stack(bqkv),
        wo=jnp.stack(wo).astype(jnp.bfloat16), bo=jnp.stack(bo),
        ln1=jnp.stack(ln1),
        w1=jnp.stack(w1).astype(jnp.bfloat16), b1=jnp.stack(b1),
        w2=jnp.stack(w2).astype(jnp.bfloat16), b2=jnp.stack(b2),
        ln2=jnp.stack(ln2),
    )

    p = dict(image=image, text=text)
    p["img_proj_w"] = _normal(next(keys), (c["img_dim"], P)).astype(jnp.bfloat16)
    p["img_proj_b"] = _normal(next(keys), (P,)).reshape(1, P)
    p["txt_proj_w"] = _normal(next(keys), (D, P)).astype(jnp.bfloat16)
    p["txt_proj_b"] = _normal(next(keys), (P,)).reshape(1, P)
    return p


# --------------------------------------------------------------------------
# Forward
# --------------------------------------------------------------------------
def clip_forward(params, text, image):
    image_embeddings = image_encoder_project(params, image)
    text_embeddings = text_encoder_project(
        params, text["input_ids"], text["token_type_ids"], text["attention_mask"])
    return text_embeddings, image_embeddings


# --------------------------------------------------------------------------
if __name__ == "__main__":
    key = jax.random.PRNGKey(0)
    k_params, k_img, k_ids = jax.random.split(key, 3)

    params = init_params(k_params)

    c = CFG
    image = jax.random.normal(k_img, (c["batch"], c["img_ch"], c["img_hw"], c["img_hw"]),
                              dtype=jnp.float32)                        # NCHW
    input_ids = jax.random.randint(k_ids, (c["batch"], c["seq"]), 0, c["vocab"], dtype=jnp.int32)
    token_type_ids = jnp.zeros((c["batch"], c["seq"]), dtype=jnp.int32)
    attention_mask = jnp.ones((c["batch"], c["seq"]), dtype=jnp.int32)
    attention_mask = attention_mask.at[1, -2:].set(0)                   # some padding in batch 1
    text = dict(input_ids=input_ids, token_type_ids=token_type_ids, attention_mask=attention_mask)

    fwd = jax.jit(clip_forward)
    text_emb, img_emb = fwd(params, text, image)
    jax.block_until_ready((text_emb, img_emb))

    assert text_emb.shape == (c["batch"], c["proj_dim"])
    assert img_emb.shape == (c["batch"], c["proj_dim"])
    assert jnp.all(jnp.isfinite(text_emb)) and jnp.all(jnp.isfinite(img_emb))
    print("KERNEL_OK")
</pallas_src>

<mosaic_0001>
module attributes {stable_mosaic.version = 11 : i64} {
  func.func @_image_tower_kernel(%arg0: memref<128x32xbf16, #tpu.memory_space<vmem>>, %arg1: memref<32x8xbf16, #tpu.memory_space<vmem>>, %arg2: memref<1x8xf32, #tpu.memory_space<vmem>>, %arg3: memref<8x32xbf16, #tpu.memory_space<vmem>>, %arg4: memref<1x32xf32, #tpu.memory_space<vmem>>, %arg5: memref<32x64xbf16, #tpu.memory_space<vmem>>, %arg6: memref<1x64xf32, #tpu.memory_space<vmem>>, %arg7: memref<2x64xf32, #tpu.memory_space<vmem>>) attributes {dimension_semantics = [], scalar_prefetch = 0 : i64, scratch_operands = 0 : i64, tpu.core_type = #tpu.core_type<tc>} {
    %c0 = arith.constant 0 : index
    %c0_0 = arith.constant 0 : index
    %0 = vector.load %arg0[%c0, %c0_0] : memref<128x32xbf16, #tpu.memory_space<vmem>>, vector<128x32xbf16>
    %c0_1 = arith.constant 0 : index
    %c0_2 = arith.constant 0 : index
    %1 = vector.load %arg1[%c0_1, %c0_2] : memref<32x8xbf16, #tpu.memory_space<vmem>>, vector<32x8xbf16>
    %cst = arith.constant dense<0.000000e+00> : vector<128x8xf32>
    %2 = tpu.matmul %0, %1, %cst {dimension_numbers = #tpu.dot_dimension_numbers<[1], [0], [0], [1], [0, 0, 1, 1], [], []>} : vector<128x32xbf16>, vector<32x8xbf16>, vector<128x8xf32> -> vector<128x8xf32>
    %c0_3 = arith.constant 0 : index
    %c0_4 = arith.constant 0 : index
    %3 = vector.load %arg2[%c0_3, %c0_4] : memref<1x8xf32, #tpu.memory_space<vmem>>, vector<1x8xf32>
    %4 = vector.broadcast %3 : vector<1x8xf32> to vector<128x8xf32>
    %5 = arith.addf %2, %4 : vector<128x8xf32>
    %6 = arith.negf %5 : vector<128x8xf32>
    %7 = math.exp %6 : vector<128x8xf32>
    %cst_5 = arith.constant 1.000000e+00 : f32
    %8 = vector.broadcast %cst_5 : f32 to vector<128x8xf32>
    %9 = arith.addf %8, %7 : vector<128x8xf32>
    %10 = arith.divf %8, %9 : vector<128x8xf32>
    %11 = arith.mulf %5, %10 : vector<128x8xf32>
    %12 = arith.truncf %11 : vector<128x8xf32> to vector<128x8xbf16>
    %c0_6 = arith.constant 0 : index
    %c0_7 = arith.constant 0 : index
    %13 = vector.load %arg3[%c0_6, %c0_7] : memref<8x32xbf16, #tpu.memory_space<vmem>>, vector<8x32xbf16>
    %cst_8 = arith.constant dense<0.000000e+00> : vector<128x32xf32>
    %14 = tpu.matmul %12, %13, %cst_8 {dimension_numbers = #tpu.dot_dimension_numbers<[1], [0], [0], [1], [0, 0, 1, 1], [], []>} : vector<128x8xbf16>, vector<8x32xbf16>, vector<128x32xf32> -> vector<128x32xf32>
    %c0_9 = arith.constant 0 : index
    %c0_10 = arith.constant 0 : index
    %15 = vector.load %arg4[%c0_9, %c0_10] : memref<1x32xf32, #tpu.memory_space<vmem>>, vector<1x32xf32>
    %16 = vector.broadcast %15 : vector<1x32xf32> to vector<128x32xf32>
    %17 = arith.addf %14, %16 : vector<128x32xf32>
    %18 = arith.negf %17 : vector<128x32xf32>
    %19 = math.exp %18 : vector<128x32xf32>
    %cst_11 = arith.constant 1.000000e+00 : f32
    %20 = vector.broadcast %cst_11 : f32 to vector<128x32xf32>
    %21 = arith.addf %20, %19 : vector<128x32xf32>
    %22 = arith.divf %20, %21 : vector<128x32xf32>
    %23 = arith.mulf %17, %22 : vector<128x32xf32>
    %24 = vector.extract_strided_slice %23 {offsets = [0, 0], sizes = [64, 32], strides = [1, 1]} : vector<128x32xf32> to vector<64x32xf32>
    %cst_12 = arith.constant dense<0.000000e+00> : vector<32xf32>
    %25 = vector.multi_reduction <add>, %24, %cst_12 [0] : vector<64x32xf32> to vector<32xf32>
    %26 = vector.shape_cast %25 : vector<32xf32> to vector<1x32xf32>
    %cst_13 = arith.constant 6.400000e+01 : f32
    %27 = vector.broadcast %cst_13 : f32 to vector<1x32xf32>
    %28 = arith.divf %26, %27 : vector<1x32xf32>
    %29 = arith.truncf %28 : vector<1x32xf32> to vector<1x32xbf16>
    %c0_14 = arith.constant 0 : index
    %c0_15 = arith.constant 0 : index
    %30 = vector.load %arg5[%c0_14, %c0_15] : memref<32x64xbf16, #tpu.memory_space<vmem>>, vector<32x64xbf16>
    %cst_16 = arith.constant dense<0.000000e+00> : vector<1x64xf32>
    %31 = tpu.matmul %29, %30, %cst_16 {dimension_numbers = #tpu.dot_dimension_numbers<[1], [0], [0], [1], [0, 0, 1, 1], [], []>} : vector<1x32xbf16>, vector<32x64xbf16>, vector<1x64xf32> -> vector<1x64xf32>
    %c0_17 = arith.constant 0 : index
    %c0_18 = arith.constant 0 : index
    %32 = vector.load %arg6[%c0_17, %c0_18] : memref<1x64xf32, #tpu.memory_space<vmem>>, vector<1x64xf32>
    %33 = arith.addf %31, %32 : vector<1x64xf32>
    %c0_19 = arith.constant 0 : index
    %c0_20 = arith.constant 0 : index
    %34 = vector.load %arg7[%c0_19, %c0_20] : memref<2x64xf32, #tpu.memory_space<vmem>>, vector<1x64xf32>
    tpu.vector_store %arg7[%c0_19, %c0_20], %33 {strides = array<i32>} : memref<2x64xf32, #tpu.memory_space<vmem>>, vector<1x64xf32>,
    %35 = vector.extract_strided_slice %23 {offsets = [64, 0], sizes = [64, 32], strides = [1, 1]} : vector<128x32xf32> to vector<64x32xf32>
    %cst_21 = arith.constant dense<0.000000e+00> : vector<32xf32>
    %36 = vector.multi_reduction <add>, %35, %cst_21 [0] : vector<64x32xf32> to vector<32xf32>
    %37 = vector.shape_cast %36 : vector<32xf32> to vector<1x32xf32>
    %cst_22 = arith.constant 6.400000e+01 : f32
    %38 = vector.broadcast %cst_22 : f32 to vector<1x32xf32>
    %39 = arith.divf %37, %38 : vector<1x32xf32>
    %40 = arith.truncf %39 : vector<1x32xf32> to vector<1x32xbf16>
    %c0_23 = arith.constant 0 : index
    %c0_24 = arith.constant 0 : index
    %41 = vector.load %arg5[%c0_23, %c0_24] : memref<32x64xbf16, #tpu.memory_space<vmem>>, vector<32x64xbf16>
    %cst_25 = arith.constant dense<0.000000e+00> : vector<1x64xf32>
    %42 = tpu.matmul %40, %41, %cst_25 {dimension_numbers = #tpu.dot_dimension_numbers<[1], [0], [0], [1], [0, 0, 1, 1], [], []>} : vector<1x32xbf16>, vector<32x64xbf16>, vector<1x64xf32> -> vector<1x64xf32>
    %c0_26 = arith.constant 0 : index
    %c0_27 = arith.constant 0 : index
    %43 = vector.load %arg6[%c0_26, %c0_27] : memref<1x64xf32, #tpu.memory_space<vmem>>, vector<1x64xf32>
    %44 = arith.addf %42, %43 : vector<1x64xf32>
    %c1 = arith.constant 1 : index
    %c0_28 = arith.constant 0 : index
    %45 = vector.load %arg7[%c1, %c0_28] : memref<2x64xf32, #tpu.memory_space<vmem>>, vector<1x64xf32>
    tpu.vector_store %arg7[%c1, %c0_28], %44 {strides = array<i32>} : memref<2x64xf32, #tpu.memory_space<vmem>>, vector<1x64xf32>,
    return
  }
}

module attributes {stable_mosaic.version = 11 : i64} {
  func.func @_text_stack_kernel(%arg0: i32, %arg1: memref<2x8xf32, #tpu.memory_space<vmem>>, %arg2: memref<16x32xf32, #tpu.memory_space<vmem>>, %arg3: memref<2x32xf32, #tpu.memory_space<vmem>>, %arg4: memref<1x32x96xbf16, #tpu.memory_space<vmem>>, %arg5: memref<1x1x96xf32, #tpu.memory_space<vmem>>, %arg6: memref<1x32x32xbf16, #tpu.memory_space<vmem>>, %arg7: memref<1x1x32xf32, #tpu.memory_space<vmem>>, %arg8: memref<1x2x32xf32, #tpu.memory_space<vmem>>, %arg9: memref<1x32x64xbf16, #tpu.memory_space<vmem>>, %arg10: memref<1x1x64xf32, #tpu.memory_space<vmem>>, %arg11: memref<1x64x32xbf16, #tpu.memory_space<vmem>>, %arg12: memref<1x1x32xf32, #tpu.memory_space<vmem>>, %arg13: memref<1x2x32xf32, #tpu.memory_space<vmem>>, %arg14: memref<32x64xbf16, #tpu.memory_space<vmem>>, %arg15: memref<1x64xf32, #tpu.memory_space<vmem>>, %arg16: memref<2x64xf32, #tpu.memory_space<vmem>>, %arg17: memref<16x32xf32, #tpu.memory_space<vmem>>, %arg18: memref<16x96xf32, #tpu.memory_space<vmem>>, %arg19: memref<16x32xf32, #tpu.memory_space<vmem>>) attributes {dimension_semantics = [#tpu.dimension_semantics<arbitrary>], iteration_bounds = array<i64: 2>, scalar_prefetch = 0 : i64, scratch_operands = 3 : i64, tpu.core_type = #tpu.core_type<tc>, window_params = [{pipeline_mode = #tpu.pipeline_mode<synchronous>, transform_indices = @transform_0, window_bounds = array<i64: 2, 8>}, {pipeline_mode = #tpu.pipeline_mode<synchronous>, transform_indices = @transform_1, window_bounds = array<i64: 16, 32>}, {pipeline_mode = #tpu.pipeline_mode<synchronous>, transform_indices = @transform_2, window_bounds = array<i64: 2, 32>}, {transform_indices = @transform_3, window_bounds = array<i64: 1, 32, 96>}, {transform_indices = @transform_4, window_bounds = array<i64: 1, 1, 96>}, {transform_indices = @transform_5, window_bounds = array<i64: 1, 32, 32>}, {transform_indices = @transform_6, window_bounds = array<i64: 1, 1, 32>}, {transform_indices = @transform_7, window_bounds = array<i64: 1, 2, 32>}, {transform_indices = @transform_8, window_bounds = array<i64: 1, 32, 64>}, {transform_indices = @transform_9, window_bounds = array<i64: 1, 1, 64>}, {transform_indices = @transform_10, window_bounds = array<i64: 1, 64, 32>}, {transform_indices = @transform_11, window_bounds = array<i64: 1, 1, 32>}, {transform_indices = @transform_12, window_bounds = array<i64: 1, 2, 32>}, {pipeline_mode = #tpu.pipeline_mode<synchronous>, transform_indices = @transform_13, window_bounds = array<i64: 32, 64>}, {pipeline_mode = #tpu.pipeline_mode<synchronous>, transform_indices = @transform_14, window_bounds = array<i64: 1, 64>}, {pipeline_mode = #tpu.pipeline_mode<synchronous>, transform_indices = @transform_15, window_bounds = array<i64: 2, 64>}]} {
    %c0_i32 = arith.constant 0 : i32
    %0 = arith.cmpi eq, %arg0, %c0_i32 : i32
    %1 = arith.extui %0 : i1 to i32
    %c0_i32_0 = arith.constant 0 : i32
    %2 = arith.cmpi ne, %1, %c0_i32_0 : i32
    scf.if %2 {
      %c0_162 = arith.constant 0 : index
      %c0_163 = arith.constant 0 : index
      %307 = vector.load %arg2[%c0_162, %c0_163] : memref<16x32xf32, #tpu.memory_space<vmem>>, vector<16x32xf32>
      %cst_164 = arith.constant dense<0.000000e+00> : vector<16xf32>
      %308 = vector.multi_reduction <add>, %307, %cst_164 [1] : vector<16x32xf32> to vector<16xf32>
      %309 = vector.shape_cast %308 : vector<16xf32> to vector<16x1xf32>
      %cst_165 = arith.constant 3.200000e+01 : f32
      %310 = vector.broadcast %cst_165 : f32 to vector<16x1xf32>
      %311 = arith.divf %309, %310 : vector<16x1xf32>
      %312 = vector.broadcast %311 : vector<16x1xf32> to vector<16x32xf32>
      %313 = arith.subf %307, %312 : vector<16x32xf32>
      %314 = arith.mulf %313, %313 : vector<16x32xf32>
      %cst_166 = arith.constant dense<0.000000e+00> : vector<16xf32>
      %315 = vector.multi_reduction <add>, %314, %cst_166 [1] : vector<16x32xf32> to vector<16xf32>
      %316 = vector.shape_cast %315 : vector<16xf32> to vector<16x1xf32>
      %cst_167 = arith.constant 3.200000e+01 : f32
      %317 = vector.broadcast %cst_167 : f32 to vector<16x1xf32>
      %318 = arith.divf %316, %317 : vector<16x1xf32>
      %cst_168 = arith.constant 9.99999974E-6 : f32
      %319 = vector.broadcast %cst_168 : f32 to vector<16x1xf32>
      %320 = arith.addf %318, %319 : vector<16x1xf32>
      %321 = math.rsqrt %320 : vector<16x1xf32>
      %322 = vector.broadcast %321 : vector<16x1xf32> to vector<16x32xf32>
      %323 = arith.mulf %313, %322 : vector<16x32xf32>
      %c0_169 = arith.constant 0 : index
      %c0_170 = arith.constant 0 : index
      %324 = vector.load %arg3[%c0_169, %c0_170] : memref<2x32xf32, #tpu.memory_space<vmem>>, vector<1x32xf32>
      %325 = vector.broadcast %324 : vector<1x32xf32> to vector<16x32xf32>
      %326 = arith.mulf %323, %325 : vector<16x32xf32>
      %c1_171 = arith.constant 1 : index
      %c0_172 = arith.constant 0 : index
      %327 = vector.load %arg3[%c1_171, %c0_172] : memref<2x32xf32, #tpu.memory_space<vmem>>, vector<1x32xf32>
      %328 = vector.broadcast %327 : vector<1x32xf32> to vector<16x32xf32>
      %329 = arith.addf %326, %328 : vector<16x32xf32>
      %c0_173 = arith.constant 0 : index
      %c0_174 = arith.constant 0 : index
      %330 = vector.load %arg17[%c0_173, %c0_174] : memref<16x32xf32, #tpu.memory_space<vmem>>, vector<16x32xf32>
      tpu.vector_store %arg17[%c0_173, %c0_174], %329 {strides = array<i32>} : memref<16x32xf32, #tpu.memory_space<vmem>>, vector<16x32xf32>,
    } else {
    }
    %c0 = arith.constant 0 : index
    %c0_1 = arith.constant 0 : index
    %3 = vector.load %arg17[%c0, %c0_1] : memref<16x32xf32, #tpu.memory_space<vmem>>, vector<16x32xf32>
    %4 = arith.truncf %3 : vector<16x32xf32> to vector<16x32xbf16>
    %c0_2 = arith.constant 0 : index
    %c0_3 = arith.constant 0 : index
    %c0_4 = arith.constant 0 : index
    %5 = vector.load %arg4[%c0_2, %c0_3, %c0_4] : memref<1x32x96xbf16, #tpu.memory_space<vmem>>, vector<1x32x96xbf16>
    %6 = vector.shape_cast %5 : vector<1x32x96xbf16> to vector<32x96xbf16>
    %cst = arith.constant dense<0.000000e+00> : vector<16x96xf32>
    %7 = tpu.matmul %4, %6, %cst {dimension_numbers = #tpu.dot_dimension_numbers<[1], [0], [0], [1], [0, 0, 1, 1], [], []>} : vector<16x32xbf16>, vector<32x96xbf16>, vector<16x96xf32> -> vector<16x96xf32>
    %c0_5 = arith.constant 0 : index
    %c0_6 = arith.constant 0 : index
    %c0_7 = arith.constant 0 : index
    %8 = vector.load %arg5[%c0_5, %c0_6, %c0_7] : memref<1x1x96xf32, #tpu.memory_space<vmem>>, vector<1x1x96xf32>
    %9 = vector.shape_cast %8 : vector<1x1x96xf32> to vector<1x96xf32>
    %10 = vector.broadcast %9 : vector<1x96xf32> to vector<16x96xf32>
    %11 = arith.addf %7, %10 : vector<16x96xf32>
    %c0_8 = arith.constant 0 : index
    %c0_9 = arith.constant 0 : index
    %12 = vector.load %arg18[%c0_8, %c0_9] : memref<16x96xf32, #tpu.memory_space<vmem>>, vector<16x96xf32>
    tpu.vector_store %arg18[%c0_8, %c0_9], %11 {strides = array<i32>} : memref<16x96xf32, #tpu.memory_space<vmem>>, vector<16x96xf32>,
    %c0_10 = arith.constant 0 : index
    %c0_11 = arith.constant 0 : index
    %13 = vector.load %arg1[%c0_10, %c0_11] : memref<2x8xf32, #tpu.memory_space<vmem>>, vector<1x8xf32>
    %cst_12 = arith.constant 1.000000e+00 : f32
    %14 = vector.broadcast %cst_12 : f32 to vector<1x8xf32>
    %15 = arith.subf %14, %13 : vector<1x8xf32>
    %cst_13 = arith.constant -1.000000e+09 : f32
    %16 = vector.broadcast %cst_13 : f32 to vector<1x8xf32>
    %17 = arith.mulf %15, %16 : vector<1x8xf32>
    %c0_14 = arith.constant 0 : index
    %c0_15 = arith.constant 0 : index
    %18 = vector.load %arg18[%c0_14, %c0_15] : memref<16x96xf32, #tpu.memory_space<vmem>>, vector<8x8xf32>
    %19 = arith.truncf %18 : vector<8x8xf32> to vector<8x8xbf16>
    %c0_16 = arith.constant 0 : index
    %c32 = arith.constant 32 : index
    %20 = vector.load %arg18[%c0_16, %c32] : memref<16x96xf32, #tpu.memory_space<vmem>>, vector<8x8xf32>
    %21 = arith.truncf %20 : vector<8x8xf32> to vector<8x8xbf16>
    %c0_17 = arith.constant 0 : index
    %c64 = arith.constant 64 : index
    %22 = vector.load %arg18[%c0_17, %c64] : memref<16x96xf32, #tpu.memory_space<vmem>>, vector<8x8xf32>
    %23 = arith.truncf %22 : vector<8x8xf32> to vector<8x8xbf16>
    %cst_18 = arith.constant dense<0.000000e+00> : vector<8x8xf32>
    %24 = tpu.matmul %19, %21, %cst_18 {dimension_numbers = #tpu.dot_dimension_numbers<[1], [1], [0], [0], [0, 0, 1, 0], [], []>} : vector<8x8xbf16>, vector<8x8xbf16>, vector<8x8xf32> -> vector<8x8xf32>
    %cst_19 = arith.constant 0.353553385 : f32
    %25 = vector.broadcast %cst_19 : f32 to vector<8x8xf32>
    %26 = arith.mulf %24, %25 : vector<8x8xf32>
    %27 = vector.broadcast %17 : vector<1x8xf32> to vector<8x8xf32>
    %28 = arith.addf %26, %27 : vector<8x8xf32>
    %cst_20 = arith.constant dense<0xFF800000> : vector<8xf32>
    %29 = vector.multi_reduction <maximumf>, %28, %cst_20 [1] : vector<8x8xf32> to vector<8xf32>
    %30 = vector.shape_cast %29 : vector<8xf32> to vector<8x1xf32>
    %31 = vector.broadcast %30 : vector<8x1xf32> to vector<8x8xf32>
    %32 = arith.subf %28, %31 : vector<8x8xf32>
    %33 = math.exp %32 : vector<8x8xf32>
    %cst_21 = arith.constant dense<0.000000e+00> : vector<8xf32>
    %34 = vector.multi_reduction <add>, %33, %cst_21 [1] : vector<8x8xf32> to vector<8xf32>
    %35 = vector.shape_cast %34 : vector<8xf32> to vector<8x1xf32>
    %36 = tpu.reciprocal %35 {approx = true} : vector<8x1xf32> -> vector<8x1xf32>
    %37 = vector.broadcast %36 : vector<8x1xf32> to vector<8x8xf32>
    %38 = arith.mulf %33, %37 : vector<8x8xf32>
    %39 = arith.truncf %38 : vector<8x8xf32> to vector<8x8xbf16>
    %cst_22 = arith.constant dense<0.000000e+00> : vector<8x8xf32>
    %40 = tpu.matmul %39, %23, %cst_22 {dimension_numbers = #tpu.dot_dimension_numbers<[1], [0], [0], [1], [0, 0, 1, 1], [], []>} : vector<8x8xbf16>, vector<8x8xbf16>, vector<8x8xf32> -> vector<8x8xf32>
    %c0_23 = arith.constant 0 : index
    %c0_24 = arith.constant 0 : index
    %41 = vector.load %arg19[%c0_23, %c0_24] : memref<16x32xf32, #tpu.memory_space<vmem>>, vector<8x8xf32>
    tpu.vector_store %arg19[%c0_23, %c0_24], %40 {strides = array<i32>} : memref<16x32xf32, #tpu.memory_space<vmem>>, vector<8x8xf32>,
    %c0_25 = arith.constant 0 : index
    %c8 = arith.constant 8 : index
    %42 = vector.load %arg18[%c0_25, %c8] : memref<16x96xf32, #tpu.memory_space<vmem>>, vector<8x8xf32>
    %43 = arith.truncf %42 : vector<8x8xf32> to vector<8x8xbf16>
    %c0_26 = arith.constant 0 : index
    %c40 = arith.constant 40 : index
    %44 = vector.load %arg18[%c0_26, %c40] : memref<16x96xf32, #tpu.memory_space<vmem>>, vector<8x8xf32>
    %45 = arith.truncf %44 : vector<8x8xf32> to vector<8x8xbf16>
    %c0_27 = arith.constant 0 : index
    %c72 = arith.constant 72 : index
    %46 = vector.load %arg18[%c0_27, %c72] : memref<16x96xf32, #tpu.memory_space<vmem>>, vector<8x8xf32>
    %47 = arith.truncf %46 : vector<8x8xf32> to vector<8x8xbf16>
    %cst_28 = arith.constant dense<0.000000e+00> : vector<8x8xf32>
    %48 = tpu.matmul %43, %45, %cst_28 {dimension_numbers = #tpu.dot_dimension_numbers<[1], [1], [0], [0], [0, 0, 1, 0], [], []>} : vector<8x8xbf16>, vector<8x8xbf16>, vector<8x8xf32> -> vector<8x8xf32>
    %cst_29 = arith.constant 0.353553385 : f32
    %49 = vector.broadcast %cst_29 : f32 to vector<8x8xf32>
    %50 = arith.mulf %48, %49 : vector<8x8xf32>
    %51 = vector.broadcast %17 : vector<1x8xf32> to vector<8x8xf32>
    %52 = arith.addf %50, %51 : vector<8x8xf32>
    %cst_30 = arith.constant dense<0xFF800000> : vector<8xf32>
    %53 = vector.multi_reduction <maximumf>, %52, %cst_30 [1] : vector<8x8xf32> to vector<8xf32>
    %54 = vector.shape_cast %53 : vector<8xf32> to vector<8x1xf32>
    %55 = vector.broadcast %54 : vector<8x1xf32> to vector<8x8xf32>
    %56 = arith.subf %52, %55 : vector<8x8xf32>
    %57 = math.exp %56 : vector<8x8xf32>
    %cst_31 = arith.constant dense<0.000000e+00> : vector<8xf32>
    %58 = vector.multi_reduction <add>, %57, %cst_31 [1] : vector<8x8xf32> to vector<8xf32>
    %59 = vector.shape_cast %58 : vector<8xf32> to vector<8x1xf32>
    %60 = tpu.reciprocal %59 {approx = true} : vector<8x1xf32> -> vector<8x1xf32>
    %61 = vector.broadcast %60 : vector<8x1xf32> to vector<8x8xf32>
    %62 = arith.mulf %57, %61 : vector<8x8xf32>
    %63 = arith.truncf %62 : vector<8x8xf32> to vector<8x8xbf16>
    %cst_32 = arith.constant dense<0.000000e+00> : vector<8x8xf32>
    %64 = tpu.matmul %63, %47, %cst_32 {dimension_numbers = #tpu.dot_dimension_numbers<[1], [0], [0], [1], [0, 0, 1, 1], [], []>} : vector<8x8xbf16>, vector<8x8xbf16>, vector<8x8xf32> -> vector<8x8xf32>
    %c0_33 = arith.constant 0 : index
    %c8_34 = arith.constant 8 : index
    %65 = vector.load %arg19[%c0_33, %c8_34] : memref<16x32xf32, #tpu.memory_space<vmem>>, vector<8x8xf32>
    tpu.vector_store %arg19[%c0_33, %c8_34], %64 {strides = array<i32>} : memref<16x32xf32, #tpu.memory_space<vmem>>, vector<8x8xf32>,
    %c0_35 = arith.constant 0 : index
    %c16 = arith.constant 16 : index
    %66 = vector.load %arg18[%c0_35, %c16] : memref<16x96xf32, #tpu.memory_space<vmem>>, vector<8x8xf32>
    %67 = arith.truncf %66 : vector<8x8xf32> to vector<8x8xbf16>
    %c0_36 = arith.constant 0 : index
    %c48 = arith.constant 48 : index
    %68 = vector.load %arg18[%c0_36, %c48] : memref<16x96xf32, #tpu.memory_space<vmem>>, vector<8x8xf32>
    %69 = arith.truncf %68 : vector<8x8xf32> to vector<8x8xbf16>
    %c0_37 = arith.constant 0 : index
    %c80 = arith.constant 80 : index
    %70 = vector.load %arg18[%c0_37, %c80] : memref<16x96xf32, #tpu.memory_space<vmem>>, vector<8x8xf32>
    %71 = arith.truncf %70 : vector<8x8xf32> to vector<8x8xbf16>
    %cst_38 = arith.constant dense<0.000000e+00> : vector<8x8xf32>
    %72 = tpu.matmul %67, %69, %cst_38 {dimension_numbers = #tpu.dot_dimension_numbers<[1], [1], [0], [0], [0, 0, 1, 0], [], []>} : vector<8x8xbf16>, vector<8x8xbf16>, vector<8x8xf32> -> vector<8x8xf32>
    %cst_39 = arith.constant 0.353553385 : f32
    %73 = vector.broadcast %cst_39 : f32 to vector<8x8xf32>
    %74 = arith.mulf %72, %73 : vector<8x8xf32>
    %75 = vector.broadcast %17 : vector<1x8xf32> to vector<8x8xf32>
    %76 = arith.addf %74, %75 : vector<8x8xf32>
    %cst_40 = arith.constant dense<0xFF800000> : vector<8xf32>
    %77 = vector.multi_reduction <maximumf>, %76, %cst_40 [1] : vector<8x8xf32> to vector<8xf32>
    %78 = vector.shape_cast %77 : vector<8xf32> to vector<8x1xf32>
    %79 = vector.broadcast %78 : vector<8x1xf32> to vector<8x8xf32>
    %80 = arith.subf %76, %79 : vector<8x8xf32>
    %81 = math.exp %80 : vector<8x8xf32>
    %cst_41 = arith.constant dense<0.000000e+00> : vector<8xf32>
    %82 = vector.multi_reduction <add>, %81, %cst_41 [1] : vector<8x8xf32> to vector<8xf32>
    %83 = vector.shape_cast %82 : vector<8xf32> to vector<8x1xf32>
    %84 = tpu.reciprocal %83 {approx = true} : vector<8x1xf32> -> vector<8x1xf32>
    %85 = vector.broadcast %84 : vector<8x1xf32> to vector<8x8xf32>
    %86 = arith.mulf %81, %85 : vector<8x8xf32>
    %87 = arith.truncf %86 : vector<8x8xf32> to vector<8x8xbf16>
    %cst_42 = arith.constant dense<0.000000e+00> : vector<8x8xf32>
    %88 = tpu.matmul %87, %71, %cst_42 {dimension_numbers = #tpu.dot_dimension_numbers<[1], [0], [0], [1], [0, 0, 1, 1], [], []>} : vector<8x8xbf16>, vector<8x8xbf16>, vector<8x8xf32> -> vector<8x8xf32>
    %c0_43 = arith.constant 0 : index
    %c16_44 = arith.constant 16 : index
    %89 = vector.load %arg19[%c0_43, %c16_44] : memref<16x32xf32, #tpu.memory_space<vmem>>, vector<8x8xf32>
    tpu.vector_store %arg19[%c0_43, %c16_44], %88 {strides = array<i32>} : memref<16x32xf32, #tpu.memory_space<vmem>>, vector<8x8xf32>,
    %c0_45 = arith.constant 0 : index
    %c24 = arith.constant 24 : index
    %90 = vector.load %arg18[%c0_45, %c24] : memref<16x96xf32, #tpu.memory_space<vmem>>, vector<8x8xf32>
    %91 = arith.truncf %90 : vector<8x8xf32> to vector<8x8xbf16>
    %c0_46 = arith.constant 0 : index
    %c56 = arith.constant 56 : index
    %92 = vector.load %arg18[%c0_46, %c56] : memref<16x96xf32, #tpu.memory_space<vmem>>, vector<8x8xf32>
    %93 = arith.truncf %92 : vector<8x8xf32> to vector<8x8xbf16>
    %c0_47 = arith.constant 0 : index
    %c88 = arith.constant 88 : index
    %94 = vector.load %arg18[%c0_47, %c88] : memref<16x96xf32, #tpu.memory_space<vmem>>, vector<8x8xf32>
    %95 = arith.truncf %94 : vector<8x8xf32> to vector<8x8xbf16>
    %cst_48 = arith.constant dense<0.000000e+00> : vector<8x8xf32>
    %96 = tpu.matmul %91, %93, %cst_48 {dimension_numbers = #tpu.dot_dimension_numbers<[1], [1], [0], [0], [0, 0, 1, 0], [], []>} : vector<8x8xbf16>, vector<8x8xbf16>, vector<8x8xf32> -> vector<8x8xf32>
    %cst_49 = arith.constant 0.353553385 : f32
    %97 = vector.broadcast %cst_49 : f32 to vector<8x8xf32>
    %98 = arith.mulf %96, %97 : vector<8x8xf32>
    %99 = vector.broadcast %17 : vector<1x8xf32> to vector<8x8xf32>
    %100 = arith.addf %98, %99 : vector<8x8xf32>
    %cst_50 = arith.constant dense<0xFF800000> : vector<8xf32>
    %101 = vector.multi_reduction <maximumf>, %100, %cst_50 [1] : vector<8x8xf32> to vector<8xf32>
    %102 = vector.shape_cast %101 : vector<8xf32> to vector<8x1xf32>
    %103 = vector.broadcast %102 : vector<8x1xf32> to vector<8x8xf32>
    %104 = arith.subf %100, %103 : vector<8x8xf32>
    %105 = math.exp %104 : vector<8x8xf32>
    %cst_51 = arith.constant dense<0.000000e+00> : vector<8xf32>
    %106 = vector.multi_reduction <add>, %105, %cst_51 [1] : vector<8x8xf32> to vector<8xf32>
    %107 = vector.shape_cast %106 : vector<8xf32> to vector<8x1xf32>
    %108 = tpu.reciprocal %107 {approx = true} : vector<8x1xf32> -> vector<8x1xf32>
    %109 = vector.broadcast %108 : vector<8x1xf32> to vector<8x8xf32>
    %110 = arith.mulf %105, %109 : vector<8x8xf32>
    %111 = arith.truncf %110 : vector<8x8xf32> to vector<8x8xbf16>
    %cst_52 = arith.constant dense<0.000000e+00> : vector<8x8xf32>
    %112 = tpu.matmul %111, %95, %cst_52 {dimension_numbers = #tpu.dot_dimension_numbers<[1], [0], [0], [1], [0, 0, 1, 1], [], []>} : vector<8x8xbf16>, vector<8x8xbf16>, vector<8x8xf32> -> vector<8x8xf32>
    %c0_53 = arith.constant 0 : index
    %c24_54 = arith.constant 24 : index
    %113 = vector.load %arg19[%c0_53, %c24_54] : memref<16x32xf32, #tpu.memory_space<vmem>>, vector<8x8xf32>
    tpu.vector_store %arg19[%c0_53, %c24_54], %112 {strides = array<i32>} : memref<16x32xf32, #tpu.memory_space<vmem>>, vector<8x8xf32>,
    %c1 = arith.constant 1 : index
    %c0_55 = arith.constant 0 : index
    %114 = vector.load %arg1[%c1, %c0_55] : memref<2x8xf32, #tpu.memory_space<vmem>>, vector<1x8xf32>
    %cst_56 = arith.constant 1.000000e+00 : f32
    %115 = vector.broadcast %cst_56 : f32 to vector<1x8xf32>
    %116 = arith.subf %115, %114 : vector<1x8xf32>
    %cst_57 = arith.constant -1.000000e+09 : f32
    %117 = vector.broadcast %cst_57 : f32 to vector<1x8xf32>
    %118 = arith.mulf %116, %117 : vector<1x8xf32>
    %c8_58 = arith.constant 8 : index
    %c0_59 = arith.constant 0 : index
    %119 = vector.load %arg18[%c8_58, %c0_59] : memref<16x96xf32, #tpu.memory_space<vmem>>, vector<8x8xf32>
    %120 = arith.truncf %119 : vector<8x8xf32> to vector<8x8xbf16>
    %c8_60 = arith.constant 8 : index
    %c32_61 = arith.constant 32 : index
    %121 = vector.load %arg18[%c8_60, %c32_61] : memref<16x96xf32, #tpu.memory_space<vmem>>, vector<8x8xf32>
    %122 = arith.truncf %121 : vector<8x8xf32> to vector<8x8xbf16>
    %c8_62 = arith.constant 8 : index
    %c64_63 = arith.constant 64 : index
    %123 = vector.load %arg18[%c8_62, %c64_63] : memref<16x96xf32, #tpu.memory_space<vmem>>, vector<8x8xf32>
    %124 = arith.truncf %123 : vector<8x8xf32> to vector<8x8xbf16>
    %cst_64 = arith.constant dense<0.000000e+00> : vector<8x8xf32>
    %125 = tpu.matmul %120, %122, %cst_64 {dimension_numbers = #tpu.dot_dimension_numbers<[1], [1], [0], [0], [0, 0, 1, 0], [], []>} : vector<8x8xbf16>, vector<8x8xbf16>, vector<8x8xf32> -> vector<8x8xf32>
    %cst_65 = arith.constant 0.353553385 : f32
    %126 = vector.broadcast %cst_65 : f32 to vector<8x8xf32>
    %127 = arith.mulf %125, %126 : vector<8x8xf32>
    %128 = vector.broadcast %118 : vector<1x8xf32> to vector<8x8xf32>
    %129 = arith.addf %127, %128 : vector<8x8xf32>
    %cst_66 = arith.constant dense<0xFF800000> : vector<8xf32>
    %130 = vector.multi_reduction <maximumf>, %129, %cst_66 [1] : vector<8x8xf32> to vector<8xf32>
    %131 = vector.shape_cast %130 : vector<8xf32> to vector<8x1xf32>
    %132 = vector.broadcast %131 : vector<8x1xf32> to vector<8x8xf32>
    %133 = arith.subf %129, %132 : vector<8x8xf32>
    %134 = math.exp %133 : vector<8x8xf32>
    %cst_67 = arith.constant dense<0.000000e+00> : vector<8xf32>
    %135 = vector.multi_reduction <add>, %134, %cst_67 [1] : vector<8x8xf32> to vector<8xf32>
    %136 = vector.shape_cast %135 : vector<8xf32> to vector<8x1xf32>
    %137 = tpu.reciprocal %136 {approx = true} : vector<8x1xf32> -> vector<8x1xf32>
    %138 = vector.broadcast %137 : vector<8x1xf32> to vector<8x8xf32>
    %139 = arith.mulf %134, %138 : vector<8x8xf32>
    %140 = arith.truncf %139 : vector<8x8xf32> to vector<8x8xbf16>
    %cst_68 = arith.constant dense<0.000000e+00> : vector<8x8xf32>
    %141 = tpu.matmul %140, %124, %cst_68 {dimension_numbers = #tpu.dot_dimension_numbers<[1], [0], [0], [1], [0, 0, 1, 1], [], []>} : vector<8x8xbf16>, vector<8x8xbf16>, vector<8x8xf32> -> vector<8x8xf32>
    %c8_69 = arith.constant 8 : index
    %c0_70 = arith.constant 0 : index
    %142 = vector.load %arg19[%c8_69, %c0_70] : memref<16x32xf32, #tpu.memory_space<vmem>>, vector<8x8xf32>
    tpu.vector_store %arg19[%c8_69, %c0_70], %141 {strides = array<i32>} : memref<16x32xf32, #tpu.memory_space<vmem>>, vector<8x8xf32>,
    %c8_71 = arith.constant 8 : index
    %c8_72 = arith.constant 8 : index
    %143 = vector.load %arg18[%c8_71, %c8_72] : memref<16x96xf32, #tpu.memory_space<vmem>>, vector<8x8xf32>
    %144 = arith.truncf %143 : vector<8x8xf32> to vector<8x8xbf16>
    %c8_73 = arith.constant 8 : index
    %c40_74 = arith.constant 40 : index
    %145 = vector.load %arg18[%c8_73, %c40_74] : memref<16x96xf32, #tpu.memory_space<vmem>>, vector<8x8xf32>
    %146 = arith.truncf %145 : vector<8x8xf32> to vector<8x8xbf16>
    %c8_75 = arith.constant 8 : index
    %c72_76 = arith.constant 72 : index
    %147 = vector.load %arg18[%c8_75, %c72_76] : memref<16x96xf32, #tpu.memory_space<vmem>>, vector<8x8xf32>
    %148 = arith.truncf %147 : vector<8x8xf32> to vector<8x8xbf16>
    %cst_77 = arith.constant dense<0.000000e+00> : vector<8x8xf32>
    %149 = tpu.matmul %144, %146, %cst_77 {dimension_numbers = #tpu.dot_dimension_numbers<[1], [1], [0], [0], [0, 0, 1, 0], [], []>} : vector<8x8xbf16>, vector<8x8xbf16>, vector<8x8xf32> -> vector<8x8xf32>
    %cst_78 = arith.constant 0.353553385 : f32
    %150 = vector.broadcast %cst_78 : f32 to vector<8x8xf32>
    %151 = arith.mulf %149, %150 : vector<8x8xf32>
    %152 = vector.broadcast %118 : vector<1x8xf32> to vector<8x8xf32>
    %153 = arith.addf %151, %152 : vector<8x8xf32>
    %cst_79 = arith.constant dense<0xFF800000> : vector<8xf32>
    %154 = vector.multi_reduction <maximumf>, %153, %cst_79 [1] : vector<8x8xf32> to vector<8xf32>
    %155 = vector.shape_cast %154 : vector<8xf32> to vector<8x1xf32>
    %156 = vector.broadcast %155 : vector<8x1xf32> to vector<8x8xf32>
    %157 = arith.subf %153, %156 : vector<8x8xf32>
    %158 = math.exp %157 : vector<8x8xf32>
    %cst_80 = arith.constant dense<0.000000e+00> : vector<8xf32>
    %159 = vector.multi_reduction <add>, %158, %cst_80 [1] : vector<8x8xf32> to vector<8xf32>
    %160 = vector.shape_cast %159 : vector<8xf32> to vector<8x1xf32>
    %161 = tpu.reciprocal %160 {approx = true} : vector<8x1xf32> -> vector<8x1xf32>
    %162 = vector.broadcast %161 : vector<8x1xf32> to vector<8x8xf32>
    %163 = arith.mulf %158, %162 : vector<8x8xf32>
    %164 = arith.truncf %163 : vector<8x8xf32> to vector<8x8xbf16>
    %cst_81 = arith.constant dense<0.000000e+00> : vector<8x8xf32>
    %165 = tpu.matmul %164, %148, %cst_81 {dimension_numbers = #tpu.dot_dimension_numbers<[1], [0], [0], [1], [0, 0, 1, 1], [], []>} : vector<8x8xbf16>, vector<8x8xbf16>, vector<8x8xf32> -> vector<8x8xf32>
    %c8_82 = arith.constant 8 : index
    %c8_83 = arith.constant 8 : index
    %166 = vector.load %arg19[%c8_82, %c8_83] : memref<16x32xf32, #tpu.memory_space<vmem>>, vector<8x8xf32>
    tpu.vector_store %arg19[%c8_82, %c8_83], %165 {strides = array<i32>} : memref<16x32xf32, #tpu.memory_space<vmem>>, vector<8x8xf32>,
    %c8_84 = arith.constant 8 : index
    %c16_85 = arith.constant 16 : index
    %167 = vector.load %arg18[%c8_84, %c16_85] : memref<16x96xf32, #tpu.memory_space<vmem>>, vector<8x8xf32>
    %168 = arith.truncf %167 : vector<8x8xf32> to vector<8x8xbf16>
    %c8_86 = arith.constant 8 : index
    %c48_87 = arith.constant 48 : index
    %169 = vector.load %arg18[%c8_86, %c48_87] : memref<16x96xf32, #tpu.memory_space<vmem>>, vector<8x8xf32>
    %170 = arith.truncf %169 : vector<8x8xf32> to vector<8x8xbf16>
    %c8_88 = arith.constant 8 : index
    %c80_89 = arith.constant 80 : index
    %171 = vector.load %arg18[%c8_88, %c80_89] : memref<16x96xf32, #tpu.memory_space<vmem>>, vector<8x8xf32>
    %172 = arith.truncf %171 : vector<8x8xf32> to vector<8x8xbf16>
    %cst_90 = arith.constant dense<0.000000e+00> : vector<8x8xf32>
    %173 = tpu.matmul %168, %170, %cst_90 {dimension_numbers = #tpu.dot_dimension_numbers<[1], [1], [0], [0], [0, 0, 1, 0], [], []>} : vector<8x8xbf16>, vector<8x8xbf16>, vector<8x8xf32> -> vector<8x8xf32>
    %cst_91 = arith.constant 0.353553385 : f32
    %174 = vector.broadcast %cst_91 : f32 to vector<8x8xf32>
    %175 = arith.mulf %173, %174 : vector<8x8xf32>
    %176 = vector.broadcast %118 : vector<1x8xf32> to vector<8x8xf32>
    %177 = arith.addf %175, %176 : vector<8x8xf32>
    %cst_92 = arith.constant dense<0xFF800000> : vector<8xf32>
    %178 = vector.multi_reduction <maximumf>, %177, %cst_92 [1] : vector<8x8xf32> to vector<8xf32>
    %179 = vector.shape_cast %178 : vector<8xf32> to vector<8x1xf32>
    %180 = vector.broadcast %179 : vector<8x1xf32> to vector<8x8xf32>
    %181 = arith.subf %177, %180 : vector<8x8xf32>
    %182 = math.exp %181 : vector<8x8xf32>
    %cst_93 = arith.constant dense<0.000000e+00> : vector<8xf32>
    %183 = vector.multi_reduction <add>, %182, %cst_93 [1] : vector<8x8xf32> to vector<8xf32>
    %184 = vector.shape_cast %183 : vector<8xf32> to vector<8x1xf32>
    %185 = tpu.reciprocal %184 {approx = true} : vector<8x1xf32> -> vector<8x1xf32>
    %186 = vector.broadcast %185 : vector<8x1xf32> to vector<8x8xf32>
    %187 = arith.mulf %182, %186 : vector<8x8xf32>
    %188 = arith.truncf %187 : vector<8x8xf32> to vector<8x8xbf16>
    %cst_94 = arith.constant dense<0.000000e+00> : vector<8x8xf32>
    %189 = tpu.matmul %188, %172, %cst_94 {dimension_numbers = #tpu.dot_dimension_numbers<[1], [0], [0], [1], [0, 0, 1, 1], [], []>} : vector<8x8xbf16>, vector<8x8xbf16>, vector<8x8xf32> -> vector<8x8xf32>
    %c8_95 = arith.constant 8 : index
    %c16_96 = arith.constant 16 : index
    %190 = vector.load %arg19[%c8_95, %c16_96] : memref<16x32xf32, #tpu.memory_space<vmem>>, vector<8x8xf32>
    tpu.vector_store %arg19[%c8_95, %c16_96], %189 {strides = array<i32>} : memref<16x32xf32, #tpu.memory_space<vmem>>, vector<8x8xf32>,
    %c8_97 = arith.constant 8 : index
    %c24_98 = arith.constant 24 : index
    %191 = vector.load %arg18[%c8_97, %c24_98] : memref<16x96xf32, #tpu.memory_space<vmem>>, vector<8x8xf32>
    %192 = arith.truncf %191 : vector<8x8xf32> to vector<8x8xbf16>
    %c8_99 = arith.constant 8 : index
    %c56_100 = arith.constant 56 : index
    %193 = vector.load %arg18[%c8_99, %c56_100] : memref<16x96xf32, #tpu.memory_space<vmem>>, vector<8x8xf32>
    %194 = arith.truncf %193 : vector<8x8xf32> to vector<8x8xbf16>
    %c8_101 = arith.constant 8 : index
    %c88_102 = arith.constant 88 : index
    %195 = vector.load %arg18[%c8_101, %c88_102] : memref<16x96xf32, #tpu.memory_space<vmem>>, vector<8x8xf32>
    %196 = arith.truncf %195 : vector<8x8xf32> to vector<8x8xbf16>
    %cst_103 = arith.constant dense<0.000000e+00> : vector<8x8xf32>
    %197 = tpu.matmul %192, %194, %cst_103 {dimension_numbers = #tpu.dot_dimension_numbers<[1], [1], [0], [0], [0, 0, 1, 0], [], []>} : vector<8x8xbf16>, vector<8x8xbf16>, vector<8x8xf32> -> vector<8x8xf32>
    %cst_104 = arith.constant 0.353553385 : f32
    %198 = vector.broadcast %cst_104 : f32 to vector<8x8xf32>
    %199 = arith.mulf %197, %198 : vector<8x8xf32>
    %200 = vector.broadcast %118 : vector<1x8xf32> to vector<8x8xf32>
    %201 = arith.addf %199, %200 : vector<8x8xf32>
    %cst_105 = arith.constant dense<0xFF800000> : vector<8xf32>
    %202 = vector.multi_reduction <maximumf>, %201, %cst_105 [1] : vector<8x8xf32> to vector<8xf32>
    %203 = vector.shape_cast %202 : vector<8xf32> to vector<8x1xf32>
    %204 = vector.broadcast %203 : vector<8x1xf32> to vector<8x8xf32>
    %205 = arith.subf %201, %204 : vector<8x8xf32>
    %206 = math.exp %205 : vector<8x8xf32>
    %cst_106 = arith.constant dense<0.000000e+00> : vector<8xf32>
    %207 = vector.multi_reduction <add>, %206, %cst_106 [1] : vector<8x8xf32> to vector<8xf32>
    %208 = vector.shape_cast %207 : vector<8xf32> to vector<8x1xf32>
    %209 = tpu.reciprocal %208 {approx = true} : vector<8x1xf32> -> vector<8x1xf32>
    %210 = vector.broadcast %209 : vector<8x1xf32> to vector<8x8xf32>
    %211 = arith.mulf %206, %210 : vector<8x8xf32>
    %212 = arith.truncf %211 : vector<8x8xf32> to vector<8x8xbf16>
    %cst_107 = arith.constant dense<0.000000e+00> : vector<8x8xf32>
    %213 = tpu.matmul %212, %196, %cst_107 {dimension_numbers = #tpu.dot_dimension_numbers<[1], [0], [0], [1], [0, 0, 1, 1], [], []>} : vector<8x8xbf16>, vector<8x8xbf16>, vector<8x8xf32> -> vector<8x8xf32>
    %c8_108 = arith.constant 8 : index
    %c24_109 = arith.constant 24 : index
    %214 = vector.load %arg19[%c8_108, %c24_109] : memref<16x32xf32, #tpu.memory_space<vmem>>, vector<8x8xf32>
    tpu.vector_store %arg19[%c8_108, %c24_109], %213 {strides = array<i32>} : memref<16x32xf32, #tpu.memory_space<vmem>>, vector<8x8xf32>,
    %c0_110 = arith.constant 0 : index
    %c0_111 = arith.constant 0 : index
    %215 = vector.load %arg19[%c0_110, %c0_111] : memref<16x32xf32, #tpu.memory_space<vmem>>, vector<16x32xf32>
    %216 = arith.truncf %215 : vector<16x32xf32> to vector<16x32xbf16>
    %c0_112 = arith.constant 0 : index
    %c0_113 = arith.constant 0 : index
    %c0_114 = arith.constant 0 : index
    %217 = vector.load %arg6[%c0_112, %c0_113, %c0_114] : memref<1x32x32xbf16, #tpu.memory_space<vmem>>, vector<1x32x32xbf16>
    %218 = vector.shape_cast %217 : vector<1x32x32xbf16> to vector<32x32xbf16>
    %cst_115 = arith.constant dense<0.000000e+00> : vector<16x32xf32>
    %219 = tpu.matmul %216, %218, %cst_115 {dimension_numbers = #tpu.dot_dimension_numbers<[1], [0], [0], [1], [0, 0, 1, 1], [], []>} : vector<16x32xbf16>, vector<32x32xbf16>, vector<16x32xf32> -> vector<16x32xf32>
    %c0_116 = arith.constant 0 : index
    %c0_117 = arith.constant 0 : index
    %c0_118 = arith.constant 0 : index
    %220 = vector.load %arg7[%c0_116, %c0_117, %c0_118] : memref<1x1x32xf32, #tpu.memory_space<vmem>>, vector<1x1x32xf32>
    %221 = vector.shape_cast %220 : vector<1x1x32xf32> to vector<1x32xf32>
    %222 = vector.broadcast %221 : vector<1x32xf32> to vector<16x32xf32>
    %223 = arith.addf %219, %222 : vector<16x32xf32>
    %224 = arith.addf %3, %223 : vector<16x32xf32>
    %cst_119 = arith.constant dense<0.000000e+00> : vector<16xf32>
    %225 = vector.multi_reduction <add>, %224, %cst_119 [1] : vector<16x32xf32> to vector<16xf32>
    %226 = vector.shape_cast %225 : vector<16xf32> to vector<16x1xf32>
    %cst_120 = arith.constant 3.200000e+01 : f32
    %227 = vector.broadcast %cst_120 : f32 to vector<16x1xf32>
    %228 = arith.divf %226, %227 : vector<16x1xf32>
    %229 = vector.broadcast %228 : vector<16x1xf32> to vector<16x32xf32>
    %230 = arith.subf %224, %229 : vector<16x32xf32>
    %231 = arith.mulf %230, %230 : vector<16x32xf32>
    %cst_121 = arith.constant dense<0.000000e+00> : vector<16xf32>
    %232 = vector.multi_reduction <add>, %231, %cst_121 [1] : vector<16x32xf32> to vector<16xf32>
    %233 = vector.shape_cast %232 : vector<16xf32> to vector<16x1xf32>
    %cst_122 = arith.constant 3.200000e+01 : f32
    %234 = vector.broadcast %cst_122 : f32 to vector<16x1xf32>
    %235 = arith.divf %233, %234 : vector<16x1xf32>
    %cst_123 = arith.constant 9.99999974E-6 : f32
    %236 = vector.broadcast %cst_123 : f32 to vector<16x1xf32>
    %237 = arith.addf %235, %236 : vector<16x1xf32>
    %238 = math.rsqrt %237 : vector<16x1xf32>
    %239 = vector.broadcast %238 : vector<16x1xf32> to vector<16x32xf32>
    %240 = arith.mulf %230, %239 : vector<16x32xf32>
    %c0_124 = arith.constant 0 : index
    %c0_125 = arith.constant 0 : index
    %c0_126 = arith.constant 0 : index
    %241 = vector.load %arg8[%c0_124, %c0_125, %c0_126] : memref<1x2x32xf32, #tpu.memory_space<vmem>>, vector<1x1x32xf32>
    %242 = vector.shape_cast %241 : vector<1x1x32xf32> to vector<1x32xf32>
    %243 = vector.broadcast %242 : vector<1x32xf32> to vector<16x32xf32>
    %244 = arith.mulf %240, %243 : vector<16x32xf32>
    %c0_127 = arith.constant 0 : index
    %c1_128 = arith.constant 1 : index
    %c0_129 = arith.constant 0 : index
    %245 = vector.load %arg8[%c0_127, %c1_128, %c0_129] : memref<1x2x32xf32, #tpu.memory_space<vmem>>, vector<1x1x32xf32>
    %246 = vector.shape_cast %245 : vector<1x1x32xf32> to vector<1x32xf32>
    %247 = vector.broadcast %246 : vector<1x32xf32> to vector<16x32xf32>
    %248 = arith.addf %244, %247 : vector<16x32xf32>
    %249 = arith.truncf %248 : vector<16x32xf32> to vector<16x32xbf16>
    %c0_130 = arith.constant 0 : index
    %c0_131 = arith.constant 0 : index
    %c0_132 = arith.constant 0 : index
    %250 = vector.load %arg9[%c0_130, %c0_131, %c0_132] : memref<1x32x64xbf16, #tpu.memory_space<vmem>>, vector<1x32x64xbf16>
    %251 = vector.shape_cast %250 : vector<1x32x64xbf16> to vector<32x64xbf16>
    %cst_133 = arith.constant dense<0.000000e+00> : vector<16x64xf32>
    %252 = tpu.matmul %249, %251, %cst_133 {dimension_numbers = #tpu.dot_dimension_numbers<[1], [0], [0], [1], [0, 0, 1, 1], [], []>} : vector<16x32xbf16>, vector<32x64xbf16>, vector<16x64xf32> -> vector<16x64xf32>
    %c0_134 = arith.constant 0 : index
    %c0_135 = arith.constant 0 : index
    %c0_136 = arith.constant 0 : index
    %253 = vector.load %arg10[%c0_134, %c0_135, %c0_136] : memref<1x1x64xf32, #tpu.memory_space<vmem>>, vector<1x1x64xf32>
    %254 = vector.shape_cast %253 : vector<1x1x64xf32> to vector<1x64xf32>
    %255 = vector.broadcast %254 : vector<1x64xf32> to vector<16x64xf32>
    %256 = arith.addf %252, %255 : vector<16x64xf32>
    %cst_137 = arith.constant 5.000000e-01 : f32
    %257 = vector.broadcast %cst_137 : f32 to vector<16x64xf32>
    %258 = arith.mulf %257, %256 : vector<16x64xf32>
    %cst_138 = arith.constant 4.471500e-02 : f32
    %259 = vector.broadcast %cst_138 : f32 to vector<16x64xf32>
    %260 = arith.mulf %259, %256 : vector<16x64xf32>
    %261 = arith.mulf %260, %256 : vector<16x64xf32>
    %262 = arith.mulf %261, %256 : vector<16x64xf32>
    %263 = arith.addf %256, %262 : vector<16x64xf32>
    %cst_139 = arith.constant 0.797884583 : f32
    %264 = vector.broadcast %cst_139 : f32 to vector<16x64xf32>
    %265 = arith.mulf %264, %263 : vector<16x64xf32>
    %266 = math.tanh %265 : vector<16x64xf32>
    %cst_140 = arith.constant 1.000000e+00 : f32
    %267 = vector.broadcast %cst_140 : f32 to vector<16x64xf32>
    %268 = arith.addf %267, %266 : vector<16x64xf32>
    %269 = arith.mulf %258, %268 : vector<16x64xf32>
    %270 = arith.truncf %269 : vector<16x64xf32> to vector<16x64xbf16>
    %c0_141 = arith.constant 0 : index
    %c0_142 = arith.constant 0 : index
    %c0_143 = arith.constant 0 : index
    %271 = vector.load %arg11[%c0_141, %c0_142, %c0_143] : memref<1x64x32xbf16, #tpu.memory_space<vmem>>, vector<1x64x32xbf16>
    %272 = vector.shape_cast %271 : vector<1x64x32xbf16> to vector<64x32xbf16>
    %cst_144 = arith.constant dense<0.000000e+00> : vector<16x32xf32>
    %273 = tpu.matmul %270, %272, %cst_144 {dimension_numbers = #tpu.dot_dimension_numbers<[1], [0], [0], [1], [0, 0, 1, 1], [], []>} : vector<16x64xbf16>, vector<64x32xbf16>, vector<16x32xf32> -> vector<16x32xf32>
    %c0_145 = arith.constant 0 : index
    %c0_146 = arith.constant 0 : index
    %c0_147 = arith.constant 0 : index
    %274 = vector.load %arg12[%c0_145, %c0_146, %c0_147] : memref<1x1x32xf32, #tpu.memory_space<vmem>>, vector<1x1x32xf32>
    %275 = vector.shape_cast %274 : vector<1x1x32xf32> to vector<1x32xf32>
    %276 = vector.broadcast %275 : vector<1x32xf32> to vector<16x32xf32>
    %277 = arith.addf %273, %276 : vector<16x32xf32>
    %278 = arith.addf %248, %277 : vector<16x32xf32>
    %cst_148 = arith.constant dense<0.000000e+00> : vector<16xf32>
    %279 = vector.multi_reduction <add>, %278, %cst_148 [1] : vector<16x32xf32> to vector<16xf32>
    %280 = vector.shape_cast %279 : vector<16xf32> to vector<16x1xf32>
    %cst_149 = arith.constant 3.200000e+01 : f32
    %281 = vector.broadcast %cst_149 : f32 to vector<16x1xf32>
    %282 = arith.divf %280, %281 : vector<16x1xf32>
    %283 = vector.broadcast %282 : vector<16x1xf32> to vector<16x32xf32>
    %284 = arith.subf %278, %283 : vector<16x32xf32>
    %285 = arith.mulf %284, %284 : vector<16x32xf32>
    %cst_150 = arith.constant dense<0.000000e+00> : vector<16xf32>
    %286 = vector.multi_reduction <add>, %285, %cst_150 [1] : vector<16x32xf32> to vector<16xf32>
    %287 = vector.shape_cast %286 : vector<16xf32> to vector<16x1xf32>
    %cst_151 = arith.constant 3.200000e+01 : f32
    %288 = vector.broadcast %cst_151 : f32 to vector<16x1xf32>
    %289 = arith.divf %287, %288 : vector<16x1xf32>
    %cst_152 = arith.constant 9.99999974E-6 : f32
    %290 = vector.broadcast %cst_152 : f32 to vector<16x1xf32>
    %291 = arith.addf %289, %290 : vector<16x1xf32>
    %292 = math.rsqrt %291 : vector<16x1xf32>
    %293 = vector.broadcast %292 : vector<16x1xf32> to vector<16x32xf32>
    %294 = arith.mulf %284, %293 : vector<16x32xf32>
    %c0_153 = arith.constant 0 : index
    %c0_154 = arith.constant 0 : index
    %c0_155 = arith.constant 0 : index
    %295 = vector.load %arg13[%c0_153, %c0_154, %c0_155] : memref<1x2x32xf32, #tpu.memory_space<vmem>>, vector<1x1x32xf32>
    %296 = vector.shape_cast %295 : vector<1x1x32xf32> to vector<1x32xf32>
    %297 = vector.broadcast %296 : vector<1x32xf32> to vector<16x32xf32>
    %298 = arith.mulf %294, %297 : vector<16x32xf32>
    %c0_156 = arith.constant 0 : index
    %c1_157 = arith.constant 1 : index
    %c0_158 = arith.constant 0 : index
    %299 = vector.load %arg13[%c0_156, %c1_157, %c0_158] : memref<1x2x32xf32, #tpu.memory_space<vmem>>, vector<1x1x32xf32>
    %300 = vector.shape_cast %299 : vector<1x1x32xf32> to vector<1x32xf32>
    %301 = vector.broadcast %300 : vector<1x32xf32> to vector<16x32xf32>
    %302 = arith.addf %298, %301 : vector<16x32xf32>
    %c0_159 = arith.constant 0 : index
    %c0_160 = arith.constant 0 : index
    %303 = vector.load %arg17[%c0_159, %c0_160] : memref<16x32xf32, #tpu.memory_space<vmem>>, vector<16x32xf32>
    tpu.vector_store %arg17[%c0_159, %c0_160], %302 {strides = array<i32>} : memref<16x32xf32, #tpu.memory_space<vmem>>, vector<16x32xf32>,
    %c1_i32 = arith.constant 1 : i32
    %304 = arith.cmpi eq, %arg0, %c1_i32 : i32
    %305 = arith.extui %304 : i1 to i32
    %c0_i32_161 = arith.constant 0 : i32
    %306 = arith.cmpi ne, %305, %c0_i32_161 : i32
    scf.if %306 {
      %307 = arith.truncf %302 : vector<16x32xf32> to vector<16x32xbf16>
      %c0_162 = arith.constant 0 : index
      %c0_163 = arith.constant 0 : index
      %308 = vector.load %arg14[%c0_162, %c0_163] : memref<32x64xbf16, #tpu.memory_space<vmem>>, vector<32x64xbf16>
      %cst_164 = arith.constant dense<0.000000e+00> : vector<16x64xf32>
      %309 = tpu.matmul %307, %308, %cst_164 {dimension_numbers = #tpu.dot_dimension_numbers<[1], [0], [0], [1], [0, 0, 1, 1], [], []>} : vector<16x32xbf16>, vector<32x64xbf16>, vector<16x64xf32> -> vector<16x64xf32>
      %c0_165 = arith.constant 0 : index
      %c0_166 = arith.constant 0 : index
      %310 = vector.load %arg15[%c0_165, %c0_166] : memref<1x64xf32, #tpu.memory_space<vmem>>, vector<1x64xf32>
      %311 = vector.broadcast %310 : vector<1x64xf32> to vector<16x64xf32>
      %312 = arith.addf %309, %311 : vector<16x64xf32>
      %313 = vector.extract_strided_slice %312 {offsets = [0, 0], sizes = [1, 64], strides = [1, 1]} : vector<16x64xf32> to vector<1x64xf32>
      %c0_167 = arith.constant 0 : index
      %c0_168 = arith.constant 0 : index
      %314 = vector.load %arg16[%c0_167, %c0_168] : memref<2x64xf32, #tpu.memory_space<vmem>>, vector<1x64xf32>
      tpu.vector_store %arg16[%c0_167, %c0_168], %313 {strides = array<i32>} : memref<2x64xf32, #tpu.memory_space<vmem>>, vector<1x64xf32>,
      %315 = vector.extract_strided_slice %312 {offsets = [8, 0], sizes = [1, 64], strides = [1, 1]} : vector<16x64xf32> to vector<1x64xf32>
      %c1_169 = arith.constant 1 : index
      %c0_170 = arith.constant 0 : index
      %316 = vector.load %arg16[%c1_169, %c0_170] : memref<2x64xf32, #tpu.memory_space<vmem>>, vector<1x64xf32>
      tpu.vector_store %arg16[%c1_169, %c0_170], %315 {strides = array<i32>} : memref<2x64xf32, #tpu.memory_space<vmem>>, vector<1x64xf32>,
    } else {
    }
    return
  }
  func.func @transform_0(%arg0: i32) -> (i32, i32) {
    %c0_i32 = arith.constant 0 : i32
    %c0_i32_0 = arith.constant 0 : i32
    %c0_i32_1 = arith.constant 0 : i32
    return %c0_i32, %c0_i32_0 : i32, i32
  }
  func.func @transform_1(%arg0: i32) -> (i32, i32) {
    %c0_i32 = arith.constant 0 : i32
    %c0_i32_0 = arith.constant 0 : i32
    %c0_i32_1 = arith.constant 0 : i32
    return %c0_i32, %c0_i32_0 : i32, i32
  }
  func.func @transform_2(%arg0: i32) -> (i32, i32) {
    %c0_i32 = arith.constant 0 : i32
    %c0_i32_0 = arith.constant 0 : i32
    %c0_i32_1 = arith.constant 0 : i32
    return %c0_i32, %c0_i32_0 : i32, i32
  }
  func.func @transform_3(%arg0: i32) -> (i32, i32, i32) {
    %c0_i32 = arith.constant 0 : i32
    %c0_i32_0 = arith.constant 0 : i32
    %c0_i32_1 = arith.constant 0 : i32
    return %arg0, %c0_i32, %c0_i32_0 : i32, i32, i32
  }
  func.func @transform_4(%arg0: i32) -> (i32, i32, i32) {
    %c0_i32 = arith.constant 0 : i32
    %c0_i32_0 = arith.constant 0 : i32
    %c0_i32_1 = arith.constant 0 : i32
    return %arg0, %c0_i32, %c0_i32_0 : i32, i32, i32
  }
  func.func @transform_5(%arg0: i32) -> (i32, i32, i32) {
    %c0_i32 = arith.constant 0 : i32
    %c0_i32_0 = arith.constant 0 : i32
    %c0_i32_1 = arith.constant 0 : i32
    return %arg0, %c0_i32, %c0_i32_0 : i32, i32, i32
  }
  func.func @transform_6(%arg0: i32) -> (i32, i32, i32) {
    %c0_i32 = arith.constant 0 : i32
    %c0_i32_0 = arith.constant 0 : i32
    %c0_i32_1 = arith.constant 0 : i32
    return %arg0, %c0_i32, %c0_i32_0 : i32, i32, i32
  }
  func.func @transform_7(%arg0: i32) -> (i32, i32, i32) {
    %c0_i32 = arith.constant 0 : i32
    %c0_i32_0 = arith.constant 0 : i32
    %c0_i32_1 = arith.constant 0 : i32
    return %arg0, %c0_i32, %c0_i32_0 : i32, i32, i32
  }
  func.func @transform_8(%arg0: i32) -> (i32, i32, i32) {
    %c0_i32 = arith.constant 0 : i32
    %c0_i32_0 = arith.constant 0 : i32
    %c0_i32_1 = arith.constant 0 : i32
    return %arg0, %c0_i32, %c0_i32_0 : i32, i32, i32
  }
  func.func @transform_9(%arg0: i32) -> (i32, i32, i32) {
    %c0_i32 = arith.constant 0 : i32
    %c0_i32_0 = arith.constant 0 : i32
    %c0_i32_1 = arith.constant 0 : i32
    return %arg0, %c0_i32, %c0_i32_0 : i32, i32, i32
  }
  func.func @transform_10(%arg0: i32) -> (i32, i32, i32) {
    %c0_i32 = arith.constant 0 : i32
    %c0_i32_0 = arith.constant 0 : i32
    %c0_i32_1 = arith.constant 0 : i32
    return %arg0, %c0_i32, %c0_i32_0 : i32, i32, i32
  }
  func.func @transform_11(%arg0: i32) -> (i32, i32, i32) {
    %c0_i32 = arith.constant 0 : i32
    %c0_i32_0 = arith.constant 0 : i32
    %c0_i32_1 = arith.constant 0 : i32
    return %arg0, %c0_i32, %c0_i32_0 : i32, i32, i32
  }
  func.func @transform_12(%arg0: i32) -> (i32, i32, i32) {
    %c0_i32 = arith.constant 0 : i32
    %c0_i32_0 = arith.constant 0 : i32
    %c0_i32_1 = arith.constant 0 : i32
    return %arg0, %c0_i32, %c0_i32_0 : i32, i32, i32
  }
  func.func @transform_13(%arg0: i32) -> (i32, i32) {
    %c0_i32 = arith.constant 0 : i32
    %c0_i32_0 = arith.constant 0 : i32
    %c0_i32_1 = arith.constant 0 : i32
    return %c0_i32, %c0_i32_0 : i32, i32
  }
  func.func @transform_14(%arg0: i32) -> (i32, i32) {
    %c0_i32 = arith.constant 0 : i32
    %c0_i32_0 = arith.constant 0 : i32
    %c0_i32_1 = arith.constant 0 : i32
    return %c0_i32, %c0_i32_0 : i32, i32
  }
  func.func @transform_15(%arg0: i32) -> (i32, i32) {
    %c0_i32 = arith.constant 0 : i32
    %c0_i32_0 = arith.constant 0 : i32
    %c0_i32_1 = arith.constant 0 : i32
    return %c0_i32, %c0_i32_0 : i32, i32
  }
}

</mosaic_0001>

<bundles_post_ra>
// kernel: clip_forward.2
= control target key start
LH: loop header
LB: loop body
LE: loop exit
PB: predicated region body
PF: predicated region fallthrough
CT: control target
= control target key end

     0   :  { %s2294_s0 = inlined_call_operand.vmem [shape: bf16[128,32], index: 0, kind: input, shape index: {}]   ;;  %s2295_s1 = inlined_call_operand.vmem [shape: bf16[32,8], index: 1, kind: input, shape index: {}]   ;;  %s2296_s2 = inlined_call_operand.vmem [shape: f32[1,8], index: 2, kind: input, shape index: {}]   ;;  %s2297_s3 = inlined_call_operand.vmem [shape: bf16[8,32], index: 3, kind: input, shape index: {}]   ;;  %s2298_s4 = inlined_call_operand.vmem [shape: f32[1,32], index: 4, kind: input, shape index: {}]   ;;  %s2299_s5 = inlined_call_operand.vmem [shape: bf16[32,64], index: 5, kind: input, shape index: {}]   ;;  %s2300_s6 = inlined_call_operand.vmem [shape: f32[1,64], index: 6, kind: input, shape index: {}]   ;;  %s2301_s7 = inlined_call_operand.hbm [shape: f32[2,64], index: 7, kind: output, shape index: {}]  }
   0x1   :  { %v1162_v0 = vld [vmem:[%s2295_s1 + $0x8] sm:$0xff]  ;;  %v1161_v1 = vld [vmem:[%s2295_s1] sm:$0xff] }
   0x2   :  { %135 = vmatpush.bf16.msra.mxu0 %v1162_v0  ;;  %1167 = vmatpush.bf16.msra.mxu2 %v1162_v0 }
   0x3   :  { %12 = vsyncpa [#allocation3], 0  ;;  %v1153_v2 = vld [vmem:[%s2294_s0] sm:$0xff]  ;;  %v1158_v3 = vld [vmem:[%s2294_s0 + $0x28] sm:$0xff]  ;;  %vm104_vm0 = vcmask 261120   ;;  %vm536_vm1 = vcmask 1043456  }
   0x4   :  { %v1154_v4 = vld [vmem:[%s2294_s0 + $0x8] sm:$0xff]  ;;  %v1159_v5 = vld [vmem:[%s2294_s0 + $0x30] sm:$0xff]  ;;  %v1160_v7 = vld [vmem:[%s2294_s0 + $0x38] sm:$0xff]  ;;  %s1331_s10 = smov [#allocation2]   ;;  %s1038_s13 = sshll.u32 %s2301_s7, 4  ;;  %s1039_s13 = int_to_ptr.hbm [resolvable:$true] %s1038_s13 }
   0x5   :  { %v1155_v6 = vld [vmem:[%s2294_s0 + $0x10] sm:$0xff]  ;;  %v1156_v8 = vld [vmem:[%s2294_s0 + $0x18] sm:$0xff]  ;;  %v1157_v9 = vld [vmem:[%s2294_s0 + $0x20] sm:$0xff]  ;;  %s1036_s1 = sshll.u32 %s1331_s10, 4  ;;  %s1037_s1 = int_to_ptr.vmem [resolvable:$true] %s1036_s1 }
   0x6   :  { %136 = vmatpush.bf16.msra.mxu0 %v1161_v1  ;;  %1168 = vmatpush.bf16.msra.mxu2 %v1161_v1  ;;  %v1413_v10 = vld [vmem:[%s2296_s2] ss:$0 sm:$0xff] }
   0x7   :  { %v506_v24 = vld [vmem:[%s2297_s3] sm:$0xf] }
   0x8   :  { %v538_v26 = vsel %vm536_vm1, %v506_v24, 0 }
   0x9   :  { %1087 = vmatmul.msk.bf16.vlgmr.msra.gmra.mxu0 %vm104_vm0, %v1153_v2  ;;  %1092 = vmatmul.msk.bf16.vlgmr.msra.gmra.mxu2 %vm104_vm0, %v1158_v3 }
   0xa   :  { %547 = vmatpush.bf16.msra.mxu1 %v538_v26  ;;  %1169 = vmatpush.bf16.msra.mxu3 %v538_v26 }
  0x19   :  { %1088 = vmatmul.msk.bf16.gmra.mxu0 %vm104_vm0, %v1154_v4  ;;  %1093 = vmatmul.msk.bf16.gmra.mxu2 %vm104_vm0, %v1159_v5 }
  0x29   :  { %1089 = vmatmul.msk.bf16.gmra.mxu0 %vm104_vm0, %v1155_v6  ;;  %1094 = vmatmul.msk.bf16.gmra.mxu2 %vm104_vm0, %v1160_v7 }
  0x39   :  { %1090 = vmatmul.msk.bf16.gmra.mxu0 %vm104_vm0, %v1156_v8 }
  0x49   :  { %1091 = vmatmul.msk.bf16.gmra.mxu0 %vm104_vm0, %v1157_v9 }
  0x86   :  { %v138_v11 = vpop.f32.mrf.mxu0 }
  0x87   :  { %v1416_v12 = vadd.f32 %v1413_v10, %v138_v11 }
  0x89   :  { %v1095_v13 = vmul.f32 -1.442695, %v1416_v12 }
  0x8b   :  { %1174 = vpow2.f32 %v1095_v13 }
  0x8c   :  { %v163_v14 = vpop.f32.mrf.mxu2 }
  0x8d   :  { %v1420_v15 = vadd.f32 %v1413_v10, %v163_v14 }
  0x8e   :  { %v140_v16 = vpop.f32.mrf.mxu0 }
  0x8f   :  { %v1105_v17 = vmul.f32 -1.442695, %v1420_v15  ;;  %v1424_v18 = vadd.f32 %v1413_v10, %v140_v16 }
  0x91   :  { %v1175_v19 = vpop.eup %1174  ;;  %1176 = vpow2.f32 %v1105_v17  ;;  %v1096_v20 = vmul.f32 -1.442695, %v1424_v18 }
  0x92   :  { %v1427_v21 = vadd.f32 1.0, %v1175_v19 }
  0x93   :  { %1178 = vpow2.f32 %v1096_v20 }
  0x94   :  { %1180 = vrcp.f32 %v1427_v21  ;;  %v165_v22 = vpop.f32.mrf.mxu2  ;;  %v253_v46 = vand.u32 2147483648, %v1427_v21  ;;  %v251_v48 = vand.u32 2147483647, %v1427_v21  ;;  %vm247_vm2 = vweird.f32 %v1427_v21 }
  0x95   :  { %v1431_v23 = vadd.f32 %v1413_v10, %v165_v22 }
  0x96   :  { %v143_v25 = vpop.f32.mrf.mxu0  ;;  %v254_v58 = vor.u32 1.1754944e-38, %v253_v46  ;;  %vm1486_vm6 = vcmp.eq.f32.partialorder %v251_v48, 8.507059e+37 }
  0x97   :  { %v1177_v27 = vpop.eup %1176  ;;  %v1106_v28 = vmul.f32 -1.442695, %v1431_v23  ;;  %v1438_v29 = vadd.f32 %v1413_v10, %v143_v25 }
  0x98   :  { %v1440_v30 = vadd.f32 1.0, %v1177_v27 }
  0x99   :  { %v1179_v31 = vpop.eup %1178  ;;  %1182 = vpow2.f32 %v1106_v28  ;;  %v1097_v32 = vmul.f32 -1.442695, %v1438_v29 }
  0x9a   :  { %v1443_v33 = vpop.eup %1180  ;;  %1184 = vrcp.f32 %v1440_v30  ;;  %v1446_v34 = vadd.f32 1.0, %v1179_v31  ;;  %v401_v49 = vand.u32 2147483647, %v1440_v30  ;;  %v403_v50 = vand.u32 2147483648, %v1440_v30 }
  0x9b   :  { %1186 = vpow2.f32 %v1097_v32  ;;  %v243_v36 = vmul.f32 %v1443_v33, %v1427_v21  ;;  %vm397_vm3 = vweird.f32 %v1440_v30  ;;  %vm248_vm4 = vweird.f32 %v1443_v33 }
  0x9c   :  { %v168_v35 = vpop.f32.mrf.mxu2  ;;  %1188 = vrcp.f32 %v1446_v34  ;;  %vm1482_vm5 = vcmp.eq.f32.partialorder %v401_v49, 8.507059e+37  ;;  %v404_v0 = vor.u32 1.1754944e-38, %v403_v50  ;;  %vm262_vm8 = vweird.f32 %v1446_v34  ;;  %vm1526_vm12 = vmor %vm247_vm2, %vm248_vm4 }
  0x9d   :  { %v1452_v37 = vadd.f32 %v1413_v10, %v168_v35  ;;  %v244_v45 = vsub.f32 1.0, %v243_v36  ;;  %v266_v5 = vand.u32 2147483647, %v1446_v34  ;;  %v268_v8 = vand.u32 2147483648, %v1446_v34 }
  0x9e   :  { %v145_v38 = vpop.f32.mrf.mxu0 }
  0x9f   :  { %v1183_v39 = vpop.eup %1182  ;;  %v1455_v40 = vadd.f32 %v1413_v10, %v145_v38  ;;  %v1107_v43 = vmul.f32 -1.442695, %v1452_v37  ;;  %v245_v57 = vmul.f32 %v1443_v33, %v244_v45  ;;  %vm1546_vm15 = vcmp.eq.f32.partialorder %v266_v5, 8.507059e+37 }
  0xa0   :  { %v1457_v41 = vpop.eup %1184  ;;  %v1459_v42 = vadd.f32 1.0, %v1183_v39 }
  0xa1   :  { %v1187_v44 = vpop.eup %1186  ;;  %v393_v47 = vmul.f32 %v1457_v41, %v1440_v30  ;;  %v1098_v54 = vmul.f32 -1.442695, %v1455_v40  ;;  %vm398_vm7 = vweird.f32 %v1457_v41  ;;  %v246_v7 = vadd.f32 %v1443_v33, %v245_v57 }
  0xa2   :  { %1190 = vrcp.f32 %v1459_v42  ;;  %v1469_v51 = vpop.eup %1188  ;;  %v1471_v53 = vadd.f32 1.0, %v1187_v44  ;;  %vm1516_vm10 = vmor %vm397_vm3, %vm398_vm7  ;;  %vm412_vm11 = vweird.f32 %v1459_v42  ;;  %v416_v25 = vand.u32 2147483647, %v1459_v42 }
  0xa3   :  { %v394_v52 = vsub.f32 1.0, %v393_v47  ;;  %1192 = vpow2.f32 %v1107_v43  ;;  %v258_v55 = vmul.f32 %v1469_v51, %v1446_v34  ;;  %vm263_vm9 = vweird.f32 %v1469_v51 }
  0xa4   :  { %v170_v56 = vpop.f32.mrf.mxu2  ;;  %1194 = vrcp.f32 %v1471_v53  ;;  %v250_v28 = vsel %vm1526_vm12, %v1443_v33, %v246_v7  ;;  %vm1542_vm14 = vmor %vm262_vm8, %vm263_vm9  ;;  %v418_v32 = vand.u32 2147483648, %v1459_v42  ;;  %v269_v43 = vor.u32 1.1754944e-38, %v268_v8 }
  0xa5   :  { %v395_v59 = vmul.f32 %v1457_v41, %v394_v52  ;;  %v259_v61 = vsub.f32 1.0, %v258_v55  ;;  %1196 = vpow2.f32 %v1098_v54  ;;  %v1491_v1 = vadd.f32 %v1413_v10, %v170_v56 }
  0xa6   :  { %v148_v62 = vpop.f32.mrf.mxu0  ;;  %v255_v46 = vsel %vm1486_vm6, %v254_v58, %v250_v28  ;;  %vm1574_vm2 = vcmp.eq.f32.partialorder %v416_v25, 8.507059e+37  ;;  %v283_v48 = vand.u32 2147483648, %v1471_v53  ;;  %v281_v60 = vand.u32 2147483647, %v1471_v53 }
  0xa7   :  { %v1494_v2 = vadd.f32 %v1413_v10, %v148_v62  ;;  %v260_v4 = vmul.f32 %v1469_v51, %v259_v61  ;;  %v1108_v11 = vmul.f32 -1.442695, %v1491_v1  ;;  %v396_v13 = vadd.f32 %v1457_v41, %v395_v59 }
  0xa8   :  { %v1496_v3 = vpop.eup %1190  ;;  %v482_v59 = vmul.f32 %v255_v46, %v1416_v12  ;;  %vm511_vm3 = vcmask 64512   ;;  %vm277_vm4 = vweird.f32 %v1471_v53  ;;  %v284_v63 = vor.u32 1.1754944e-38, %v283_v48 }
  0xa9   :  { %v1193_v6 = vpop.eup %1192  ;;  %v408_v9 = vmul.f32 %v1496_v3, %v1459_v42  ;;  %v261_v14 = vadd.f32 %v1469_v51, %v260_v4  ;;  %1198 = vpow2.f32 %v1108_v11  ;;  %v1099_v22 = vmul.f32 -1.442695, %v1494_v2 }
  0xaa   :  { %v1510_v16 = vadd.f32 1.0, %v1193_v6  ;;  %v1512_v17 = vpop.eup %1194  ;;  %vm413_vm13 = vweird.f32 %v1496_v3  ;;  %v400_v33 = vsel %vm1516_vm10, %v1457_v41, %v396_v13  ;;  %vm1614_vm7 = vcmp.eq.f32.partialorder %v281_v60, 8.507059e+37 }
  0xab   :  { %v409_v20 = vsub.f32 1.0, %v408_v9  ;;  %v273_v26 = vmul.f32 %v1512_v17, %v1471_v53  ;;  %v1197_v27 = vpop.eup %1196  ;;  %v265_v34 = vsel %vm1542_vm14, %v1469_v51, %v261_v14  ;;  %vm1565_vm1 = vmor %vm412_vm11, %vm413_vm13  ;;  %v405_v49 = vsel %vm1482_vm5, %v404_v0, %v400_v33 }
  0xac   :  { %1200 = vrcp.f32 %v1510_v16  ;;  %v173_v35 = vpop.f32.mrf.mxu2  ;;  %v1558_v38 = vadd.f32 1.0, %v1197_v27  ;;  %v270_v50 = vsel %vm1546_vm15, %v269_v43, %v265_v34  ;;  %v419_v51 = vor.u32 1.1754944e-38, %v418_v32 }
  0xad   :  { %v410_v31 = vmul.f32 %v1496_v3, %v409_v20  ;;  %v274_v36 = vsub.f32 1.0, %v273_v26  ;;  %1202 = vpow2.f32 %v1099_v22  ;;  %v1570_v41 = vadd.f32 %v1413_v10, %v173_v35 }
  0xae   :  { %v150_v39 = vpop.f32.mrf.mxu0  ;;  %1204 = vrcp.f32 %v1558_v38  ;;  %v1601_v62 = vmul.f32 %v405_v49, %v1420_v15  ;;  %vm278_vm5 = vweird.f32 %v1512_v17  ;;  %vm427_vm6 = vweird.f32 %v1510_v16 }
  0xaf   :  { %v411_v44 = vadd.f32 %v1496_v3, %v410_v31  ;;  %v1199_v42 = vpop.eup %1198  ;;  %v275_v52 = vmul.f32 %v1512_v17, %v274_v36  ;;  %v1109_v57 = vmul.f32 -1.442695, %v1570_v41  ;;  %v1594_v58 = vadd.f32 %v1413_v10, %v150_v39  ;;  %vm1630_vm9 = vmor %vm277_vm4, %vm278_vm5 }
  0xb0   :  { %v1590_v56 = vadd.f32 1.0, %v1199_v42  ;;  %v431_v9 = vand.u32 2147483647, %v1510_v16  ;;  %v433_v11 = vand.u32 2147483648, %v1510_v16  ;;  %vm292_vm8 = vweird.f32 %v1558_v38 }
  0xb1   :  { %v415_v55 = vsel %vm1565_vm1, %v1496_v3, %v411_v44  ;;  %v483_v3 = vmul.f32 %v270_v50, %v1424_v18  ;;  %v276_v5 = vadd.f32 %v1512_v17, %v275_v52  ;;  %v1100_v6 = vmul.f32 -1.442695, %v1594_v58 }
  0xb2   :  { %v1585_v54 = vpop.eup %1200  ;;  %1206 = vrcp.f32 %v1590_v56  ;;  %v420_v12 = vsel %vm1574_vm2, %v419_v51, %v415_v55  ;;  %v296_v19 = vand.u32 2147483647, %v1558_v38  ;;  %v298_v20 = vand.u32 2147483648, %v1558_v38 }
  0xb3   :  { %v423_v61 = vmul.f32 %v1585_v54, %v1510_v16  ;;  %v1203_v0 = vpop.eup %1202  ;;  %1208 = vpow2.f32 %v1109_v57  ;;  %v493_v22 = vmul.f32 %v420_v12, %v1431_v23  ;;  %vm428_vm10 = vweird.f32 %v1585_v54 }
  0xb4   :  { %v1205_v4 = vpop.eup %1204  ;;  %v1611_v15 = vadd.f32 1.0, %v1203_v0  ;;  %v175_v14 = vpop.f32.mrf.mxu2  ;;  %v280_v27 = vsel %vm1630_vm9, %v1512_v17, %v276_v5  ;;  %v498_v28 = vpack.c.bf16 %v483_v3, %v482_v59  ;;  %vm442_vm12 = vweird.f32 %v1590_v56  ;;  %vm1668_vm15 = vmor %vm427_vm6, %vm428_vm10 }
  0xb5   :  { %v424_v18 = vsub.f32 1.0, %v423_v61  ;;  %v288_v13 = vmul.f32 %v1205_v4, %v1558_v38  ;;  %v1639_v23 = vadd.f32 %v1413_v10, %v175_v14  ;;  %vm293_vm11 = vweird.f32 %v1205_v4 }
  0xb6   :  { %v153_v7 = vpop.f32.mrf.mxu0  ;;  %1210 = vrcp.f32 %v1611_v15  ;;  %v446_v35 = vand.u32 2147483647, %v1590_v56  ;;  %v448_v17 = vand.u32 2147483648, %v1590_v56  ;;  %1111 = vmatmul.msk.bf16.vlgmr.msra.gmra.mxu1 %vm511_vm3, %v498_v28  ;;  %vm1657_vm14 = vmor %vm292_vm8, %vm293_vm11  ;;  %v299_v45 = vor.u32 1.1754944e-38, %v298_v20 }
  0xb7   :  { %v289_v25 = vsub.f32 1.0, %v288_v13  ;;  %1212 = vpow2.f32 %v1100_v6  ;;  %v1642_v21 = vadd.f32 %v1413_v10, %v153_v7  ;;  %v425_v53 = vmul.f32 %v1585_v54, %v424_v18 }
  0xb8   :  { %v1207_v26 = vpop.eup %1206  ;;  %v1110_v33 = vmul.f32 -1.442695, %v1639_v23  ;;  %v503_v47 = vpack.c.bf16 %v493_v22, %v1601_v62  ;;  %v285_v55 = vsel %vm1614_vm7, %v284_v63, %v280_v27  ;;  %v434_v57 = vor.u32 1.1754944e-38, %v433_v11 }
  0xb9   :  { %v290_v30 = vmul.f32 %v1205_v4, %v289_v25  ;;  %v438_v31 = vmul.f32 %v1207_v26, %v1590_v56  ;;  %v1209_v32 = vpop.eup %1208  ;;  %vm443_vm13 = vweird.f32 %v1207_v26  ;;  %v1101_v46 = vmul.f32 -1.442695, %v1642_v21 }
  0xba   :  { %v1651_v39 = vadd.f32 1.0, %v1209_v32  ;;  %1214 = vpow2.f32 %v1110_v33  ;;  %v426_v49 = vadd.f32 %v1585_v54, %v425_v53  ;;  %vm297_vm1 = vcmp.eq.f32.partialorder %v296_v19, 8.507059e+37  ;;  %vm1681_vm2 = vmor %vm442_vm12, %vm443_vm13  ;;  %1116 = vmatmul.msk.bf16.vlgmr.msra.gmra.mxu3 %vm511_vm3, %v503_v47 }
  0xbb   :  { %v291_v34 = vadd.f32 %v1205_v4, %v290_v30  ;;  %v439_v36 = vsub.f32 1.0, %v438_v31  ;;  %vm447_vm4 = vcmp.eq.f32.partialorder %v446_v35, 8.507059e+37  ;;  %v449_v61 = vor.u32 1.1754944e-38, %v448_v17 }
  0xbc   :  { %v1653_v43 = vpop.eup %1210  ;;  %1216 = vrcp.f32 %v1651_v39  ;;  %v430_v56 = vsel %vm1668_vm15, %v1585_v54, %v426_v49  ;;  %vm432_vm5 = vcmp.eq.f32.partialorder %v431_v9, 8.507059e+37  ;;  %v484_v5 = vmul.f32 %v285_v55, %v1438_v29 }
  0xbd   :  { %v1213_v42 = vpop.eup %1212  ;;  %v295_v50 = vsel %vm1657_vm14, %v1205_v4, %v291_v34  ;;  %v440_v51 = vmul.f32 %v1207_v26, %v439_v36  ;;  %v303_v52 = vmul.f32 %v1653_v43, %v1611_v15  ;;  %1218 = vpow2.f32 %v1101_v46 }
  0xbe   :  { %v155_v48 = vpop.f32.mrf.mxu0  ;;  %v300_v59 = vsel %vm297_vm1, %v299_v45, %v295_v50  ;;  %v1687_v0 = vadd.f32 1.0, %v1213_v42  ;;  %v435_v18 = vsel %vm432_vm5, %v434_v57, %v430_v56  ;;  %v311_v54 = vand.u32 2147483647, %v1611_v15 }
  0xbf   :  { %v441_v60 = vadd.f32 %v1207_v26, %v440_v51  ;;  %v304_v62 = vsub.f32 1.0, %v303_v52  ;;  %v1690_v63 = vadd.f32 %v1413_v10, %v155_v48  ;;  %v485_v4 = vmul.f32 %v300_v59, %v1455_v40 }
  0xc0   :  { %v1215_v12 = vpop.eup %1214  ;;  %1220 = vrcp.f32 %v1687_v0  ;;  %v313_v14 = vand.u32 2147483648, %v1611_v15  ;;  %v461_v20 = vand.u32 2147483647, %v1651_v39  ;;  %v494_v24 = vmul.f32 %v435_v18, %v1452_v37 }
  0xc1   :  { %v445_v3 = vsel %vm1681_vm2, %v1207_v26, %v441_v60  ;;  %v1700_v7 = vadd.f32 1.0, %v1215_v12  ;;  %v305_v11 = vmul.f32 %v1653_v43, %v304_v62  ;;  %v1102_v9 = vmul.f32 -1.442695, %v1690_v63 }
  0xc2   :  { %v450_v6 = vsel %vm447_vm4, %v449_v61, %v445_v3  ;;  %v1702_v8 = vpop.eup %1216  ;;  %v499_v22 = vpack.c.bf16 %v485_v4, %v484_v5  ;;  %vm307_vm6 = vweird.f32 %v1611_v15  ;;  %vm308_vm7 = vweird.f32 %v1653_v43 }
  0xc3   :  { %v453_v40 = vmul.f32 %v1702_v8, %v1651_v39  ;;  %v1219_v19 = vpop.eup %1218  ;;  %v495_v29 = vmul.f32 %v450_v6, %v1491_v1  ;;  %1222 = vrcp.f32 %v1700_v7  ;;  %v306_v28 = vadd.f32 %v1653_v43, %v305_v11  ;;  %vm1738_vm11 = vmor %vm307_vm6, %vm308_vm7 }
  0xc4   :  { %v1715_v26 = vadd.f32 1.0, %v1219_v19  ;;  %vm1719_vm8 = vcmp.eq.f32.partialorder %v311_v54, 8.507059e+37  ;;  %1224 = vpow2.f32 %v1102_v9  ;;  %v314_v30 = vor.u32 1.1754944e-38, %v313_v14 }
  0xc5   :  { %v454_v25 = vsub.f32 1.0, %v453_v40  ;;  %vm457_vm9 = vweird.f32 %v1651_v39  ;;  %v463_v37 = vand.u32 2147483648, %v1651_v39  ;;  %vm1730_vm10 = vcmp.eq.f32.partialorder %v461_v20, 8.507059e+37 }
  0xc6   :  { %v158_v13 = vpop.f32.mrf.mxu0  ;;  %v1221_v27 = vpop.eup %1220  ;;  %1226 = vrcp.f32 %v1715_v26  ;;  %1112 = vmatmul.msk.bf16.gmra.mxu1 %vm511_vm3, %v499_v22  ;;  %v504_v17 = vpack.c.bf16 %v495_v29, %v494_v24  ;;  %vm322_vm12 = vweird.f32 %v1687_v0  ;;  %v326_v36 = vand.u32 2147483647, %v1687_v0 }
  0xc7   :  { %v1724_v1 = vadd.f32 %v1413_v10, %v158_v13  ;;  %v318_v31 = vmul.f32 %v1221_v27, %v1687_v0  ;;  %v455_v32 = vmul.f32 %v1702_v8, %v454_v25  ;;  %v310_v46 = vsel %vm1738_vm11, %v1653_v43, %v306_v28 }
  0xc8   :  { %vm458_vm13 = vweird.f32 %v1702_v8  ;;  %v328_v15 = vand.u32 2147483648, %v1687_v0  ;;  %vm472_vm14 = vweird.f32 %v1700_v7  ;;  %vm323_vm15 = vweird.f32 %v1221_v27 }
  0xc9   :  { %v319_v34 = vsub.f32 1.0, %v318_v31  ;;  %v1103_v44 = vmul.f32 -1.442695, %v1724_v1  ;;  %v1223_v45 = vpop.eup %1222  ;;  %v476_v49 = vand.u32 2147483647, %v1700_v7  ;;  %v456_v50 = vadd.f32 %v1702_v8, %v455_v32  ;;  %vm1761_vm1 = vmor %vm457_vm9, %vm458_vm13 }
  0xca   :  { %v468_v42 = vmul.f32 %v1223_v45, %v1700_v7  ;;  %v1225_v38 = vpop.eup %1224  ;;  %v478_v51 = vand.u32 2147483648, %v1700_v7  ;;  %1117 = vmatmul.msk.bf16.gmra.mxu3 %vm511_vm3, %v504_v17  ;;  %vm473_vm2 = vweird.f32 %v1223_v45  ;;  %v464_v60 = vor.u32 1.1754944e-38, %v463_v37  ;;  %vm324_vm4 = vmor %vm322_vm12, %vm323_vm15 }
  0xcb   :  { %v320_v48 = vmul.f32 %v1221_v27, %v319_v34  ;;  %1228 = vpow2.f32 %v1103_v44  ;;  %v1765_v16 = vadd.f32 1.0, %v1225_v38  ;;  %vm327_vm5 = vcmp.eq.f32.partialorder %v326_v36, 8.507059e+37  ;;  %vm474_vm6 = vmor %vm472_vm14, %vm473_vm2 }
  0xcc   :  { %v469_v57 = vsub.f32 1.0, %v468_v42  ;;  %v1227_v59 = vpop.eup %1226  ;;  %v315_v39 = vsel %vm1719_vm8, %v314_v30, %v310_v46  ;;  %v460_v12 = vsel %vm1761_vm1, %v1702_v8, %v456_v50  ;;  %v479_v0 = vor.u32 1.1754944e-38, %v478_v51 }
  0xcd   :  { %v321_v55 = vadd.f32 %v1221_v27, %v320_v48  ;;  %v333_v3 = vmul.f32 %v1227_v59, %v1715_v26  ;;  %1230 = vrcp.f32 %v1765_v16  ;;  %vm477_vm7 = vcmp.eq.f32.partialorder %v476_v49, 8.507059e+37 }
  0xce   :  { %v160_v47 = vpop.f32.mrf.mxu0  ;;  %v470_v56 = vmul.f32 %v1223_v45, %v469_v57  ;;  %v486_v54 = vmul.f32 %v315_v39, %v1494_v2  ;;  %v465_v9 = vsel %vm1730_vm10, %v464_v60, %v460_v12  ;;  %vm338_vm8 = vweird.f32 %v1227_v59 }
  0xcf   :  { %v1757_v43 = vadd.f32 %v1413_v10, %v160_v47  ;;  %v329_v10 = vor.u32 1.1754944e-38, %v328_v15  ;;  %v325_v62 = vsel %vm324_vm4, %v1221_v27, %v321_v55  ;;  %v334_v18 = vsub.f32 1.0, %v333_v3  ;;  %v1811_v3 = vld [vmem:[%s2298_s4] ss:$0 sm:$0xff] }
  0xd0   :  { %v471_v6 = vadd.f32 %v1223_v45, %v470_v56  ;;  %v496_v29 = vmul.f32 %v465_v9, %v1570_v41  ;;  %v343_v25 = vand.u32 2147483648, %v1715_v26  ;;  %vm337_vm9 = vweird.f32 %v1715_v26 }
  0xd1   :  { %v1104_v61 = vmul.f32 -1.442695, %v1757_v43  ;;  %v330_v4 = vsel %vm327_vm5, %v329_v10, %v325_v62  ;;  %v1229_v11 = vpop.eup %1228  ;;  %v335_v14 = vmul.f32 %v1227_v59, %v334_v18  ;;  %v358_v53 = vand.u32 2147483648, %v1765_v16  ;;  %vm339_vm10 = vmor %vm337_vm9, %vm338_vm8 }
  0xd2   :  { %v487_v5 = vmul.f32 %v330_v4, %v1594_v58  ;;  %v475_v8 = vsel %vm474_vm6, %v1223_v45, %v471_v6  ;;  %v1784_v13 = vadd.f32 1.0, %v1229_v11  ;;  %v356_v37 = vand.u32 2147483647, %v1765_v16 }
  0xd3   :  { %1232 = vpow2.f32 %v1104_v61  ;;  %v480_v7 = vsel %vm477_vm7, %v479_v0, %v475_v8  ;;  %v1231_v58 = vpop.eup %1230  ;;  %v336_v22 = vadd.f32 %v1227_v59, %v335_v14  ;;  %v344_v35 = vor.u32 1.1754944e-38, %v343_v25 }
  0xd4   :  { %v500_v40 = vpack.c.bf16 %v487_v5, %v486_v54  ;;  %v497_v19 = vmul.f32 %v480_v7, %v1639_v23  ;;  %1234 = vrcp.f32 %v1784_v13  ;;  %v348_v20 = vmul.f32 %v1231_v58, %v1765_v16 }
  0xd5   :  { %v341_v23 = vand.u32 2147483647, %v1715_v26  ;;  %vm353_vm11 = vweird.f32 %v1231_v58  ;;  %v340_v31 = vsel %vm339_vm10, %v1227_v59, %v336_v22  ;;  %vm352_vm12 = vweird.f32 %v1765_v16 }
  0xd6   :  { %1113 = vmatmul.msk.bf16.gmra.mxu1 %vm511_vm3, %v500_v40  ;;  %v505_v24 = vpack.c.bf16 %v497_v19, %v496_v29  ;;  %v349_v27 = vsub.f32 1.0, %v348_v20  ;;  %vm354_vm14 = vmor %vm352_vm12, %vm353_vm11  ;;  %v359_v26 = vor.u32 1.1754944e-38, %v358_v53  ;;  %vm357_vm15 = vcmp.eq.f32.partialorder %v356_v37, 8.507059e+37 }
  0xd7   :  { %vm342_vm13 = vcmp.eq.f32.partialorder %v341_v23, 8.507059e+37  ;;  %v373_v57 = vand.u32 2147483648, %v1784_v13  ;;  %vm367_vm6 = vweird.f32 %v1784_v13 }
  0xd8   :  { %v350_v41 = vmul.f32 %v1231_v58, %v349_v27  ;;  %v345_v33 = vsel %vm342_vm13, %v344_v35, %v340_v31 }
  0xd9   :  { %v1233_v2 = vpop.eup %1232  ;;  %v488_v15 = vmul.f32 %v345_v33, %v1642_v21  ;;  %v371_v21 = vand.u32 2147483647, %v1784_v13  ;;  %v374_v60 = vor.u32 1.1754944e-38, %v373_v57 }
  0xda   :  { %v235_v28 = vadd.f32 1.0, %v1233_v2  ;;  %v1235_v30 = vpop.eup %1234  ;;  %1118 = vmatmul.msk.bf16.gmra.mxu3 %vm511_vm3, %v505_v24  ;;  %v351_v17 = vadd.f32 %v1231_v58, %v350_v41 }
  0xdb   :  { %v363_v32 = vmul.f32 %v1235_v30, %v1784_v13  ;;  %vm368_vm4 = vweird.f32 %v1235_v30  ;;  %vm372_vm9 = vcmp.eq.f32.partialorder %v371_v21, 8.507059e+37 }
  0xdc   :  { %1236 = vrcp.f32 %v235_v28  ;;  %v355_v34 = vsel %vm354_vm14, %v1231_v58, %v351_v17  ;;  %vm382_vm2 = vweird.f32 %v235_v28  ;;  %v388_v50 = vand.u32 2147483648, %v235_v28  ;;  %vm369_vm7 = vmor %vm367_vm6, %vm368_vm4 }
  0xdd   :  { %v360_v36 = vsel %vm357_vm15, %v359_v26, %v355_v34  ;;  %v364_v44 = vsub.f32 1.0, %v363_v32  ;;  %v386_v55 = vand.u32 2147483647, %v235_v28 }
  0xde   :  { %v489_v46 = vmul.f32 %v360_v36, %v1690_v63  ;;  %v389_v16 = vor.u32 1.1754944e-38, %v388_v50 }
  0xdf   :  { %v365_v48 = vmul.f32 %v1235_v30, %v364_v44  ;;  %vm387_vm8 = vcmp.eq.f32.partialorder %v386_v55, 8.507059e+37 }
  0xe0   :  { %v501_v49 = vpack.c.bf16 %v489_v46, %v488_v15 }
  0xe1   :  { %v366_v51 = vadd.f32 %v1235_v30, %v365_v48 }
  0xe2   :  { %v1237_v45 = vpop.eup %1236 }
  0xe3   :  { %v378_v47 = vmul.f32 %v1237_v45, %v235_v28  ;;  %vm383_vm1 = vweird.f32 %v1237_v45  ;;  %v370_v59 = vsel %vm369_vm7, %v1235_v30, %v366_v51 }
  0xe4   :  { %vm384_vm5 = vmor %vm382_vm2, %vm383_vm1  ;;  %v375_v61 = vsel %vm372_vm9, %v374_v60, %v370_v59 }
  0xe5   :  { %v379_v42 = vsub.f32 1.0, %v378_v47  ;;  %v490_v62 = vmul.f32 %v375_v61, %v1724_v1 }
  0xe6   :  { %1114 = vmatmul.msk.bf16.gmra.mxu1 %vm511_vm3, %v501_v49 }
  0xe7   :  { %v380_v38 = vmul.f32 %v1237_v45, %v379_v42 }
  0xe9   :  { %v381_v52 = vadd.f32 %v1237_v45, %v380_v38 }
  0xeb   :  { %v385_v63 = vsel %vm384_vm5, %v1237_v45, %v381_v52 }
  0xec   :  { %v390_v10 = vsel %vm387_vm8, %v389_v16, %v385_v63 }
  0xed   :  { %v491_v39 = vmul.f32 %v390_v10, %v1757_v43 }
  0xef   :  { %v502_v56 = vpack.c.bf16 %v491_v39, %v490_v62 }
  0xf6   :  { %1115 = vmatmul.msk.bf16.gmra.mxu1 %vm511_vm3, %v502_v56 }
 0x133   :  { %v549_v12 = vpop.f32.mrf.mxu1 }
 0x134   :  { %v1814_v4 = vadd.f32 %v1811_v3, %v549_v12 }
 0x136   :  { %v1119_v0 = vmul.f32 -1.442695, %v1814_v4 }
 0x138   :  { %1238 = vpow2.f32 %v1119_v0 }
 0x13b   :  { %v551_v5 = vpop.f32.mrf.mxu1 }
 0x13c   :  { %v1818_v6 = vadd.f32 %v1811_v3, %v551_v5 }
 0x13d   :  { %v574_v43 = vpop.f32.mrf.mxu3 }
 0x13e   :  { %v1120_v1 = vmul.f32 -1.442695, %v1818_v6  ;;  %v1239_v11 = vpop.eup %1238  ;;  %v1825_v9 = vadd.f32 %v1811_v3, %v574_v43 }
 0x13f   :  { %v1827_v13 = vadd.f32 1.0, %v1239_v11 }
 0x140   :  { %1240 = vpow2.f32 %v1120_v1  ;;  %v1129_v14 = vmul.f32 -1.442695, %v1825_v9 }
 0x141   :  { %1242 = vrcp.f32 %v1827_v13  ;;  %vm658_vm3 = vweird.f32 %v1827_v13  ;;  %v662_v38 = vand.u32 2147483647, %v1827_v13  ;;  %v664_v51 = vand.u32 2147483648, %v1827_v13 }
 0x143   :  { %v554_v18 = vpop.f32.mrf.mxu1  ;;  %vm1903_vm14 = vcmp.eq.f32.partialorder %v662_v38, 8.507059e+37 }
 0x144   :  { %v1822_v54 = vadd.f32 %v1811_v3, %v554_v18  ;;  %v665_v18 = vor.u32 1.1754944e-38, %v664_v51 }
 0x145   :  { %v576_v19 = vpop.f32.mrf.mxu3 }
 0x146   :  { %v1241_v8 = vpop.eup %1240  ;;  %v1121_v7 = vmul.f32 -1.442695, %v1822_v54  ;;  %v1839_v20 = vadd.f32 %v1811_v3, %v576_v19 }
 0x147   :  { %v1831_v40 = vadd.f32 1.0, %v1241_v8  ;;  %v1842_v22 = vpop.eup %1242 }
 0x148   :  { %1244 = vpow2.f32 %v1121_v7  ;;  %v1130_v25 = vmul.f32 -1.442695, %v1839_v20  ;;  %v654_v30 = vmul.f32 %v1842_v22, %v1827_v13  ;;  %vm659_vm10 = vweird.f32 %v1842_v22 }
 0x149   :  { %1246 = vpow2.f32 %v1129_v14  ;;  %vm673_vm12 = vweird.f32 %v1831_v40  ;;  %v679_v63 = vand.u32 2147483648, %v1831_v40  ;;  %vm1891_vm13 = vmor %vm658_vm3, %vm659_vm10  ;;  %v677_v60 = vand.u32 2147483647, %v1831_v40 }
 0x14a   :  { %1248 = vrcp.f32 %v1831_v40  ;;  %v655_v26 = vsub.f32 1.0, %v654_v30 }
 0x14b   :  { %v556_v58 = vpop.f32.mrf.mxu1  ;;  %v680_v11 = vor.u32 1.1754944e-38, %v679_v63  ;;  %vm678_vm1 = vcmp.eq.f32.partialorder %v677_v60, 8.507059e+37 }
 0x14c   :  { %v1835_v29 = vadd.f32 %v1811_v3, %v556_v58  ;;  %v656_v45 = vmul.f32 %v1842_v22, %v655_v26 }
 0x14d   :  { %v579_v41 = vpop.f32.mrf.mxu3 }
 0x14e   :  { %v1122_v2 = vmul.f32 -1.442695, %v1835_v29  ;;  %v1245_v24 = vpop.eup %1244  ;;  %v657_v50 = vadd.f32 %v1842_v22, %v656_v45  ;;  %v1898_v61 = vadd.f32 %v1811_v3, %v579_v41 }
 0x14f   :  { %v1247_v27 = vpop.eup %1246  ;;  %v1847_v53 = vadd.f32 1.0, %v1245_v24 }
 0x150   :  { %v1845_v23 = vpop.eup %1248  ;;  %1250 = vpow2.f32 %v1122_v2  ;;  %v1856_v32 = vadd.f32 1.0, %v1247_v27  ;;  %v661_v0 = vsel %vm1891_vm13, %v1842_v22, %v657_v50 }
 0x151   :  { %1252 = vpow2.f32 %v1130_v25  ;;  %v669_v31 = vmul.f32 %v1845_v23, %v1831_v40  ;;  %vm674_vm11 = vweird.f32 %v1845_v23  ;;  %v1131_v40 = vmul.f32 -1.442695, %v1898_v61 }
 0x152   :  { %1254 = vrcp.f32 %v1847_v53  ;;  %v814_v10 = vand.u32 2147483648, %v1856_v32  ;;  %vm1907_vm15 = vmor %vm673_vm12, %vm674_vm11  ;;  %v812_v13 = vand.u32 2147483647, %v1856_v32  ;;  %v666_v2 = vsel %vm1903_vm14, %v665_v18, %v661_v0 }
 0x153   :  { %v559_v28 = vpop.f32.mrf.mxu1  ;;  %v670_v33 = vsub.f32 1.0, %v669_v31  ;;  %vm808_vm2 = vweird.f32 %v1856_v32  ;;  %vm688_vm4 = vweird.f32 %v1847_v53  ;;  %v893_v26 = vmul.f32 %v666_v2, %v1814_v4 }
 0x154   :  { %v1852_v37 = vadd.f32 %v1811_v3, %v559_v28  ;;  %v1925_v14 = vor.u32 1.1754944e-38, %v814_v10 }
 0x155   :  { %v671_v15 = vmul.f32 %v1845_v23, %v670_v33  ;;  %v581_v42 = vpop.f32.mrf.mxu3  ;;  %v909_v50 = vsel %vm104_vm0, %v893_v26, 0.0 }
 0x156   :  { %v1123_v35 = vmul.f32 -1.442695, %v1852_v37  ;;  %v1251_v17 = vpop.eup %1250  ;;  %v1920_v43 = vadd.f32 %v1811_v3, %v581_v42 }
 0x157   :  { %v1253_v36 = vpop.eup %1252  ;;  %v1861_v44 = vadd.f32 1.0, %v1251_v17  ;;  %v672_v55 = vadd.f32 %v1845_v23, %v671_v15 }
 0x158   :  { %1256 = vpow2.f32 %v1123_v35  ;;  %v1864_v46 = vpop.eup %1254  ;;  %v1867_v47 = vadd.f32 1.0, %v1253_v36  ;;  %v1132_v30 = vmul.f32 -1.442695, %v1920_v43  ;;  %v692_v35 = vand.u32 2147483647, %v1847_v53 }
 0x159   :  { %1258 = vrcp.f32 %v1856_v32  ;;  %v684_v57 = vmul.f32 %v1864_v46, %v1847_v53  ;;  %v676_v5 = vsel %vm1907_vm15, %v1845_v23, %v672_v55  ;;  %vm689_vm5 = vweird.f32 %v1864_v46 }
 0x15a   :  { %1260 = vrcp.f32 %v1861_v44  ;;  %v681_v22 = vsel %vm678_vm1, %v680_v11, %v676_v5  ;;  %vm1967_vm7 = vcmp.eq.f32.partialorder %v692_v35, 8.507059e+37  ;;  %vm1973_vm8 = vmor %vm688_vm4, %vm689_vm5  ;;  %v827_v62 = vand.u32 2147483647, %v1867_v47 }
 0x15b   :  { %v561_v34 = vpop.f32.mrf.mxu1  ;;  %1262 = vrcp.f32 %v1867_v47  ;;  %v685_v1 = vsub.f32 1.0, %v684_v57  ;;  %v894_v33 = vmul.f32 %v681_v22, %v1818_v6  ;;  %v829_v11 = vand.u32 2147483648, %v1867_v47 }
 0x15c   :  { %v1901_v39 = vadd.f32 %v1811_v3, %v561_v34  ;;  %v694_v34 = vand.u32 2147483648, %v1847_v53  ;;  %vm823_vm10 = vweird.f32 %v1867_v47  ;;  %v707_v2 = vand.u32 2147483647, %v1861_v44 }
 0x15d   :  { %v584_v25 = vpop.f32.mrf.mxu3  ;;  %v686_v28 = vmul.f32 %v1864_v46, %v685_v1  ;;  %v910_v51 = vsel %vm104_vm0, %v894_v33, 0.0  ;;  %v709_v22 = vand.u32 2147483648, %v1861_v44  ;;  %vm703_vm13 = vweird.f32 %v1861_v44 }
 0x15e   :  { %v1257_v48 = vpop.eup %1256  ;;  %v1124_v19 = vmul.f32 -1.442695, %v1901_v39  ;;  %v1953_v15 = vadd.f32 %v1811_v3, %v584_v25  ;;  %v911_v1 = vadd.f32 %v910_v51, %v909_v50  ;;  %vm708_vm1 = vcmp.eq.f32.partialorder %v707_v2, 8.507059e+37 }
 0x15f   :  { %v1869_v49 = vpop.eup %1258  ;;  %v1877_v52 = vadd.f32 1.0, %v1257_v48  ;;  %v687_v42 = vadd.f32 %v1864_v46, %v686_v28 }
 0x160   :  { %v804_v16 = vmul.f32 %v1869_v49, %v1856_v32  ;;  %v1911_v12 = vpop.eup %1260  ;;  %vm809_vm6 = vweird.f32 %v1869_v49  ;;  %v1133_v60 = vmul.f32 -1.442695, %v1953_v15  ;;  %v1163_v32 = vld [vmem:[%s2299_s5] sm:$0xff] }
 0x161   :  { %1264 = vrcp.f32 %v1877_v52  ;;  %v1923_v7 = vpop.eup %1262  ;;  %v699_v24 = vmul.f32 %v1911_v12, %v1861_v44  ;;  %vm1981_vm9 = vmor %vm808_vm2, %vm809_vm6  ;;  %v691_v53 = vsel %vm1973_vm8, %v1864_v46, %v687_v42  ;;  %vm704_vm11 = vweird.f32 %v1911_v12 }
 0x162   :  { %v805_v8 = vsub.f32 1.0, %v804_v16  ;;  %1266 = vpow2.f32 %v1124_v19  ;;  %v819_v36 = vmul.f32 %v1923_v7, %v1867_v47  ;;  %v695_v16 = vor.u32 1.1754944e-38, %v694_v34  ;;  %vm2022_vm14 = vmor %vm703_vm13, %vm704_vm11  ;;  %v1166_v47 = vld [vmem:[%s2299_s5 + $0x8] sm:$0xff] }
 0x163   :  { %v564_v21 = vpop.f32.mrf.mxu1  ;;  %v700_v45 = vsub.f32 1.0, %v699_v24  ;;  %1268 = vpow2.f32 %v1131_v40  ;;  %vm824_vm3 = vweird.f32 %v1923_v7  ;;  %vm718_vm15 = vweird.f32 %v1877_v52  ;;  %1023 = vmatpush.bf16.msrb.mxu3 %v1166_v47 }
 0x164   :  { %v1937_v27 = vadd.f32 %v1811_v3, %v564_v21  ;;  %v806_v31 = vmul.f32 %v1869_v49, %v805_v8  ;;  %1270 = vpow2.f32 %v1132_v30  ;;  %v820_v57 = vsub.f32 1.0, %v819_v36  ;;  %vm2058_vm5 = vmor %vm823_vm10, %vm824_vm3 }
 0x165   :  { %v701_v59 = vmul.f32 %v1911_v12, %v700_v45  ;;  %v586_v8 = vpop.f32.mrf.mxu3  ;;  %v696_v25 = vsel %vm1967_vm7, %v695_v16, %v691_v53  ;;  %v722_v36 = vand.u32 2147483647, %v1877_v52  ;;  %v710_v42 = vor.u32 1.1754944e-38, %v709_v22 }
 0x166   :  { %v1125_v17 = vmul.f32 -1.442695, %v1937_v27  ;;  %v1961_v6 = vadd.f32 %v1869_v49, %v806_v31  ;;  %v821_v19 = vmul.f32 %v1923_v7, %v820_v57  ;;  %v895_v33 = vmul.f32 %v696_v25, %v1822_v54 }
 0x167   :  { %v1929_v58 = vpop.eup %1264  ;;  %v702_v28 = vadd.f32 %v1911_v12, %v701_v59  ;;  %vm723_vm4 = vcmp.eq.f32.partialorder %v722_v36, 8.507059e+37  ;;  %vm2092_vm11 = vcmp.eq.f32.partialorder %v812_v13, 8.507059e+37 }
 0x168   :  { %v714_v23 = vmul.f32 %v1929_v58, %v1877_v52  ;;  %1272 = vpow2.f32 %v1125_v17  ;;  %v1267_v21 = vpop.eup %1266  ;;  %v811_v18 = vsel %vm1981_vm9, %v1869_v49, %v1961_v6  ;;  %vm719_vm12 = vweird.f32 %v1929_v58 }
 0x169   :  { %v1990_v0 = vadd.f32 1.0, %v1267_v21  ;;  %v1269_v5 = vpop.eup %1268  ;;  %v724_v17 = vand.u32 2147483648, %v1877_v52  ;;  %v706_v44 = vsel %vm2022_vm14, %v1911_v12, %v702_v28  ;;  %vm2035_vm2 = vmor %vm718_vm15, %vm719_vm12  ;;  %v912_v63 = vsel %vm104_vm0, %v895_v33, 0.0 }
 0x16a   :  { %v715_v4 = vsub.f32 1.0, %v714_v23  ;;  %v1271_v46 = vpop.eup %1270  ;;  %v2015_v35 = vadd.f32 1.0, %v1269_v5  ;;  %v711_v16 = vsel %vm708_vm1, %v710_v42, %v706_v44  ;;  %v1330_v44 = vmov 64.0  }
 0x16b   :  { %v566_v41 = vpop.f32.mrf.mxu1  ;;  %v2028_v45 = vadd.f32 1.0, %v1271_v46  ;;  %v725_v55 = vor.u32 1.1754944e-38, %v724_v17  ;;  %v737_v53 = vand.u32 2147483647, %v1990_v0  ;;  %v896_v22 = vmul.f32 %v711_v16, %v1835_v29 }
 0x16c   :  { %v1956_v48 = vadd.f32 %v1811_v3, %v566_v41  ;;  %v716_v56 = vmul.f32 %v1929_v58, %v715_v4  ;;  %v2012_v41 = vadd.f32 %v1811_v3, %v586_v8  ;;  %v739_v8 = vand.u32 2147483648, %v1990_v0 }
 0x16d   :  { %vm733_vm7 = vweird.f32 %v1990_v0  ;;  %vm738_vm8 = vcmp.eq.f32.partialorder %v737_v53, 8.507059e+37  ;;  %vm838_vm9 = vweird.f32 %v2015_v35 }
 0x16e   :  { %v1126_v38 = vmul.f32 -1.442695, %v1956_v48  ;;  %v1273_v24 = vpop.eup %1272  ;;  %v717_v23 = vadd.f32 %v1929_v58, %v716_v56  ;;  %v1134_v12 = vmul.f32 -1.442695, %v2012_v41 }
 0x16f   :  { %v2009_v30 = vadd.f32 1.0, %v1273_v24 }
 0x170   :  { %1274 = vpow2.f32 %v1126_v38  ;;  %v2041_v38 = vadd.f32 %v1923_v7, %v821_v19  ;;  %v721_v52 = vsel %vm2035_vm2, %v1929_v58, %v717_v23  ;;  %v913_v19 = vadd.f32 %v912_v63, %v911_v1  ;;  %v1165_v58 = vld [vmem:[%s2299_s5] sm:$0xff] }
 0x171   :  { %1276 = vrcp.f32 %v1990_v0  ;;  %v726_v59 = vsel %vm723_vm4, %v725_v55, %v721_v52  ;;  %v740_v1 = vor.u32 1.1754944e-38, %v739_v8  ;;  %v752_v36 = vand.u32 2147483647, %v2009_v30  ;;  %1024 = vmatpush.bf16.msrb.mxu3 %v1165_v58 }
 0x172   :  { %1278 = vpow2.f32 %v1133_v60  ;;  %v826_v5 = vsel %vm2058_vm5, %v1923_v7, %v2041_v38  ;;  %v897_v24 = vmul.f32 %v726_v59, %v1852_v37  ;;  %vm748_vm12 = vweird.f32 %v2009_v30 }
 0x173   :  { %v569_v40 = vpop.f32.mrf.mxu1  ;;  %1280 = vrcp.f32 %v2009_v30  ;;  %vm753_vm14 = vcmp.eq.f32.partialorder %v752_v36, 8.507059e+37 }
 0x174   :  { %v2019_v26 = vadd.f32 %v1811_v3, %v569_v40  ;;  %1282 = vrcp.f32 %v2015_v35 }
 0x175   :  { %1284 = vrcp.f32 %v2028_v45 }
 0x176   :  { %v1275_v31 = vpop.eup %1274  ;;  %v1127_v21 = vmul.f32 -1.442695, %v2019_v26 }
 0x177   :  { %v1277_v4 = vpop.eup %1276  ;;  %v2047_v50 = vadd.f32 1.0, %v1275_v31 }
 0x178   :  { %v1279_v51 = vpop.eup %1278  ;;  %v729_v57 = vmul.f32 %v1277_v4, %v1990_v0  ;;  %vm734_vm6 = vweird.f32 %v1277_v4  ;;  %v754_v0 = vand.u32 2147483648, %v2009_v30 }
 0x179   :  { %1286 = vrcp.f32 %v2047_v50  ;;  %v2069_v40 = vadd.f32 1.0, %v1279_v51  ;;  %v1281_v46 = vpop.eup %1280  ;;  %vm735_vm3 = vmor %vm733_vm7, %vm734_vm6  ;;  %v769_v53 = vand.u32 2147483648, %v2047_v50  ;;  %vm763_vm1 = vweird.f32 %v2047_v50 }
 0x17a   :  { %v730_v60 = vsub.f32 1.0, %v729_v57  ;;  %1288 = vpow2.f32 %v1134_v12  ;;  %v744_v25 = vmul.f32 %v1281_v46, %v2009_v30  ;;  %v2077_v23 = vpop.eup %1282  ;;  %vm749_vm10 = vweird.f32 %v1281_v46 }
 0x17b   :  { %v571_v56 = vpop.f32.mrf.mxu1  ;;  %1290 = vpow2.f32 %v1127_v21  ;;  %v2080_v17 = vpop.eup %1284  ;;  %v916_v57 = vsel %vm104_vm0, %v897_v24, 0.0  ;;  %vm750_vm13 = vmor %vm748_vm12, %vm749_vm10  ;;  %v755_v13 = vor.u32 1.1754944e-38, %v754_v0  ;;  %v834_v24 = vmul.f32 %v2077_v23, %v2015_v35 }
 0x17c   :  { %v731_v2 = vmul.f32 %v1277_v4, %v730_v60  ;;  %v2075_v28 = vadd.f32 %v1811_v3, %v571_v56  ;;  %1292 = vrcp.f32 %v2069_v40  ;;  %v745_v29 = vsub.f32 1.0, %v744_v25  ;;  %v1164_v3 = vld [vmem:[%s2299_s5 + $0x8] sm:$0xff] }
 0x17d   :  { %1294 = vrcp.f32 %v1330_v44  ;;  %965 = vmatpush.bf16.msrb.mxu2 %v1164_v3  ;;  %v849_v3 = vmul.f32 %v2080_v17, %v2028_v45  ;;  %vm828_vm6 = vcmp.eq.f32.partialorder %v827_v62, 8.507059e+37  ;;  %v835_v6 = vsub.f32 1.0, %v834_v24 }
 0x17e   :  { %v732_v31 = vadd.f32 %v1277_v4, %v731_v2  ;;  %v1128_v37 = vmul.f32 -1.442695, %v2075_v28  ;;  %v746_v52 = vmul.f32 %v1281_v46, %v745_v29  ;;  %vm839_vm5 = vweird.f32 %v2077_v23 }
 0x17f   :  { %v1287_v33 = vpop.eup %1286  ;;  %vm853_vm7 = vweird.f32 %v2028_v45  ;;  %vm854_vm10 = vweird.f32 %v2080_v17 }
 0x180   :  { %v736_v34 = vsel %vm735_vm3, %v1277_v4, %v732_v31  ;;  %v1289_v42 = vpop.eup %1288  ;;  %v759_v12 = vmul.f32 %v1287_v33, %v2047_v50  ;;  %v914_v4 = vsel %vm104_vm0, %v896_v22, 0.0  ;;  %1296 = vpow2.f32 %v1128_v37 }
 0x181   :  { %v741_v54 = vsel %vm738_vm8, %v740_v1, %v736_v34  ;;  %v1291_v51 = vpop.eup %1290  ;;  %v747_v63 = vadd.f32 %v1281_v46, %v746_v52  ;;  %v2105_v60 = vadd.f32 1.0, %v1289_v42  ;;  %vm764_vm15 = vweird.f32 %v1287_v33  ;;  %966 = vmatpush.bf16.msrb.mxu2 %v1163_v32 }
 0x182   :  { %v898_v21 = vmul.f32 %v741_v54, %v1901_v39  ;;  %v760_v16 = vsub.f32 1.0, %v759_v12  ;;  %v2100_v59 = vadd.f32 1.0, %v1291_v51  ;;  %v2108_v56 = vpop.eup %1292  ;;  %v767_v39 = vand.u32 2147483647, %v2047_v50  ;;  %vm765_vm2 = vmor %vm763_vm1, %vm764_vm15 }
 0x183   :  { %v751_v30 = vsel %vm750_vm13, %v1281_v46, %v747_v63  ;;  %v2111_v2 = vpop.eup %1294  ;;  %v915_v22 = vadd.f32 %v914_v4, %v913_v19  ;;  %v770_v19 = vor.u32 1.1754944e-38, %v769_v53  ;;  %v844_v42 = vand.u32 2147483648, %v2015_v35  ;;  %vm2210_vm15 = vmor %vm838_vm9, %vm839_vm5 }
 0x184   :  { %v761_v8 = vmul.f32 %v1287_v33, %v760_v16  ;;  %v756_v25 = vsel %vm753_vm14, %v755_v13, %v751_v30  ;;  %1298 = vrcp.f32 %v2100_v59  ;;  %v918_v31 = vsel %vm104_vm0, %v898_v21, 0.0 }
 0x185   :  { %v899_v1 = vmul.f32 %v756_v25, %v1937_v27  ;;  %v917_v37 = vadd.f32 %v916_v57, %v915_v22  ;;  %1300 = vrcp.f32 %v2105_v60  ;;  %vm768_vm4 = vcmp.eq.f32.partialorder %v767_v39, 8.507059e+37 }
 0x186   :  { %v762_v29 = vadd.f32 %v1287_v33, %v761_v8  ;;  %v1297_v46 = vpop.eup %1296  ;;  %v931_v0 = vmul.f32 64.0, %v2111_v2  ;;  %v830_v27 = vor.u32 1.1754944e-38, %v829_v11  ;;  %v2165_v51 = vor.u32 1.1754944e-38, %v844_v42 }
 0x187   :  { %v920_v34 = vsel %vm104_vm0, %v899_v1, 0.0  ;;  %v919_v50 = vadd.f32 %v918_v31, %v917_v37  ;;  %v2139_v52 = vadd.f32 1.0, %v1297_v46  ;;  %v864_v55 = vmul.f32 %v2108_v56, %v2069_v40 }
 0x188   :  { %v766_v36 = vsel %vm765_vm2, %v1287_v33, %v762_v29  ;;  %v816_v33 = vsel %vm2092_vm11, %v1925_v14, %v811_v18  ;;  %v831_v49 = vsel %vm828_vm6, %v830_v27, %v826_v5  ;;  %v850_v14 = vsub.f32 1.0, %v849_v3 }
 0x189   :  { %v771_v44 = vsel %vm768_vm4, %v770_v19, %v766_v36  ;;  %v921_v10 = vadd.f32 %v920_v34, %v919_v50  ;;  %1302 = vrcp.f32 %v2139_v52  ;;  %v932_v11 = vsub.f32 1.0, %v931_v0  ;;  %vm2229_vm4 = vmor %vm853_vm7, %vm854_vm10 }
 0x18a   :  { %v900_v54 = vmul.f32 %v771_v44, %v1956_v48  ;;  %v2144_v62 = vpop.eup %1298  ;;  %v2161_v7 = vmul.f32 %v816_v33, %v1825_v9  ;;  %v842_v5 = vand.u32 2147483647, %v2015_v35  ;;  %v2170_v57 = vmul.f32 %v831_v49, %v1839_v20 }
 0x18b   :  { %v774_v48 = vmul.f32 %v2144_v62, %v2100_v59  ;;  %v2158_v12 = vpop.eup %1300  ;;  %v836_v21 = vmul.f32 %v2077_v23, %v835_v6  ;;  %v851_v63 = vmul.f32 %v2080_v17, %v850_v14  ;;  %v933_v13 = vmul.f32 %v2111_v2, %v932_v11 }
 0x18c   :  { %v922_v18 = vsel %vm104_vm0, %v900_v54, 0.0  ;;  %v879_v16 = vmul.f32 %v2158_v12, %v2105_v60  ;;  %v857_v20 = vand.u32 2147483647, %v2028_v45  ;;  %v859_v53 = vand.u32 2147483648, %v2028_v45 }
 0x18d   :  { %v923_v38 = vadd.f32 %v922_v18, %v921_v10  ;;  %v775_v4 = vsub.f32 1.0, %v774_v48  ;;  %vm779_vm8 = vweird.f32 %v2144_v62  ;;  %v865_v39 = vsub.f32 1.0, %v864_v55 }
 0x18e   :  { %v782_v24 = vand.u32 2147483647, %v2100_v59  ;;  %v784_v25 = vand.u32 2147483648, %v2100_v59  ;;  %v837_v31 = vadd.f32 %v2077_v23, %v836_v21  ;;  %vm778_vm3 = vweird.f32 %v2100_v59 }
 0x18f   :  { %v924_v9 = vrot.slane %v923_v38, 4  ;;  %v776_v32 = vmul.f32 %v2144_v62, %v775_v4  ;;  %v1303_v8 = vpop.eup %1302  ;;  %v852_v46 = vadd.f32 %v2080_v17, %v851_v63  ;;  %v880_v37 = vsub.f32 1.0, %v879_v16  ;;  %vm2191_vm11 = vmor %vm778_vm3, %vm779_vm8 }
 0x190   :  { %v789_v29 = vmul.f32 %v1303_v8, %v2139_v52  ;;  %v934_v19 = vadd.f32 %v2111_v2, %v933_v13  ;;  %vm2196_vm12 = vcmp.eq.f32.partialorder %v842_v5, 8.507059e+37  ;;  %vm935_vm13 = vweird.f32 %v2111_v2 }
 0x191   :  { %v925_v30 = vadd.f32 %v924_v9, %v923_v38  ;;  %v777_v22 = vadd.f32 %v2144_v62, %v776_v32  ;;  %v866_v27 = vmul.f32 %v2108_v56, %v865_v39  ;;  %vm783_vm14 = vcmp.eq.f32.partialorder %v782_v24, 8.507059e+37 }
 0x192   :  { %v790_v0 = vsub.f32 1.0, %v789_v29  ;;  %v785_v50 = vor.u32 1.1754944e-38, %v784_v25  ;;  %v799_v44 = vand.u32 2147483648, %v2139_v52  ;;  %vm794_vm1 = vweird.f32 %v1303_v8 }
 0x193   :  { %v926_v1 = vrot.slane %v925_v30, 2  ;;  %v781_v59 = vsel %vm2191_vm11, %v2144_v62, %v777_v22  ;;  %v797_v47 = vand.u32 2147483647, %v2139_v52  ;;  %v841_v62 = vsel %vm2210_vm15, %v2077_v23, %v837_v31 }
 0x194   :  { %v791_v54 = vmul.f32 %v1303_v8, %v790_v0  ;;  %vm2218_vm2 = vcmp.eq.f32.partialorder %v857_v20, 8.507059e+37  ;;  %v786_v6 = vsel %vm783_vm14, %v785_v50, %v781_v59  ;;  %v2223_v35 = vsel %vm935_vm13, %v2111_v2, %v934_v19 }
 0x195   :  { %v927_v36 = vadd.f32 %v926_v1, %v925_v30  ;;  %v881_v10 = vmul.f32 %v2158_v12, %v880_v37  ;;  %vm793_vm6 = vweird.f32 %v2139_v52  ;;  %v856_v48 = vsel %vm2229_vm4, %v2080_v17, %v852_v46 }
 0x196   :  { %v792_v18 = vadd.f32 %v1303_v8, %v791_v54  ;;  %v867_v2 = vadd.f32 %v2108_v56, %v866_v27  ;;  %vm869_vm9 = vweird.f32 %v2108_v56  ;;  %vm795_vm5 = vmor %vm793_vm6, %vm794_vm1  ;;  %v800_v45 = vor.u32 1.1754944e-38, %v799_v44 }
 0x197   :  { %v928_v42 = vrot.slane %v927_v36, 1  ;;  %v901_v11 = vmul.f32 %v786_v6, %v2019_v26  ;;  %vm798_vm7 = vcmp.eq.f32.partialorder %v797_v47, 8.507059e+37  ;;  %vm868_vm8 = vweird.f32 %v2069_v40  ;;  %v1001_v47 = vld [vmem:[%s2300_s6] sm:$0x1] }
 0x198   :  { %v796_v58 = vsel %vm795_vm5, %v1303_v8, %v792_v18  ;;  %v872_v52 = vand.u32 2147483647, %v2069_v40  ;;  %v874_v5 = vand.u32 2147483648, %v2069_v40  ;;  %v882_v17 = vadd.f32 %v2158_v12, %v881_v10  ;;  %vm2253_vm10 = vmor %vm868_vm8, %vm869_vm9 }
 0x199   :  { %v929_v23 = vadd.f32 %v928_v42, %v927_v36  ;;  %v801_v55 = vsel %vm798_vm7, %v800_v45, %v796_v58  ;;  %vm884_vm3 = vweird.f32 %v2158_v12  ;;  %v846_v26 = vsel %vm2196_vm12, %v2165_v51, %v841_v62 }
 0x19a   :  { %v902_v4 = vmul.f32 %v801_v55, %v2075_v28  ;;  %v860_v9 = vor.u32 1.1754944e-38, %v859_v53  ;;  %vm883_vm11 = vweird.f32 %v2105_v60  ;;  %v889_v40 = vand.u32 2147483648, %v2105_v60 }
 0x19b   :  { %v937_v38 = vmul.f32 %v2223_v35, %v929_v23  ;;  %v871_v28 = vsel %vm2253_vm10, %v2108_v56, %v867_v2  ;;  %v887_v16 = vand.u32 2147483647, %v2105_v60  ;;  %v974_v32 = vsel %vm104_vm0, %v901_v11, 0.0  ;;  %vm885_vm12 = vmor %vm883_vm11, %vm884_vm3 }
 0x19c   :  { %v975_v51 = vsel %vm104_vm0, %v902_v4, 0.0  ;;  %v861_v13 = vsel %vm2218_vm2, %v860_v9, %v856_v48  ;;  %v875_v20 = vor.u32 1.1754944e-38, %v874_v5  ;;  %v977_v30 = vsel %vm104_vm0, %v2161_v7, 0.0 }
 0x19d   :  { %v938_v21 = vpack.c.bf16 %v937_v38, %v937_v38  ;;  %v976_v53 = vadd.f32 %v975_v51, %v974_v32  ;;  %v905_v56 = vmul.f32 %v846_v26, %v1898_v61  ;;  %vm873_vm13 = vcmp.eq.f32.partialorder %v872_v52, 8.507059e+37 }
 0x19e   :  { %v886_v60 = vsel %vm885_vm12, %v2158_v12, %v882_v17  ;;  %v876_v8 = vsel %vm873_vm13, %v875_v20, %v871_v28  ;;  %v890_v39 = vor.u32 1.1754944e-38, %v889_v40  ;;  %v979_v24 = vsel %vm104_vm0, %v2170_v57, 0.0 }
 0x19f   :  { %1143 = vmatmul.msk.bf16.vlgmr.msrb.gmra.mxu2 %vm104_vm0, %v938_v21  ;;  %v978_v22 = vadd.f32 %v977_v30, %v976_v53  ;;  %v906_v25 = vmul.f32 %v861_v13, %v1920_v43  ;;  %vm888_vm14 = vcmp.eq.f32.partialorder %v887_v16, 8.507059e+37  ;;  %v981_v29 = vsel %vm104_vm0, %v905_v56, 0.0 }
 0x1a0   :  { %v891_v31 = vsel %vm888_vm14, %v890_v39, %v886_v60  ;;  %v907_v7 = vmul.f32 %v876_v8, %v1953_v15  ;;  %vm972_vm15 = vcmask 516096  }
 0x1a1   :  { %v980_v1 = vadd.f32 %v979_v24, %v978_v22  ;;  %v983_v61 = vsel %vm104_vm0, %v906_v25, 0.0  ;;  %v908_v12 = vmul.f32 %v891_v31, %v2012_v41  ;;  %v943_v41 = vld [vmem:[%s2300_s6] sm:$0x1] }
 0x1a2   :  { %v985_v3 = vsel %vm104_vm0, %v907_v7, 0.0 }
 0x1a3   :  { %v982_v46 = vadd.f32 %v981_v29, %v980_v1  ;;  %v987_v57 = vsel %vm104_vm0, %v908_v12, 0.0 }
 0x1a5   :  { %v984_v37 = vadd.f32 %v983_v61, %v982_v46 }
 0x1a7   :  { %v986_v19 = vadd.f32 %v985_v3, %v984_v37 }
 0x1a9   :  { %v988_v34 = vadd.f32 %v987_v57, %v986_v19 }
 0x1ab   :  { %v989_v43 = vrot.slane %v988_v34, 4 }
 0x1ad   :  { %v990_v36 = vadd.f32 %v989_v43, %v988_v34 }
 0x1af   :  { %v991_v59 = vrot.slane %v990_v36, 2 }
 0x1b1   :  { %v992_v0 = vadd.f32 %v991_v59, %v990_v36 }
 0x1b3   :  { %v993_v27 = vrot.slane %v992_v0, 1 }
 0x1b5   :  { %v994_v50 = vadd.f32 %v993_v27, %v992_v0 }
 0x1b7   :  { %v995_v15 = vmul.f32 %v994_v50, %v2223_v35 }
 0x1b9   :  { %v996_v44 = vpack.c.bf16 %v995_v15, %v995_v15 }
 0x1bb   :  { %1152 = vmatmul.msk.bf16.vlgmr.msrb.gmra.mxu3 %vm104_vm0, %v996_v44 }
 0x222   :  { %v968_v33 = vpop.f32.mrf.mxu2 }
 0x223   :  { %v969_v42 = vadd.f32 %v968_v33, %v943_v41 }
 0x225   :  { %973 = vst.msk [vmem:[#allocation2] sm:$0x1] %vm972_vm15, %v969_v42 }
 0x22a   :  { %v970_v54 = vpop.f32.mrf.mxu2 }
 0x23e   :  { %v1026_v62 = vpop.f32.mrf.mxu3 }
 0x23f   :  { %v1027_v49 = vadd.f32 %v1026_v62, %v1001_v47 }
 0x241   :  { %1030 = vst.msk [vmem:[#allocation2 + $0x1] sm:$0x1] %vm972_vm15, %v1027_v49 }
 0x242   :  { %1041 = dma.vmem_to_hbm [thread:$0]  %s1037_s1, 32, %s1039_s13, [#allocation3]  }
 0x246   :  { %v1028_v6 = vpop.f32.mrf.mxu3 }
 0x247   :  { %1328 = dma.done.wait [#allocation3], 32  }
 0x248   :  { %1329 = vsyncadd [#allocation3], 4294967264 }
 0x249   :  { %1046 = vsyncpa [#allocation3], 1 }

// kernel: clip_forward.3
= control target key start
LH: loop header
LB: loop body
LE: loop exit
PB: predicated region body
PF: predicated region fallthrough
CT: control target
= control target key end

     0   :  { %s2355_s0 = inlined_call_operand.vmem [shape: f32[2,8], index: 0, kind: input, shape index: {}]   ;;  %s2356_s1 = inlined_call_operand.vmem [shape: f32[16,32], index: 1, kind: input, shape index: {}]   ;;  %s2357_s2 = inlined_call_operand.vmem [shape: f32[2,32], index: 2, kind: input, shape index: {}]   ;;  %s2358_s3 = inlined_call_operand.vmem [shape: bf16[2,32,96], index: 3, kind: input, shape index: {}]   ;;  %s2359_s4 = inlined_call_operand.vmem [shape: f32[2,1,96], index: 4, kind: input, shape index: {}]   ;;  %s2360_s5 = inlined_call_operand.vmem [shape: bf16[2,32,32], index: 5, kind: input, shape index: {}]   ;;  %s2361_s6 = inlined_call_operand.vmem [shape: f32[2,1,32], index: 6, kind: input, shape index: {}]   ;;  %s2362_s7 = inlined_call_operand.vmem [shape: f32[2,2,32], index: 7, kind: input, shape index: {}]   ;;  %s2363_s8 = inlined_call_operand.vmem [shape: bf16[2,32,64], index: 8, kind: input, shape index: {}]   ;;  %s2364_s9 = inlined_call_operand.vmem [shape: f32[2,1,64], index: 9, kind: input, shape index: {}]   ;;  %s2365_s10 = inlined_call_operand.vmem [shape: bf16[2,64,32], index: 10, kind: input, shape index: {}]   ;;  %s2366_s11 = inlined_call_operand.vmem [shape: f32[2,1,32], index: 11, kind: input, shape index: {}]   ;;  %s2367_s12 = inlined_call_operand.vmem [shape: f32[2,2,32], index: 12, kind: input, shape index: {}]   ;;  %s2368_s13 = inlined_call_operand.vmem [shape: bf16[32,64], index: 13, kind: input, shape index: {}]   ;;  %s2369_s14 = inlined_call_operand.vmem [shape: f32[1,64], index: 14, kind: input, shape index: {}]   ;;  %s2370_s15 = inlined_call_operand.hbm [shape: f32[2,64], index: 15, kind: output, shape index: {}]  }
   0x1   :  { %2374 = sst [smem:[#allocation10_spill]] %s2358_s3 }
   0x2   :  { %2375 = sst [smem:[#allocation11_spill]] %s2360_s5 }
   0x3   :  { %2376 = sst [smem:[#allocation12_spill]] %s2362_s7 }
   0x4   :  { %2377 = sst [smem:[#allocation13_spill]] %s2368_s13 }
   0x5   :  { %2378 = sst [smem:[#allocation14_spill]] %s2369_s14 }
   0x6   :  { %2379 = sst [smem:[#allocation15_spill]] %s2370_s15 }
   0x7   :  { %20 = vsyncpa [#allocation6], 0  ;;  %s2066_s18 = smov 0  }
   0x8 LB: > { %2380 = sst [smem:[#allocation8_spill]] %s1967_s18  ;;  %s2072_s19 = sadd.s32 4294967295, %s1967_s18   ;;  %s1967_s18 = sphi %s2066_s18, %s26_s18  }
   0x9   : > { %p1733_p0 = scmp.ge.s32.totalorder %s1967_s18, 1  ;;  %p513_p1 = scmp.lt.s32.totalorder %s1967_s18, 3 }
   0xb   : > { %p514_p2 = pnand %p1733_p0, %p513_p1 }
   0xd   : > { %517 = sbr.rel (%p514_p2) target bundleno = 2463 (0x99f), region = 80 }
  0x12   : > { %p591_p3 = scmp.lt.s32.totalorder %s2072_s19, 1  ;;  %s2381_s3 = sld [smem:[#allocation10_spill]] }
  0x13   : > { %s2382_s5 = sld [smem:[#allocation11_spill]]  ;;  %p1744_p4 = scmp.ne.s32.totalorder %s2072_s19, 0 }
  0x14   : > { %s2078_s20 = scalar_select %p591_p3, %s2072_s19, 1 }
  0x15   : > { %s2384_s7 = sld [smem:[#allocation12_spill]] }
  0x16   : > { %s1819_s21 = sshll.u32 %s2078_s20, 4  ;;  %s1738_s15 = sshll.u32 %s2078_s20, 1 }
  0x17   : > { %s2108_s25 = scalar_lea.vmem %s2363_s8, %s1819_s21  ;;  %s618_s28 = scalar_lea.vmem %s2364_s9, %s2078_s20 }
  0x18   : > { %s2088_s27 = scalar_lea.vmem %s2381_s3, %s1819_s21  ;;  %s1822_s29 = sshll.u32 %s2078_s20, 5 }
  0x19   : > { %s2093_s30 = scalar_lea.vmem %s2382_s5, %s1819_s21  ;;  %s2118_s16 = scalar_lea.vmem %s2365_s10, %s1822_s29 }
  0x1a   : > { %2383 = sst [smem:[#allocation9_spill]] %s2093_s30  ;;  %s626_s13 = scalar_lea.vmem %s2366_s11, %s2078_s20 }
  0x1b   : > { %s2103_s22 = scalar_lea.vmem %s2384_s7, %s1738_s15  ;;  %s2127_s24 = scalar_lea.vmem %s2367_s12, %s1738_s15 }
  0x1c   : > { %635 = sbr.rel (%p1744_p4) target bundleno = 311 (0x137), region = 84 }
  0x21   : > { %v636_v0 = vld [vmem:[%s2356_s1] sm:$0xff]  ;;  %vm638_vm0 = vcmask 261120   ;;  %v637_v2 = vld [vmem:[%s2356_s1 + $0x8] sm:$0xff]  ;;  %v1969_v4 = vmov 32.0  }
  0x22   : > { %v639_v1 = vsel %vm638_vm0, %v636_v0, 0.0  ;;  %v642_v3 = vsel %vm638_vm0, %v637_v2, 0.0  ;;  %1868 = vrcp.f32 %v1969_v4  ;;  %v1866_v35 = vld [vmem:[%s2357_s2] ss:$0 sm:$0xff]  ;;  %v1867_v38 = vld [vmem:[%s2357_s2 + $0x1] ss:$0 sm:$0xff] }
  0x23   : > { %640 = vadd.xlane.f32.xlu0 %v639_v1 }
  0x28   : > { %v1869_v5 = vpop.eup %1868 }
  0x29   : > { %v646_v6 = vmul.f32 32.0, %v1869_v5  ;;  %vm650_vm1 = vweird.f32 %v1869_v5 }
  0x2b   : > { %643 = vadd.xlane.f32.xlu0 %v642_v3  ;;  %v647_v7 = vsub.f32 1.0, %v646_v6 }
  0x2d   : > { %v648_v8 = vmul.f32 %v1869_v5, %v647_v7 }
  0x2f   : > { %v649_v9 = vadd.f32 %v1869_v5, %v648_v8 }
  0x31   : > { %v651_v10 = vsel %vm650_vm1, %v1869_v5, %v649_v9 }
  0x96   : > { %v641_v11 = vpop.xlane.xlu0 %640 }
  0x97   : > { %v652_v12 = vmul.f32 %v651_v10, %v641_v11 }
  0x99   : > { %v654_v13 = vsub.f32 %v636_v0, %v652_v12 }
  0x9b   : > { %v656_v14 = vmul.f32 %v654_v13, %v654_v13 }
  0x9d   : > { %v658_v15 = vsel %vm638_vm0, %v656_v14, 0.0 }
  0x9e   : > { %659 = vadd.xlane.f32.xlu1 %v658_v15  ;;  %v644_v16 = vpop.xlane.xlu0 %643 }
  0x9f   : > { %v653_v17 = vmul.f32 %v651_v10, %v644_v16 }
  0xa1   : > { %v655_v18 = vsub.f32 %v637_v2, %v653_v17 }
  0xa3   : > { %v657_v19 = vmul.f32 %v655_v18, %v655_v18 }
  0xa5   : > { %v661_v20 = vsel %vm638_vm0, %v657_v19, 0.0 }
  0xa6   : > { %662 = vadd.xlane.f32.xlu1 %v661_v20 }
 0x111   : > { %v660_v21 = vpop.xlane.xlu1 %659 }
 0x112   : > { %v664_v22 = vmul.f32 %v660_v21, %v651_v10 }
 0x114   : > { %v666_v23 = vadd.f32 1e-05, %v664_v22 }
 0x116   : > { %1870 = vrsqrt.f32 %v666_v23  ;;  %vm674_vm3 = vweird.f32 %v666_v23 }
 0x119   : > { %v663_v24 = vpop.xlane.xlu1 %662 }
 0x11a   : > { %v665_v25 = vmul.f32 %v663_v24, %v651_v10 }
 0x11c   : > { %v1871_v26 = vpop.eup %1870  ;;  %v667_v27 = vadd.f32 1e-05, %v665_v25 }
 0x11d   : > { %v669_v28 = vmul.f32 %v1871_v26, %v666_v23  ;;  %vm675_vm2 = vweird.f32 %v1871_v26 }
 0x11e   : > { %1872 = vrsqrt.f32 %v667_v27  ;;  %vm676_vm4 = vmor %vm674_vm3, %vm675_vm2  ;;  %vm684_vm6 = vweird.f32 %v667_v27 }
 0x11f   : > { %v670_v29 = vmul.f32 %v1871_v26, %v669_v28 }
 0x121   : > { %v671_v30 = vmul.f32 0.5, %v670_v29 }
 0x123   : > { %v672_v31 = vsub.f32 1.5, %v671_v30 }
 0x124   : > { %v1873_v32 = vpop.eup %1872 }
 0x125   : > { %v673_v33 = vmul.f32 %v1871_v26, %v672_v31  ;;  %v679_v34 = vmul.f32 %v1873_v32, %v667_v27  ;;  %vm685_vm5 = vweird.f32 %v1873_v32 }
 0x126   : > { %vm686_vm7 = vmor %vm684_vm6, %vm685_vm5 }
 0x127   : > { %v677_v36 = vsel %vm676_vm4, %v1871_v26, %v673_v33  ;;  %v680_v37 = vmul.f32 %v1873_v32, %v679_v34 }
 0x128   : > { %v688_v39 = vmul.f32 %v677_v36, %v654_v13 }
 0x129   : > { %v681_v40 = vmul.f32 0.5, %v680_v37 }
 0x12a   : > { %v692_v41 = vmul.f32 %v1866_v35, %v688_v39 }
 0x12b   : > { %v682_v42 = vsub.f32 1.5, %v681_v40 }
 0x12c   : > { %v696_v43 = vadd.f32 %v1867_v38, %v692_v41 }
 0x12d   : > { %v683_v44 = vmul.f32 %v1873_v32, %v682_v42 }
 0x12e   : > { %698 = vst.msk [vmem:[#allocation2] sm:$0xff] %vm638_vm0, %v696_v43 }
 0x12f   : > { %v687_v45 = vsel %vm686_vm7, %v1873_v32, %v683_v44 }
 0x130   : > { %v689_v46 = vmul.f32 %v687_v45, %v655_v18 }
 0x132   : > { %v693_v47 = vmul.f32 %v1866_v35, %v689_v46 }
 0x134   : > { %v697_v48 = vadd.f32 %v1867_v38, %v693_v47 }
 0x136   : > { %699 = vst.msk [vmem:[#allocation2 + $0x8] sm:$0xff] %vm638_vm0, %v697_v48 }
 0x137 PF: > { %v1824_v49 = vld [vmem:[%s2088_s27 + $0x8] sm:$0xff]  ;;  %v1823_v50 = vld [vmem:[%s2088_s27] sm:$0xff]  ;;  %vm723_vm8 = vcmask 261120   ;;  %s2385_s17 = scalar_lea.vmem %s2359_s4, %s2078_s20  ;;  %vm741_vm9 = vcmask 785408   ;;  %s1970_s27 = smov 104   ;;  %vm752_vm10 = vcmask 64512  }
 0x138   : > { %v2150_v51 = vld [vmem:[#allocation2] sm:$0xff]  ;;  %733 = vmatpush.bf16.msra.mxu0 %v1824_v49  ;;  %s1971_s14 = smov 120   ;;  %s1972_s3 = smov 96   ;;  %vm792_vm11 = vcmask 1043456   ;;  %vm875_vm12 = vcmask 130112   ;;  %vm942_vm13 = vcmask 195712  }
 0x139   : > { %v1874_v54 = vld [vmem:[%s2385_s17] ss:$0 sm:$0xff]  ;;  %s1973_s21 = smov 80   ;;  %s1974_s5 = smov 72   ;;  %v1011_v34 = vld [vmem:[%s2355_s0 + $0x1] sm:$0x1] }
 0x13a   : > { %s1975_s30 = smov 88   ;;  %s1976_s7 = smov 112   ;;  %v744_v21 = vld [vmem:[%s2355_s0] sm:$0x1]  ;;  %v1012_v38 = vsub.f32 1.0, %v1011_v34  ;;  %vm1009_vm14 = vcmask 261312  }
 0x13b   : > { %s1977_s15 = smov 56   ;;  %v745_v22 = vsub.f32 1.0, %v744_v21  ;;  %s1978_s17 = smov 64   ;;  %vm1467_vm6 = vcmask 523264  }
 0x13c   : > { %734 = vmatpush.bf16.msra.mxu0 %v1823_v50  ;;  %v1013_v41 = vmul.f32 -1e+09, %v1012_v38  ;;  %s2387_s18 = scalar_lea.vmem %s2361_s6, %s2078_s20  ;;  %p1805_p5 = scmp.ne.s32.totalorder %s2072_s19, 1 }
 0x13d   : > { %v2152_v52 = vld [vmem:[#allocation2 + $0x8] sm:$0xff]  ;;  %v746_v23 = vmul.f32 -1e+09, %v745_v22 }
 0x13e   : > { %v702_v53 = vpack.c.bf16 %v2152_v52, %v2150_v51  ;;  %v1039_v43 = vperm.slane %v1013_v41, 0 }
 0x13f   : > { %v773_v24 = vperm.slane %v746_v23, 0 }
 0x140   : > { %1753 = vmatmul.msk.bf16.vlgmr.msra.gmra.mxu0 %vm723_vm8, %v702_v53 }
 0x1bd   : > { %v736_v55 = vpop.f32.mrf.mxu0 }
 0x1be   : > { %v737_v56 = vadd.f32 %v1874_v54, %v736_v55 }
 0x1c0   : > { %742 = vst.msk [vmem:[#allocation3] sm:$0xff] %vm741_vm9, %v737_v56 }
 0x1c5   : > { %v738_v57 = vpop.f32.mrf.mxu0 }
 0x1c6   : > { %v739_v58 = vadd.f32 %v1874_v54, %v738_v57 }
 0x1c7   : > { %v944_v59 = vld [vmem:[#allocation3] sm:$0xff] }
 0x1c8   : > { %743 = vst.msk [vmem:[#allocation3 + $0x8] sm:$0xff] %vm741_vm9, %v739_v58  ;;  %v2162_v60 = vpack.c.bf16 %v944_v59, %v944_v59 }
 0x1ca   : > { %947 = vrot.lane.b32.xlu2 %v2162_v60, %s1970_s27  ;;  %813 = vrot.lane.b32.xlu1 %v2162_v60, %s1971_s14 }
 0x1cb   : > { %750 = vrot.lane.b32.xlu0 %v2162_v60, %s1972_s3 }
 0x1cf   : > { %v1075_v61 = vld [vmem:[#allocation3 + $0x8] sm:$0xff] }
 0x1d0   : > { %v2170_v62 = vpack.c.bf16 %v1075_v61, %v1075_v61 }
 0x1d2   : > { %882 = vrot.lane.b32.xlu2 %v2162_v60, %s1973_s21  ;;  %949 = vrot.lane.b32.xlu1 %v2162_v60, %s1974_s5 }
 0x1d3   : > { %815 = vrot.lane.b32.xlu0 %v2162_v60, %s1975_s30 }
 0x1da   : > { %1078 = vrot.lane.b32.xlu2 %v2170_v62, %s1971_s14  ;;  %880 = vrot.lane.b32.xlu1 %v2162_v60, %s1976_s7  ;;  %s1980_s14 = smov 40  }
 0x1db   : > { %1080 = vrot.lane.b32.xlu0 %v2170_v62, %s1975_s30  ;;  %s2386_s30 = sld [smem:[#allocation9_spill]] }
 0x1e2   : > { %1210 = vrot.lane.b32.xlu2 %v2170_v62, %s1970_s27  ;;  %1212 = vrot.lane.b32.xlu1 %v2170_v62, %s1974_s5  ;;  %s1979_s27 = smov 48   ;;  %s1983_s5 = smov 24  }
 0x1e3   : > { %1017 = vrot.lane.b32.xlu0 %v2170_v62, %s1972_s3  ;;  %s1981_s3 = smov 16  }
 0x1ea   : > { %1144 = vrot.lane.b32.xlu1 %v2170_v62, %s1976_s7 }
 0x1eb   : > { %1146 = vrot.lane.b32.xlu0 %v2170_v62, %s1973_s21  ;;  %s1982_s21 = smov 8  }
 0x1f2   : > { %850 = vrot.lane.b32.xlu1 %v2162_v60, %s1977_s15 }
 0x224   : > { %v948_v63 = vpop.permute.xlu2 %947 }
 0x22c   : > { %v883_v0 = vpop.permute.xlu2 %882 }
 0x22d   : > { %v888_v1 = vsel %vm752_vm10, %v883_v0, 0 }
 0x22e   : > { %897 = vmatpush.bf16.xpose.msrb.mxu0 %v888_v1 }
 0x234   : > { %v1079_v18 = vpop.permute.xlu2 %1078 }
 0x23c   : > { %v814_v2 = vpop.permute.xlu1 %813  ;;  %v1211_v20 = vpop.permute.xlu2 %1210 }
 0x23d   : > { %v751_v3 = vpop.permute.xlu0 %750 }
 0x23e   : > { %v757_v4 = vsel %vm752_vm10, %v751_v3, 0 }
 0x23f   : > { %766 = vmatpush.bf16.xpose.msra.mxu1 %v757_v4 }
 0x244   : > { %v950_v5 = vpop.permute.xlu1 %949 }
 0x245   : > { %v816_v6 = vpop.permute.xlu0 %815  ;;  %v955_v7 = vsel %vm752_vm10, %v950_v5, 0 }
 0x246   : > { %1754 = vmatmul.msk.bf16.vlgmr.msra.gmra.mxu1 %vm752_vm10, %v2162_v60  ;;  %v821_v8 = vsel %vm752_vm10, %v816_v6, 0 }
 0x247   : > { %830 = vmatpush.bf16.xpose.msra.mxu3 %v821_v8 }
 0x24c   : > { %v881_v9 = vpop.permute.xlu1 %880 }
 0x24d   : > { %v1081_v10 = vpop.permute.xlu0 %1080  ;;  %1758 = vmatmul.msk.bf16.vlgmr.msrb.gmra.mxu0 %vm752_vm10, %v881_v9 }
 0x24e   : > { %v1086_v11 = vsel %vm752_vm10, %v1081_v10, 0  ;;  %1756 = vmatmul.msk.bf16.vlgmr.msra.gmra.mxu3 %vm752_vm10, %v814_v2 }
 0x24f   : > { %964 = vmatpush.bf16.xpose.msrb.mxu3 %v955_v7 }
 0x254   : > { %v1213_v14 = vpop.permute.xlu1 %1212 }
 0x255   : > { %v1018_v12 = vpop.permute.xlu0 %1017  ;;  %v1218_v16 = vsel %vm752_vm10, %v1213_v14, 0 }
 0x256   : > { %v1023_v13 = vsel %vm752_vm10, %v1018_v12, 0 }
 0x257   : > { %1095 = vmatpush.bf16.xpose.msra.mxu3 %v1086_v11  ;;  %1032 = vmatpush.bf16.xpose.msra.mxu0 %v1023_v13 }
 0x25c   : > { %v1145_v19 = vpop.permute.xlu1 %1144 }
 0x25d   : > { %v1147_v15 = vpop.permute.xlu0 %1146 }
 0x25e   : > { %v1152_v17 = vsel %vm752_vm10, %v1147_v15, 0  ;;  %1760 = vmatmul.msk.bf16.vlgmr.msrb.gmra.mxu3 %vm752_vm10, %v948_v63  ;;  %1762 = vmatmul.msk.bf16.vlgmr.msra.gmra.mxu0 %vm752_vm10, %v2170_v62 }
 0x25f   : > { %1227 = vmatpush.bf16.xpose.msrb.mxu3 %v1218_v16  ;;  %1161 = vmatpush.bf16.xpose.msrb.mxu0 %v1152_v17 }
 0x26e   : > { %1764 = vmatmul.msk.bf16.vlgmr.msra.gmra.mxu3 %vm752_vm10, %v1079_v18  ;;  %1766 = vmatmul.msk.bf16.vlgmr.msrb.gmra.mxu0 %vm752_vm10, %v1145_v19  ;;  %v851_v18 = vpop.permute.xlu1 %850 }
 0x26f   : > { %v856_v23 = vsel %vm792_vm11, %v851_v18, 0 }
 0x27e   : > { %1768 = vmatmul.msk.bf16.vlgmr.msrb.gmra.mxu3 %vm752_vm10, %v1211_v20 }
 0x2c3   : > { %v768_v25 = vpop.f32.mrf.mxu1 }
 0x2c4   : > { %v772_v26 = vmul.f32 0.35355338, %v768_v25 }
 0x2c6   : > { %v774_v27 = vadd.f32 %v773_v24, %v772_v26 }
 0x2c8   : > { %v775_v28 = vsel %vm752_vm10, %v774_v27, -inf }
 0x2c9   : > { %776 = vmax.xlane.f32.xlu2 %v775_v28 }
 0x2ca   : > { %v899_v29 = vpop.f32.mrf.mxu0 }
 0x2cb   : > { %v770_v30 = vpop.f32.mrf.mxu1  ;;  %v903_v31 = vmul.f32 0.35355338, %v899_v29 }
 0x2cd   : > { %v904_v32 = vadd.f32 %v903_v31, %v773_v24 }
 0x2cf   : > { %v905_v33 = vsel %vm752_vm10, %v904_v32, -inf }
 0x2d1   : > { %906 = vmax.xlane.f32.xlu2 %v905_v33  ;;  %v832_v35 = vpop.f32.mrf.mxu3 }
 0x2d2   : > { %v836_v36 = vmul.f32 0.35355338, %v832_v35  ;;  %v901_v37 = vpop.f32.mrf.mxu0 }
 0x2d4   : > { %v837_v39 = vadd.f32 %v836_v36, %v773_v24 }
 0x2d6   : > { %v838_v40 = vsel %vm752_vm10, %v837_v39, -inf }
 0x2d7   : > { %839 = vmax.xlane.f32.xlu0 %v838_v40 }
 0x2d9   : > { %v834_v42 = vpop.f32.mrf.mxu3 }
 0x2db   : > { %v1034_v44 = vpop.f32.mrf.mxu0 }
 0x2dc   : > { %v1038_v45 = vmul.f32 0.35355338, %v1034_v44 }
 0x2de   : > { %v2209_v46 = vadd.f32 %v1039_v43, %v1038_v45 }
 0x2e0   : > { %v1041_v47 = vsel %vm752_vm10, %v2209_v46, -inf }
 0x2e1   : > { %v966_v48 = vpop.f32.mrf.mxu3  ;;  %1042 = vmax.xlane.f32.xlu1 %v1041_v47 }
 0x2e2   : > { %v970_v49 = vmul.f32 0.35355338, %v966_v48 }
 0x2e3   : > { %v1036_v50 = vpop.f32.mrf.mxu0 }
 0x2e4   : > { %v2213_v53 = vadd.f32 %v970_v49, %v773_v24 }
 0x2e6   : > { %v972_v54 = vsel %vm752_vm10, %v2213_v53, -inf }
 0x2e9   : > { %787 = vrot.lane.b32.xlu2 %v2162_v60, %s1978_s17  ;;  %v968_v55 = vpop.f32.mrf.mxu3  ;;  %973 = vmax.xlane.f32.xlu1 %v972_v54 }
 0x2eb   : > { %v1163_v56 = vpop.f32.mrf.mxu0 }
 0x2ec   : > { %v1167_v57 = vmul.f32 0.35355338, %v1163_v56 }
 0x2ee   : > { %v2219_v58 = vadd.f32 %v1167_v57, %v1039_v43 }
 0x2f0   : > { %v1169_v59 = vsel %vm752_vm10, %v2219_v58, -inf }
 0x2f1   : > { %v1097_v61 = vpop.f32.mrf.mxu3  ;;  %1170 = vmax.xlane.f32.xlu0 %v1169_v59 }
 0x2f2   : > { %v1101_v5 = vmul.f32 0.35355338, %v1097_v61 }
 0x2f3   : > { %v1165_v63 = vpop.f32.mrf.mxu0 }
 0x2f4   : > { %v1102_v7 = vadd.f32 %v1101_v5, %v1039_v43 }
 0x2f6   : > { %v1103_v8 = vsel %vm752_vm10, %v1102_v7, -inf }
 0x2f9   : > { %v1099_v0 = vpop.f32.mrf.mxu3 }
 0x301   : > { %v1229_v1 = vpop.f32.mrf.mxu3 }
 0x302   : > { %v1233_v2 = vmul.f32 0.35355338, %v1229_v1  ;;  %917 = vrot.lane.b32.xlu1 %v2162_v60, %s1979_s27 }
 0x304   : > { %v1234_v3 = vadd.f32 %v1233_v2, %v1039_v43 }
 0x306   : > { %v1235_v4 = vsel %vm752_vm10, %v1234_v3, -inf }
 0x307   : > { %1236 = vmax.xlane.f32.xlu0 %v1235_v4 }
 0x309   : > { %v1231_v6 = vpop.f32.mrf.mxu3 }
 0x312   : > { %1104 = vmax.xlane.f32.xlu2 %v1103_v8 }
 0x33c   : > { %v777_v9 = vpop.xlane.xlu2 %776 }
 0x33d   : > { %v778_v10 = vsub.f32 %v774_v27, %v777_v9 }
 0x33f   : > { %v779_v11 = vmul.f32 1.442695, %v778_v10 }
 0x341   : > { %1882 = vpow2.f32 %v779_v11 }
 0x344   : > { %v907_v12 = vpop.xlane.xlu2 %906 }
 0x345   : > { %v908_v13 = vsub.f32 %v904_v32, %v907_v12 }
 0x347   : > { %v2227_v14 = vpop.eup %1882  ;;  %v909_v15 = vmul.f32 1.442695, %v908_v13 }
 0x348   : > { %v781_v16 = vsel %vm752_vm10, %v2227_v14, 0.0 }
 0x349   : > { %1884 = vpow2.f32 %v909_v15  ;;  %782 = vadd.xlane.f32.xlu0 %v781_v16 }
 0x34a   : > { %v840_v17 = vpop.xlane.xlu0 %839 }
 0x34b   : > { %v841_v19 = vsub.f32 %v837_v39, %v840_v17 }
 0x34c   : > { %v788_v20 = vpop.permute.xlu2 %787 }
 0x34d   : > { %v842_v21 = vmul.f32 1.442695, %v841_v19  ;;  %v794_v22 = vsel %vm792_vm11, %v788_v20, 0 }
 0x34e   : > { %803 = vmatpush.bf16.msra.mxu2 %v794_v22 }
 0x34f   : > { %v2233_v24 = vpop.eup %1884  ;;  %1886 = vpow2.f32 %v842_v21 }
 0x350   : > { %v911_v25 = vsel %vm752_vm10, %v2233_v24, 0.0 }
 0x351   : > { %912 = vadd.xlane.f32.xlu2 %v911_v25 }
 0x352   : > { %865 = vmatpush.bf16.msrb.mxu2 %v856_v23 }
 0x354   : > { %v1043_v28 = vpop.xlane.xlu1 %1042 }
 0x355   : > { %v2237_v26 = vpop.eup %1886  ;;  %v1044_v31 = vsub.f32 %v2209_v46, %v1043_v28 }
 0x356   : > { %v844_v27 = vsel %vm752_vm10, %v2237_v26, 0.0 }
 0x357   : > { %845 = vadd.xlane.f32.xlu1 %v844_v27  ;;  %v1045_v33 = vmul.f32 1.442695, %v1044_v31 }
 0x359   : > { %1888 = vpow2.f32 %v1045_v33 }
 0x35c   : > { %v974_v29 = vpop.xlane.xlu1 %973 }
 0x35d   : > { %984 = vrot.lane.b32.xlu0 %v2162_v60, %s1980_s14  ;;  %v975_v35 = vsub.f32 %v2213_v53, %v974_v29 }
 0x35f   : > { %v976_v36 = vmul.f32 1.442695, %v975_v35  ;;  %v1889_v38 = vpop.eup %1888 }
 0x360   : > { %v1047_v42 = vsel %vm752_vm10, %v1889_v38, 0.0 }
 0x361   : > { %1890 = vpow2.f32 %v976_v36 }
 0x364   : > { %v1171_v34 = vpop.xlane.xlu0 %1170 }
 0x365   : > { %v1172_v60 = vsub.f32 %v2219_v58, %v1171_v34 }
 0x367   : > { %v1173_v39 = vmul.f32 1.442695, %v1172_v60  ;;  %v1891_v45 = vpop.eup %1890 }
 0x368   : > { %v978_v48 = vsel %vm752_vm10, %v1891_v45, 0.0 }
 0x369   : > { %1115 = vrot.lane.b32.xlu2 %v2170_v62, %s1977_s15  ;;  %1892 = vpow2.f32 %v1173_v39 }
 0x36f   : > { %v2252_v47 = vpop.eup %1892 }
 0x370   : > { %1053 = vrot.lane.b32.xlu1 %v2170_v62, %s1978_s17  ;;  %v1175_v49 = vsel %vm752_vm10, %v2252_v47, 0.0 }
 0x374   : > { %v918_v30 = vpop.permute.xlu1 %917 }
 0x375   : > { %v923_v32 = vsel %vm792_vm11, %v918_v30, 0 }
 0x376   : > { %932 = vmatpush.bf16.msrb.mxu1 %v923_v32 }
 0x37a   : > { %v1237_v37 = vpop.xlane.xlu0 %1236 }
 0x37b   : > { %v1238_v40 = vsub.f32 %v1234_v3, %v1237_v37 }
 0x37d   : > { %v1239_v44 = vmul.f32 1.442695, %v1238_v40 }
 0x37f   : > { %1894 = vpow2.f32 %v1239_v44 }
 0x385   : > { %v1105_v41 = vpop.xlane.xlu2 %1104  ;;  %v2257_v50 = vpop.eup %1894 }
 0x386   : > { %v1106_v43 = vsub.f32 %v1102_v7, %v1105_v41  ;;  %v1241_v54 = vsel %vm752_vm10, %v2257_v50, 0.0 }
 0x387   : > { %1048 = vadd.xlane.f32.xlu0 %v1047_v42 }
 0x388   : > { %v1107_v46 = vmul.f32 1.442695, %v1106_v43 }
 0x38a   : > { %1896 = vpow2.f32 %v1107_v46 }
 0x38f   : > { %979 = vadd.xlane.f32.xlu0 %v978_v48 }
 0x390   : > { %v1897_v53 = vpop.eup %1896 }
 0x391   : > { %v1109_v55 = vsel %vm752_vm10, %v1897_v53, 0.0 }
 0x392   : > { %1176 = vadd.xlane.f32.xlu2 %v1175_v49 }
 0x397   : > { %1242 = vadd.xlane.f32.xlu0 %v1241_v54 }
 0x39a   : > { %1110 = vadd.xlane.f32.xlu1 %v1109_v55  ;;  %v1826_v55 = vld [vmem:[%s2386_s30 + $0x8] sm:$0xff] }
 0x39b   : > { %1305 = vmatpush.bf16.msra.mxu0 %v1826_v55 }
 0x3ab   : > { %1247 = vrot.lane.b32.xlu0 %v2170_v62, %s1980_s14 }
 0x3b3   : > { %1181 = vrot.lane.b32.xlu1 %v2170_v62, %s1979_s27  ;;  %s2389_s27 = sld [smem:[#allocation14_spill]] (!%p1805_p5) }
 0x3bc   : > { %v783_v56 = vpop.xlane.xlu0 %782 }
 0x3bd   : > { %1898 = vrcp.f32 %v783_v56  ;;  %v1825_v56 = vld [vmem:[%s2386_s30] sm:$0xff] }
 0x3be   : > { %1306 = vmatpush.bf16.msra.mxu0 %v1825_v56  ;;  %v1832_v56 = vld [vmem:[%s2118_s16 + $0x18] sm:$0xff] }
 0x3bf   : > { %1475 = vmatpush.bf16.msra.mxu3 %v1832_v56 }
 0x3c3   : > { %v1899_v57 = vpop.eup %1898 }
 0x3c4   : > { %v913_v58 = vpop.xlane.xlu2 %912  ;;  %v785_v59 = vmul.f32 %v1899_v57, %v2227_v14 }
 0x3c5   : > { %1900 = vrcp.f32 %v913_v58 }
 0x3c6   : > { %v786_v61 = vpack.c.bf16 %v785_v59, %v785_v59 }
 0x3c8   : > { %1755 = vmatmul.msk.bf16.vlgmr.msra.gmra.mxu2 %vm752_vm10, %v786_v61 }
 0x3ca   : > { %v846_v63 = vpop.xlane.xlu1 %845 }
 0x3cb   : > { %v1901_v0 = vpop.eup %1900  ;;  %1902 = vrcp.f32 %v846_v63 }
 0x3cc   : > { %v915_v1 = vmul.f32 %v1901_v0, %v2233_v24  ;;  %v1116_v6 = vpop.permute.xlu2 %1115 }
 0x3cd   : > { %v1121_v8 = vsel %vm792_vm11, %v1116_v6, 0 }
 0x3ce   : > { %v916_v2 = vpack.c.bf16 %v915_v1, %v915_v1  ;;  %v1875_v1 = vld [vmem:[%s2387_s18] ss:$0 sm:$0xff] }
 0x3cf   : > { %v985_v3 = vpop.permute.xlu0 %984 }
 0x3d0   : > { %v990_v4 = vsel %vm792_vm11, %v985_v3, 0  ;;  %1759 = vmatmul.msk.bf16.vlgmr.msrb.gmra.mxu1 %vm752_vm10, %v916_v2 }
 0x3d1   : > { %v1903_v62 = vpop.eup %1902  ;;  %999 = vmatpush.bf16.msra.mxu2 %v990_v4 }
 0x3d2   : > { %v848_v5 = vmul.f32 %v1903_v62, %v2237_v26 }
 0x3d4   : > { %v849_v7 = vpack.c.bf16 %v848_v5, %v848_v5 }
 0x3d8   : > { %1757 = vmatmul.msk.bf16.vlgmr.msrb.gmra.mxu2 %vm752_vm10, %v849_v7 }
 0x3d9   : > { %1130 = vmatpush.bf16.msrb.mxu2 %v1121_v8 }
 0x3e2   : > { %v1054_v9 = vpop.permute.xlu1 %1053 }
 0x3e3   : > { %v1059_v10 = vsel %vm792_vm11, %v1054_v9, 0  ;;  %v1984_v9 = vmov 32.0  }
 0x3e4   : > { %1068 = vmatpush.bf16.msra.mxu1 %v1059_v10 }
 0x3fa   : > { %v1049_v11 = vpop.xlane.xlu0 %1048 }
 0x3fb   : > { %1904 = vrcp.f32 %v1049_v11 }
 0x401   : > { %v1905_v12 = vpop.eup %1904 }
 0x402   : > { %v1051_v13 = vmul.f32 %v1905_v12, %v1889_v38  ;;  %v980_v14 = vpop.xlane.xlu0 %979 }
 0x403   : > { %1906 = vrcp.f32 %v980_v14 }
 0x404   : > { %v1052_v15 = vpack.c.bf16 %v1051_v13, %v1051_v13 }
 0x405   : > { %v1177_v22 = vpop.xlane.xlu2 %1176 }
 0x406   : > { %1763 = vmatmul.msk.bf16.vlgmr.msra.gmra.mxu1 %vm752_vm10, %v1052_v15 }
 0x409   : > { %v1907_v16 = vpop.eup %1906 }
 0x40a   : > { %v982_v17 = vmul.f32 %v1907_v16, %v1891_v45  ;;  %v1243_v21 = vpop.xlane.xlu0 %1242 }
 0x40c   : > { %v983_v18 = vpack.c.bf16 %v982_v17, %v982_v17 }
 0x40d   : > { %v1111_v19 = vpop.xlane.xlu1 %1110 }
 0x40e   : > { %1761 = vmatmul.msk.bf16.vlgmr.msra.gmra.mxu2 %vm752_vm10, %v983_v18  ;;  %1908 = vrcp.f32 %v1111_v19 }
 0x40f   : > { %1910 = vrcp.f32 %v1177_v22 }
 0x410   : > { %1912 = vrcp.f32 %v1243_v21 }
 0x411   : > { %1914 = vrcp.f32 %v1984_v9 }
 0x414   : > { %v1909_v20 = vpop.eup %1908 }
 0x415   : > { %v1113_v23 = vmul.f32 %v1909_v20, %v1897_v53  ;;  %v1911_v27 = vpop.eup %1910 }
 0x416   : > { %v1179_v28 = vmul.f32 %v1911_v27, %v2252_v47  ;;  %v1913_v29 = vpop.eup %1912 }
 0x417   : > { %v1114_v24 = vpack.c.bf16 %v1113_v23, %v1113_v23  ;;  %v1245_v33 = vmul.f32 %v1913_v29, %v2257_v50  ;;  %v1915_v10 = vpop.eup %1914 }
 0x418   : > { %v1180_v32 = vpack.c.bf16 %v1179_v28, %v1179_v28  ;;  %v1322_v11 = vmul.f32 32.0, %v1915_v10  ;;  %vm1326_vm15 = vweird.f32 %v1915_v10  ;;  %v1827_v28 = vld [vmem:[%s2108_s25] sm:$0xff] }
 0x419   : > { %v1246_v34 = vpack.c.bf16 %v1245_v33, %v1245_v33 }
 0x41a   : > { %v1323_v12 = vsub.f32 1.0, %v1322_v11 }
 0x41c   : > { %v1324_v13 = vmul.f32 %v1915_v10, %v1323_v12 }
 0x41d   : > { %v1248_v25 = vpop.permute.xlu0 %1247 }
 0x41e   : > { %v1253_v26 = vsel %vm792_vm11, %v1248_v25, 0  ;;  %1765 = vmatmul.msk.bf16.vlgmr.msrb.gmra.mxu2 %vm752_vm10, %v1114_v24  ;;  %v1325_v14 = vadd.f32 %v1915_v10, %v1324_v13  ;;  %v1828_v24 = vld [vmem:[%s2108_s25 + $0x8] sm:$0xff] }
 0x41f   : > { %1262 = vmatpush.bf16.msra.mxu2 %v1253_v26 }
 0x425   : > { %v1182_v30 = vpop.permute.xlu1 %1181 }
 0x426   : > { %v1187_v31 = vsel %vm792_vm11, %v1182_v30, 0 }
 0x427   : > { %1196 = vmatpush.bf16.msrb.mxu1 %v1187_v31 }
 0x42a   : > { %1767 = vmatmul.msk.bf16.vlgmr.msrb.gmra.mxu1 %vm752_vm10, %v1180_v32 }
 0x42b   : > { %1404 = vmatpush.bf16.msra.mxu1 %v1828_v24 }
 0x42e   : > { %1769 = vmatmul.msk.bf16.vlgmr.msra.gmra.mxu2 %vm752_vm10, %v1246_v34 }
 0x42f   : > { %1405 = vmatpush.bf16.msra.mxu1 %v1827_v28 }
 0x44b   : > { %v805_v35 = vpop.f32.mrf.mxu2 }
 0x44c   : > { %809 = vst.msk [vmem:[#allocation4] sm:$0xff] %vm752_vm10, %v805_v35 }
 0x44d   : > { %v934_v60 = vpop.f32.mrf.mxu1 }
 0x44e   : > { %939 = vrot.lane.b32.xlu0 %v934_v60, %s1981_s3 }
 0x453   : > { %v807_v36 = vpop.f32.mrf.mxu2 }
 0x455   : > { %v936_v37 = vpop.f32.mrf.mxu1 }
 0x45b   : > { %v867_v38 = vpop.f32.mrf.mxu2 }
 0x45c   : > { %872 = vrot.lane.b32.xlu0 %v867_v38, %s1982_s21 }
 0x463   : > { %v869_v39 = vpop.f32.mrf.mxu2 }
 0x483   : > { %v1070_v40 = vpop.f32.mrf.mxu1 }
 0x484   : > { %1074 = vst.msk [vmem:[#allocation4 + $0x8] sm:$0xff] %vm752_vm10, %v1070_v40 }
 0x48b   : > { %v1072_v41 = vpop.f32.mrf.mxu1 }
 0x491   : > { %v1001_v42 = vpop.f32.mrf.mxu2 }
 0x492   : > { %1006 = vrot.lane.b32.xlu2 %v1001_v42, %s1983_s5 }
 0x499   : > { %v1003_v43 = vpop.f32.mrf.mxu2 }
 0x49a   : > { %v1876_v43 = vld [vmem:[%s2103_s22] ss:$0 sm:$0xff] }
 0x4a1   : > { %v1132_v44 = vpop.f32.mrf.mxu2 }
 0x4a2   : > { %1137 = vrot.lane.b32.xlu1 %v1132_v44, %s1982_s21 }
 0x4a7   : > { %v1198_v45 = vpop.f32.mrf.mxu1 }
 0x4a9   : > { %v1134_v46 = vpop.f32.mrf.mxu2 }
 0x4aa   : > { %1203 = vrot.lane.b32.xlu1 %v1198_v45, %s1981_s3 }
 0x4af   : > { %v1200_v47 = vpop.f32.mrf.mxu1 }
 0x4b0   : > { %v1877_v47 = vld [vmem:[%s2103_s22 + $0x1] ss:$0 sm:$0xff] }
 0x4b1   : > { %v1264_v48 = vpop.f32.mrf.mxu2 }
 0x4b2   : > { %1269 = vrot.lane.b32.xlu0 %v1264_v48, %s1983_s5 }
 0x4b9   : > { %v1266_v49 = vpop.f32.mrf.mxu2 }
 0x4c0   : > { %v940_v50 = vpop.permute.xlu0 %939 }
 0x4ce   : > { %v873_v53 = vpop.permute.xlu0 %872 }
 0x4cf   : > { %876 = vst.msk [vmem:[#allocation4] sm:$0xff] %vm875_vm12, %v873_v53 }
 0x4d0   : > { %943 = vst.msk [vmem:[#allocation4] sm:$0xff] %vm942_vm13, %v940_v50 }
 0x4ec   : > { %v1007_v54 = vpop.permute.xlu2 %1006 }
 0x4ed   : > { %1010 = vst.msk [vmem:[#allocation4] sm:$0xff] %vm1009_vm14, %v1007_v54 }
 0x4f4   : > { %v1273_v61 = vld [vmem:[#allocation4] sm:$0xff] }
 0x514   : > { %v1138_v57 = vpop.permute.xlu1 %1137 }
 0x515   : > { %1140 = vst.msk [vmem:[#allocation4 + $0x8] sm:$0xff] %vm875_vm12, %v1138_v57  ;;  %v1831_v57 = vld [vmem:[%s2118_s16 + $0x10] sm:$0xff] }
 0x516   : > { %1476 = vmatpush.bf16.msra.mxu3 %v1831_v57  ;;  %v1881_v57 = vld [vmem:[%s2127_s24 + $0x1] ss:$0 sm:$0xff] }
 0x51c   : > { %v1204_v58 = vpop.permute.xlu1 %1203 }
 0x51d   : > { %1206 = vst.msk [vmem:[#allocation4 + $0x8] sm:$0xff] %vm942_vm13, %v1204_v58  ;;  %v1830_v58 = vld [vmem:[%s2118_s16 + $0x8] sm:$0xff] }
 0x51e   : > { %1477 = vmatpush.bf16.msra.mxu3 %v1830_v58 }
 0x524   : > { %v1270_v59 = vpop.permute.xlu0 %1269 }
 0x525   : > { %1272 = vst.msk [vmem:[#allocation4 + $0x8] sm:$0xff] %vm1009_vm14, %v1270_v59  ;;  %v1829_v59 = vld [vmem:[%s2118_s16] sm:$0xff] }
 0x526   : > { %1478 = vmatpush.bf16.msra.mxu3 %v1829_v59 }
 0x52c   : > { %v1274_v63 = vld [vmem:[#allocation4 + $0x8] sm:$0xff] }
 0x52d   : > { %v1275_v0 = vpack.c.bf16 %v1274_v63, %v1273_v61  ;;  %v1878_v61 = vld [vmem:[%s618_s28] ss:$0 sm:$0xff] }
 0x52f   : > { %1778 = vmatmul.msk.bf16.vlgmr.msra.gmra.mxu0 %vm723_vm8, %v1275_v0 }
 0x5ac   : > { %v1308_v2 = vpop.f32.mrf.mxu0 }
 0x5ad   : > { %v1309_v3 = vadd.f32 %v1875_v1, %v1308_v2 }
 0x5af   : > { %v1313_v4 = vadd.f32 %v1309_v3, %v2150_v51  ;;  %v2298_v51 = vsel %vm1326_vm15, %v1915_v10, %v1325_v14 }
 0x5b1   : > { %v1315_v62 = vsel %vm723_vm8, %v1313_v4, 0.0 }
 0x5b2   : > { %1316 = vadd.xlane.f32.xlu1 %v1315_v62 }
 0x5b4   : > { %v1310_v5 = vpop.f32.mrf.mxu0 }
 0x5b5   : > { %v1311_v6 = vadd.f32 %v1875_v1, %v1310_v5 }
 0x5b7   : > { %v1314_v7 = vadd.f32 %v1311_v6, %v2152_v52 }
 0x5b9   : > { %v1318_v8 = vsel %vm723_vm8, %v1314_v7, 0.0 }
 0x5ba   : > { %1319 = vadd.xlane.f32.xlu0 %v1318_v8 }
 0x625   : > { %v1317_v15 = vpop.xlane.xlu1 %1316 }
 0x626   : > { %v1328_v16 = vmul.f32 %v2298_v51, %v1317_v15 }
 0x628   : > { %v1330_v17 = vsub.f32 %v1313_v4, %v1328_v16 }
 0x62a   : > { %v1332_v52 = vmul.f32 %v1330_v17, %v1330_v17 }
 0x62c   : > { %v1334_v18 = vsel %vm723_vm8, %v1332_v52, 0.0 }
 0x62d   : > { %v1320_v19 = vpop.xlane.xlu0 %1319  ;;  %1335 = vadd.xlane.f32.xlu2 %v1334_v18 }
 0x62e   : > { %v1329_v20 = vmul.f32 %v2298_v51, %v1320_v19 }
 0x630   : > { %v1331_v21 = vsub.f32 %v1314_v7, %v1329_v20  ;;  %v1879_v20 = vld [vmem:[%s626_s13] ss:$0 sm:$0xff]  ;;  %s2388_s13 = sld [smem:[#allocation13_spill]] (!%p1805_p5) }
 0x632   : > { %v1333_v22 = vmul.f32 %v1331_v21, %v1331_v21 }
 0x634   : > { %v1337_v23 = vsel %vm723_vm8, %v1333_v22, 0.0 }
 0x635   : > { %1338 = vadd.xlane.f32.xlu1 %v1337_v23 }
 0x6a0   : > { %v1336_v25 = vpop.xlane.xlu2 %1335 }
 0x6a1   : > { %v1340_v26 = vmul.f32 %v1336_v25, %v2298_v51 }
 0x6a3   : > { %v1342_v27 = vadd.f32 1e-05, %v1340_v26 }
 0x6a5   : > { %1916 = vrsqrt.f32 %v1342_v27  ;;  %vm1350_vm1 = vweird.f32 %v1342_v27 }
 0x6a8   : > { %v1339_v29 = vpop.xlane.xlu1 %1338 }
 0x6a9   : > { %v1341_v30 = vmul.f32 %v1339_v29, %v2298_v51 }
 0x6ab   : > { %v1917_v31 = vpop.eup %1916  ;;  %v1343_v32 = vadd.f32 1e-05, %v1341_v30 }
 0x6ac   : > { %v1345_v33 = vmul.f32 %v1917_v31, %v1342_v27  ;;  %vm1351_vm0 = vweird.f32 %v1917_v31 }
 0x6ad   : > { %1918 = vrsqrt.f32 %v1343_v32  ;;  %vm1352_vm2 = vmor %vm1350_vm1, %vm1351_vm0  ;;  %vm1360_vm4 = vweird.f32 %v1343_v32 }
 0x6ae   : > { %v1346_v34 = vmul.f32 %v1917_v31, %v1345_v33 }
 0x6b0   : > { %v1347_v35 = vmul.f32 0.5, %v1346_v34 }
 0x6b2   : > { %v1348_v60 = vsub.f32 1.5, %v1347_v35 }
 0x6b3   : > { %v1919_v36 = vpop.eup %1918 }
 0x6b4   : > { %v1349_v37 = vmul.f32 %v1917_v31, %v1348_v60  ;;  %v1355_v38 = vmul.f32 %v1919_v36, %v1343_v32  ;;  %vm1361_vm3 = vweird.f32 %v1919_v36 }
 0x6b5   : > { %vm1362_vm5 = vmor %vm1360_vm4, %vm1361_vm3 }
 0x6b6   : > { %v1356_v39 = vmul.f32 %v1919_v36, %v1355_v38  ;;  %v1353_v40 = vsel %vm1352_vm2, %v1917_v31, %v1349_v37 }
 0x6b7   : > { %v1364_v44 = vmul.f32 %v1353_v40, %v1330_v17 }
 0x6b8   : > { %v1357_v41 = vmul.f32 0.5, %v1356_v39 }
 0x6b9   : > { %v1368_v48 = vmul.f32 %v1876_v43, %v1364_v44 }
 0x6ba   : > { %v1358_v42 = vsub.f32 1.5, %v1357_v41 }
 0x6bb   : > { %v1372_v53 = vadd.f32 %v1877_v47, %v1368_v48 }
 0x6bc   : > { %v1359_v45 = vmul.f32 %v1919_v36, %v1358_v42 }
 0x6be   : > { %v1363_v46 = vsel %vm1362_vm5, %v1919_v36, %v1359_v45 }
 0x6bf   : > { %v1365_v49 = vmul.f32 %v1363_v46, %v1331_v21 }
 0x6c1   : > { %v1369_v50 = vmul.f32 %v1876_v43, %v1365_v49 }
 0x6c3   : > { %v1373_v54 = vadd.f32 %v1877_v47, %v1369_v50 }
 0x6c5   : > { %v1374_v55 = vpack.c.bf16 %v1373_v54, %v1372_v53 }
 0x6c7   : > { %1787 = vmatmul.msk.bf16.vlgmr.msra.gmra.mxu1 %vm723_vm8, %v1374_v55 }
 0x744   : > { %v1407_v63 = vpop.f32.mrf.mxu1 }
 0x745   : > { %v1408_v0 = vadd.f32 %v1878_v61, %v1407_v63 }
 0x747   : > { %v1414_v1 = vmul.f32 0.044715, %v1408_v0  ;;  %v1412_v15 = vmul.f32 0.5, %v1408_v0 }
 0x749   : > { %v1416_v2 = vmul.f32 %v1414_v1, %v1408_v0 }
 0x74b   : > { %v1418_v3 = vmul.f32 %v1416_v2, %v1408_v0 }
 0x74c   : > { %v1409_v4 = vpop.f32.mrf.mxu1 }
 0x74d   : > { %v1420_v62 = vadd.f32 %v1418_v3, %v1408_v0  ;;  %v1410_v5 = vadd.f32 %v1878_v61, %v1409_v4 }
 0x74f   : > { %v1415_v6 = vmul.f32 0.044715, %v1410_v5  ;;  %v1422_v7 = vmul.f32 0.7978846, %v1420_v62  ;;  %v1413_v16 = vmul.f32 0.5, %v1410_v5 }
 0x751   : > { %v1417_v8 = vmul.f32 %v1415_v6, %v1410_v5  ;;  %1920 = vtanh.f32 %v1422_v7 }
 0x753   : > { %v1419_v9 = vmul.f32 %v1417_v8, %v1410_v5 }
 0x755   : > { %v1421_v10 = vadd.f32 %v1419_v9, %v1410_v5 }
 0x757   : > { %v1423_v11 = vmul.f32 0.7978846, %v1421_v10  ;;  %v1921_v12 = vpop.eup %1920 }
 0x758   : > { %v1426_v13 = vadd.f32 1.0, %v1921_v12 }
 0x759   : > { %1922 = vtanh.f32 %v1423_v11 }
 0x75a   : > { %v1428_v52 = vmul.f32 %v1426_v13, %v1412_v15 }
 0x75f   : > { %v1923_v14 = vpop.eup %1922 }
 0x760   : > { %v1427_v17 = vadd.f32 1.0, %v1923_v14 }
 0x762   : > { %v1429_v18 = vmul.f32 %v1427_v17, %v1413_v16 }
 0x764   : > { %v1430_v19 = vpack.c.bf16 %v1429_v18, %v1428_v52 }
 0x766   : > { %1804 = vmatmul.msk.bf16.vlgmr.msra.gmra.mxu3 %vm1467_vm6, %v1430_v19 }
 0x7e9   : > { %v1480_v21 = vpop.f32.mrf.mxu3 }
 0x7ea   : > { %v1481_v22 = vadd.f32 %v1879_v20, %v1480_v21 }
 0x7ec   : > { %v1485_v23 = vadd.f32 %v1481_v22, %v1372_v53 }
 0x7ee   : > { %v1487_v24 = vsel %vm723_vm8, %v1485_v23, 0.0 }
 0x7ef   : > { %1488 = vadd.xlane.f32.xlu0 %v1487_v24 }
 0x7f1   : > { %v1482_v25 = vpop.f32.mrf.mxu3 }
 0x7f2   : > { %v1483_v26 = vadd.f32 %v1879_v20, %v1482_v25 }
 0x7f4   : > { %v1486_v27 = vadd.f32 %v1483_v26, %v1373_v54  ;;  %v1880_v54 = vld [vmem:[%s2127_s24] ss:$0 sm:$0xff] }
 0x7f6   : > { %v1490_v28 = vsel %vm723_vm8, %v1486_v27, 0.0 }
 0x7f7   : > { %1491 = vadd.xlane.f32.xlu1 %v1490_v28 }
 0x862   : > { %v1489_v29 = vpop.xlane.xlu0 %1488 }
 0x863   : > { %v1493_v30 = vmul.f32 %v1489_v29, %v2298_v51 }
 0x865   : > { %v1495_v31 = vsub.f32 %v1485_v23, %v1493_v30 }
 0x867   : > { %v1497_v32 = vmul.f32 %v1495_v31, %v1495_v31 }
 0x869   : > { %v1499_v33 = vsel %vm723_vm8, %v1497_v32, 0.0 }
 0x86a   : > { %v1492_v34 = vpop.xlane.xlu1 %1491  ;;  %1500 = vadd.xlane.f32.xlu0 %v1499_v33 }
 0x86b   : > { %v1494_v35 = vmul.f32 %v1492_v34, %v2298_v51 }
 0x86d   : > { %v1496_v60 = vsub.f32 %v1486_v27, %v1494_v35 }
 0x86f   : > { %v1498_v36 = vmul.f32 %v1496_v60, %v1496_v60 }
 0x871   : > { %v1502_v37 = vsel %vm723_vm8, %v1498_v36, 0.0 }
 0x872   : > { %1503 = vadd.xlane.f32.xlu1 %v1502_v37 }
 0x8dd   : > { %v1501_v38 = vpop.xlane.xlu0 %1500 }
 0x8de   : > { %v1505_v39 = vmul.f32 %v1501_v38, %v2298_v51 }
 0x8e0   : > { %v1507_v40 = vadd.f32 1e-05, %v1505_v39 }
 0x8e2   : > { %1924 = vrsqrt.f32 %v1507_v40  ;;  %vm1515_vm9 = vweird.f32 %v1507_v40 }
 0x8e5   : > { %v1504_v41 = vpop.xlane.xlu1 %1503 }
 0x8e6   : > { %v1506_v42 = vmul.f32 %v1504_v41, %v2298_v51 }
 0x8e8   : > { %v1925_v43 = vpop.eup %1924  ;;  %v1508_v44 = vadd.f32 1e-05, %v1506_v42 }
 0x8e9   : > { %v1510_v45 = vmul.f32 %v1925_v43, %v1507_v40  ;;  %vm1516_vm7 = vweird.f32 %v1925_v43 }
 0x8ea   : > { %1926 = vrsqrt.f32 %v1508_v44  ;;  %vm1517_vm10 = vmor %vm1515_vm9, %vm1516_vm7  ;;  %vm1525_vm12 = vweird.f32 %v1508_v44 }
 0x8eb   : > { %v1511_v46 = vmul.f32 %v1925_v43, %v1510_v45 }
 0x8ed   : > { %v1512_v47 = vmul.f32 0.5, %v1511_v46 }
 0x8ef   : > { %v1513_v48 = vsub.f32 1.5, %v1512_v47 }
 0x8f0   : > { %v1927_v49 = vpop.eup %1926 }
 0x8f1   : > { %v1514_v50 = vmul.f32 %v1925_v43, %v1513_v48  ;;  %v1520_v53 = vmul.f32 %v1927_v49, %v1508_v44  ;;  %vm1526_vm11 = vweird.f32 %v1927_v49 }
 0x8f2   : > { %vm1527_vm13 = vmor %vm1525_vm12, %vm1526_vm11 }
 0x8f3   : > { %v1518_v55 = vsel %vm1517_vm10, %v1925_v43, %v1514_v50  ;;  %v1521_v56 = vmul.f32 %v1927_v49, %v1520_v53 }
 0x8f4   : > { %v1529_v58 = vmul.f32 %v1518_v55, %v1495_v31 }
 0x8f5   : > { %v1522_v51 = vmul.f32 0.5, %v1521_v56 }
 0x8f6   : > { %v1533_v59 = vmul.f32 %v1880_v54, %v1529_v58 }
 0x8f7   : > { %v1523_v61 = vsub.f32 1.5, %v1522_v51 }
 0x8f8   : > { %v1537_v63 = vadd.f32 %v1881_v57, %v1533_v59 }
 0x8f9   : > { %v1524_v0 = vmul.f32 %v1927_v49, %v1523_v61 }
 0x8fa   : > { %1539 = vst.msk [vmem:[#allocation2] sm:$0xff] %vm723_vm8, %v1537_v63 }
 0x8fb   : > { %v1528_v1 = vsel %vm1527_vm13, %v1927_v49, %v1524_v0 }
 0x8fc   : > { %v1530_v2 = vmul.f32 %v1528_v1, %v1496_v60 }
 0x8fe   : > { %v1534_v3 = vmul.f32 %v1880_v54, %v1530_v2  ;;  %1544 = sbr.rel (%p1805_p5) target bundleno = 2452 (0x994), region = 88 }
 0x900   : > { %v1538_v4 = vadd.f32 %v1881_v57, %v1534_v3 }
 0x902   : > { %1540 = vst.msk [vmem:[#allocation2 + $0x8] sm:$0xff] %vm723_vm8, %v1538_v4 }
 0x903   : > { %v1834_v62 = vld [vmem:[%s2388_s13 + $0x8] sm:$0xff]  ;;  %v1833_v5 = vld [vmem:[%s2388_s13] sm:$0xff]  ;;  %v1545_v6 = vpack.c.bf16 %v1538_v4, %v1537_v63  ;;  %vm1583_vm14 = vcmask 516096  }
 0x904   : > { %1575 = vmatpush.bf16.msra.mxu0 %v1834_v62  ;;  %v1928_v7 = vld [vmem:[%s2389_s27] ss:$0 sm:$0xff] }
 0x908   : > { %1576 = vmatpush.bf16.msra.mxu0 %v1833_v5 }
 0x90b   : > { %1814 = vmatmul.msk.bf16.vlgmr.msra.gmra.mxu0 %vm723_vm8, %v1545_v6 }
 0x988   : > { %v1578_v8 = vpop.f32.mrf.mxu0 }
 0x989   : > { %v1579_v9 = vadd.f32 %v1928_v7, %v1578_v8 }
 0x98b   : > { %1584 = vst.msk [vmem:[#allocation5] sm:$0x1] %vm1583_vm14, %v1579_v9 }
 0x990   : > { %v1580_v10 = vpop.f32.mrf.mxu0 }
 0x991   : > { %v1581_v11 = vadd.f32 %v1928_v7, %v1580_v10 }
 0x993   : > { %1585 = vst.msk [vmem:[#allocation5 + $0x1] sm:$0x1] %vm1583_vm14, %v1581_v11 }
 0x994 PF: > { %p1839_p6 = scmp.eq.s32.totalorder %s2072_s19, 1  ;;  %s1985_s14 = smov [#allocation5]  }
 0x995   : > { %s1592_s3 = sshll.u32 %s1985_s14, 4  ;;  %s2390_s30 = sld [smem:[#allocation15_spill]]  ;;  %s1593_s3 = int_to_ptr.vmem [resolvable:$true] %s1592_s3 }
 0x99b   : > { %s1594_s7 = sshll.u32 %s2390_s30, 4  ;;  %s1595_s7 = int_to_ptr.hbm [resolvable:$true] %s1594_s7 }
 0x99c   : > { %1836 = dma.vmem_to_hbm [thread:$0]  (%p1839_p6), %s1593_s3, 32, %s1595_s7, [#allocation6]  }
 0x99d   : > { %1962 = dma.done.wait (%p1839_p6), [#allocation6], 32  }
 0x99e   : > { %1964 = vsyncadd (%p1839_p6), [#allocation6], 4294967264 }
 0x99f PF: > { %s2391_s15 = sld [smem:[#allocation8_spill]] }
 0x9a5   : > { %s26_s18 = sadd.s32 1, %s2391_s15  }
 0x9a6   : > { %p23_p7 = scmp.ge.s32.totalorder %s26_s18, 4  }
 0x9a8   :  { %25 = sbr.rel (!%p23_p7) target bundleno = 8 (0x8), region = 142 }
 0x9ad   :  { %1608 = vsyncpa [#allocation6], 1 }
 0x9ae   :  { %1610 = vsyncpa [#allocation6 + $0x1], 1 }

</bundles_post_ra>
